<compile_context>
chip_gen: v7x
topology: tpu7x:2x2x1
jax: 0.10.0
libtpu: 0.0.40
codegen_flags: <defaults>
</compile_context>

<pallas_src>
import functools

import jax
import jax.numpy as jnp
from jax import lax
from jax.experimental import pallas as pl
from jax.experimental.pallas import tpu as pltpu


def basic_block_kernel(x_ref, w1_ref, w2_ref, s1_ref, b1_ref, s2_ref, b2_ref,
                       out_ref, *, seq_len, ksize, pad):
    """One grid step: a (batch_tile*seq_len, C) slab of rows, channels on the lane axis."""
    M, _ = x_ref.shape
    L = seq_len

    x = x_ref[...].astype(jnp.float32)                           # (M, C); residual kept f32

    # Position of each row within its own sample (rows are [batch_tile, L] flattened).
    l_pos = lax.broadcasted_iota(jnp.int32, (M, 1), 0) % L       # (M, 1)

    # Boundary (zero-pad) masks depend only on row position -> compute once, reuse in both convs.
    valid = {}
    for k in range(ksize):
        d = k - pad
        if d != 0:
            valid[d] = jnp.logical_and(l_pos + d >= 0, l_pos + d < L)

    def conv_taps(a, w_ref):
        # a: (M, C) f32.  Builds the tap-stacked (im2col) LHS and runs ONE bf16 MXU matmul
        # with a K*C-deep contraction.  Zero-padding is realized with roll + row masks.
        taps = []
        for k in range(ksize):
            d = k - pad
            if d == 0:
                taps.append(a.astype(jnp.bfloat16))
                continue
            shifted = pltpu.roll(a, shift=(-d) % M, axis=0)          # rows crossing a sample
            taps.append(jnp.where(valid[d], shifted, 0.0)            # boundary are exactly the
                        .astype(jnp.bfloat16))                       # masked (zero-pad) rows
        col = jnp.concatenate(taps, axis=-1)                     # (M, K*C) bf16, lane-tiled
        return jnp.dot(col, w_ref[...], preferred_element_type=jnp.float32)

    # conv1 -> bn1 (inference, folded) -> relu.  Dropout(p=0.5) is identity in eval mode.
    # TODO(synk): training-mode stochastic dropout not implemented (inference only).
    h = jnp.maximum(conv_taps(x, w1_ref) * s1_ref[...] + b1_ref[...], 0.0)

    # conv2 -> bn2 -> +residual -> relu
    out = conv_taps(h, w2_ref) * s2_ref[...] + b2_ref[...]
    out_ref[...] = jnp.maximum(x + out, 0.0).astype(out_ref.dtype)


def _pick_batch_tile(n, seq_len, target_rows=512):
    """Largest divisor of n whose slab is <= target_rows rows; prefer >=2 grid steps (v7x 2 TCs)."""
    divisors = [d for d in range(1, n + 1) if n % d == 0]
    fits = [d for d in divisors if d * seq_len <= target_rows]
    multi = [d for d in fits if n // d >= 2]
    if multi:
        return max(multi)
    if fits:
        return max(fits)
    return 1


def basic_block1d(x_ncl, w1, w2, bn1, bn2, *, ksize, pad, batch_tile=None, eps=1e-5):
    """x_ncl: (N, C, L) f32 (PyTorch layout). w1/w2: (Cout, Cin, ksize) conv weights (bias=False).
    bn1/bn2 = (gamma, beta, running_mean, running_var). Inference-mode BatchNorm."""
    N, Cin, L = x_ncl.shape
    Cout = w1.shape[0]
    assert Cout == Cin, "downsample=None requires inplanes == planes"
    assert w1.shape == (Cout, Cin, ksize) and w2.shape == (Cout, Cout, ksize)

    if batch_tile is None:
        batch_tile = _pick_batch_tile(N, L)
    assert N % batch_tile == 0
    rows_per_step = batch_tile * L
    assert rows_per_step % 8 == 0, "batch_tile * L must be sublane aligned"

    # NCL -> flat (N*L, C): channels on lanes, rows = (batch, position) flattened. No jnp.pad.
    x_flat = jnp.transpose(x_ncl, (0, 2, 1)).reshape(N * L, Cin)

    # Tap-stacked weights: (K*Cin, Cout) with row index k*Cin + cin, cast once to bf16.
    w1_t = jnp.transpose(w1, (2, 1, 0)).reshape(ksize * Cin, Cout).astype(jnp.bfloat16)
    w2_t = jnp.transpose(w2, (2, 1, 0)).reshape(ksize * Cout, Cout).astype(jnp.bfloat16)

    def fold_bn(p):
        g, b, m, v = p
        s = g / jnp.sqrt(v + eps)
        return (s.reshape(1, Cout).astype(jnp.float32),
                (b - m * s).reshape(1, Cout).astype(jnp.float32))

    s1, b1 = fold_bn(bn1)
    s2, b2 = fold_bn(bn2)

    out_flat = pl.pallas_call(
        functools.partial(basic_block_kernel, seq_len=L, ksize=ksize, pad=pad),
        out_shape=jax.ShapeDtypeStruct((N * L, Cout), x_ncl.dtype),
        grid_spec=pltpu.PrefetchScalarGridSpec(
            num_scalar_prefetch=0,
            grid=(N // batch_tile,),
            in_specs=[
                pl.BlockSpec((rows_per_step, Cin), lambda n: (n, 0)),     # input slab (residual)
                pl.BlockSpec((ksize * Cin, Cout), lambda n: (0, 0)),      # w1 tap-stacked, bf16
                pl.BlockSpec((ksize * Cout, Cout), lambda n: (0, 0)),     # w2 tap-stacked, bf16
                pl.BlockSpec((1, Cout), lambda n: (0, 0)),                # bn1 scale
                pl.BlockSpec((1, Cout), lambda n: (0, 0)),                # bn1 shift
                pl.BlockSpec((1, Cout), lambda n: (0, 0)),                # bn2 scale
                pl.BlockSpec((1, Cout), lambda n: (0, 0)),                # bn2 shift
            ],
            out_specs=pl.BlockSpec((rows_per_step, Cout), lambda n: (n, 0)),  # lane-dense out
        ),
        compiler_params=pltpu.CompilerParams(
            dimension_semantics=("parallel",)),
    )(x_flat, w1_t, w2_t, s1, b1, s2, b2)

    return jnp.transpose(out_flat.reshape(N, L, Cout), (0, 2, 1))       # back to (N, C, L)


# The two residual blocks used by Network: conv5x5 (k=9, pad=4) and conv7x7 (k=15, pad=7).
basic_block5x5 = functools.partial(basic_block1d, ksize=9, pad=4)
basic_block7x7 = functools.partial(basic_block1d, ksize=15, pad=7)


def ref_forward(x, w1, w2, bn1, bn2, *, pad, eps=1e-5, quantize_bf16=False):
    """Pure-JAX reference matching PyTorch eval-mode semantics.
    quantize_bf16=True mirrors the kernel's bf16-operand / f32-accumulate MXU path."""
    if quantize_bf16:
        q = lambda a: a.astype(jnp.bfloat16).astype(jnp.float32)
    else:
        q = lambda a: a

    def conv(a, w):
        return jax.lax.conv_general_dilated(
            q(a), q(w), window_strides=(1,), padding=[(pad, pad)],
            dimension_numbers=('NCH', 'OIH', 'NCH'),
            precision=jax.lax.Precision.HIGHEST)

    def bn(a, p):
        g, b, m, v = p
        return ((a - m[None, :, None]) / jnp.sqrt(v[None, :, None] + eps)
                * g[None, :, None] + b[None, :, None])

    h = jax.nn.relu(bn(conv(x, w1), bn1))
    out = bn(conv(h, w2), bn2)                 # dropout is identity in eval
    return jax.nn.relu(x + out)


if __name__ == "__main__":
    # Small shapes consistent with Network.layer5x5_2 / layer7x7_2: 128-channel blocks,
    # batch=8, L=32.
    N, C, L = 8, 128, 32
    key = jax.random.PRNGKey(0)
    kx, kw, kb = jax.random.split(key, 3)

    x = jax.random.normal(kx, (N, C, L), jnp.float32)

    def make_weights(k, ksize):
        k1, k2 = jax.random.split(k, 2)
        fan_in = C * ksize
        w1 = jax.random.normal(k1, (C, C, ksize), jnp.float32) / jnp.sqrt(fan_in)
        w2 = jax.random.normal(k2, (C, C, ksize), jnp.float32) / jnp.sqrt(fan_in)
        return w1, w2

    def bn_params(k):
        k1, k2, k3, k4 = jax.random.split(k, 4)
        gamma = 1.0 + 0.1 * jax.random.normal(k1, (C,), jnp.float32)
        beta = 0.05 * jax.random.normal(k2, (C,), jnp.float32)
        mean = 0.1 * jax.random.normal(k3, (C,), jnp.float32)
        var = 0.5 + jnp.abs(jax.random.normal(k4, (C,), jnp.float32)) * 0.5
        return gamma, beta, mean, var

    kb1, kb2 = jax.random.split(kb, 2)
    bn1 = bn_params(kb1)
    bn2 = bn_params(kb2)

    configs = [
        ("BasicBlock5x5", 9, 4, basic_block5x5),
        ("BasicBlock7x7", 15, 7, basic_block7x7),
    ]
    for name, ksize, pad, fn in configs:
        kw_i = jax.random.fold_in(kw, ksize)
        w1, w2 = make_weights(kw_i, ksize)

        out = fn(x, w1, w2, bn1, bn2)
        out = jax.block_until_ready(out)
        assert out.shape == (N, C, L), name

        # Structural check (tight): reference with conv operands rounded to bf16, mirroring
        # the kernel's MXU bf16-operand / f32-accumulation path.
        ref_q = ref_forward(x, w1, w2, bn1, bn2, pad=pad, quantize_bf16=True)
        err_q = jnp.max(jnp.abs(out - ref_q))
        assert jnp.allclose(out, ref_q, atol=5e-3, rtol=5e-3), \
            f"{name}: bf16-ref max abs err {err_q}"

        # Sanity check (loose) vs exact-f32 math: difference bounded by bf16 quantization.
        ref = ref_forward(x, w1, w2, bn1, bn2, pad=pad, quantize_bf16=False)
        err = jnp.max(jnp.abs(out - ref))
        assert jnp.allclose(out, ref, atol=2e-1, rtol=2e-1), \
            f"{name}: f32-ref max abs err {err}"

    print("KERNEL_OK")
</pallas_src>

<mosaic_0001>
module attributes {stable_mosaic.version = 11 : i64} {
  func.func @basic_block_kernel(%arg0: i32, %arg1: memref<128x128xf32, #tpu.memory_space<vmem>>, %arg2: memref<1152x128xbf16, #tpu.memory_space<vmem>>, %arg3: memref<1152x128xbf16, #tpu.memory_space<vmem>>, %arg4: memref<1x128xf32, #tpu.memory_space<vmem>>, %arg5: memref<1x128xf32, #tpu.memory_space<vmem>>, %arg6: memref<1x128xf32, #tpu.memory_space<vmem>>, %arg7: memref<1x128xf32, #tpu.memory_space<vmem>>, %arg8: memref<128x128xf32, #tpu.memory_space<vmem>>) attributes {dimension_semantics = [#tpu.dimension_semantics<parallel>], iteration_bounds = array<i64: 2>, scalar_prefetch = 0 : i64, scratch_operands = 0 : i64, tpu.core_type = #tpu.core_type<tc>, window_params = [{transform_indices = @transform_0, window_bounds = array<i64: 128, 128>}, {pipeline_mode = #tpu.pipeline_mode<synchronous>, transform_indices = @transform_1, window_bounds = array<i64: 1152, 128>}, {pipeline_mode = #tpu.pipeline_mode<synchronous>, transform_indices = @transform_2, window_bounds = array<i64: 1152, 128>}, {pipeline_mode = #tpu.pipeline_mode<synchronous>, transform_indices = @transform_3, window_bounds = array<i64: 1, 128>}, {pipeline_mode = #tpu.pipeline_mode<synchronous>, transform_indices = @transform_4, window_bounds = array<i64: 1, 128>}, {pipeline_mode = #tpu.pipeline_mode<synchronous>, transform_indices = @transform_5, window_bounds = array<i64: 1, 128>}, {pipeline_mode = #tpu.pipeline_mode<synchronous>, transform_indices = @transform_6, window_bounds = array<i64: 1, 128>}, {transform_indices = @transform_7, window_bounds = array<i64: 128, 128>}]} {
    %c0 = arith.constant 0 : index
    %c0_0 = arith.constant 0 : index
    %0 = vector.load %arg1[%c0, %c0_0] : memref<128x128xf32, #tpu.memory_space<vmem>>, vector<128x128xf32>
    %1 = tpu.iota {dimensions = array<i32: 0>} : vector<128x1xi32>
    %c32_i32 = arith.constant 32 : i32
    %c0_i32 = arith.constant 0 : i32
    %2 = arith.cmpi eq, %c32_i32, %c0_i32 : i32
    %c1_i32 = arith.constant 1 : i32
    %3 = arith.select %2, %c1_i32, %c32_i32 : i32
    %4 = vector.broadcast %3 : i32 to vector<128x1xi32>
    %5 = arith.remsi %1, %4 : vector<128x1xi32>
    %c0_i32_1 = arith.constant 0 : i32
    %6 = vector.broadcast %c0_i32_1 : i32 to vector<128x1xi32>
    %7 = arith.cmpi ne, %5, %6 : vector<128x1xi32>
    %c0_i32_2 = arith.constant 0 : i32
    %8 = vector.broadcast %c0_i32_2 : i32 to vector<128x1xi32>
    %9 = arith.cmpi slt, %5, %8 : vector<128x1xi32>
    %c0_i32_3 = arith.constant 0 : i32
    %10 = arith.cmpi slt, %3, %c0_i32_3 : i32
    %11 = vector.broadcast %10 : i1 to vector<128x1xi1>
    %12 = vector.broadcast %11 : vector<128x1xi1> to vector<128x1xi1>
    %13 = arith.xori %9, %12 : vector<128x1xi1>
    %14 = arith.andi %13, %7 : vector<128x1xi1>
    %15 = vector.broadcast %3 : i32 to vector<128x1xi32>
    %16 = arith.addi %5, %15 : vector<128x1xi32>
    %17 = arith.select %14, %16, %5 : vector<128x1xi1>, vector<128x1xi32>
    %c-4_i32 = arith.constant -4 : i32
    %18 = vector.broadcast %c-4_i32 : i32 to vector<128x1xi32>
    %19 = arith.addi %17, %18 : vector<128x1xi32>
    %c0_i32_4 = arith.constant 0 : i32
    %20 = vector.broadcast %c0_i32_4 : i32 to vector<128x1xi32>
    %21 = arith.cmpi sge, %19, %20 : vector<128x1xi32>
    %c-4_i32_5 = arith.constant -4 : i32
    %22 = vector.broadcast %c-4_i32_5 : i32 to vector<128x1xi32>
    %23 = arith.addi %17, %22 : vector<128x1xi32>
    %c32_i32_6 = arith.constant 32 : i32
    %24 = vector.broadcast %c32_i32_6 : i32 to vector<128x1xi32>
    %25 = arith.cmpi slt, %23, %24 : vector<128x1xi32>
    %26 = arith.andi %21, %25 : vector<128x1xi1>
    %c-3_i32 = arith.constant -3 : i32
    %27 = vector.broadcast %c-3_i32 : i32 to vector<128x1xi32>
    %28 = arith.addi %17, %27 : vector<128x1xi32>
    %c0_i32_7 = arith.constant 0 : i32
    %29 = vector.broadcast %c0_i32_7 : i32 to vector<128x1xi32>
    %30 = arith.cmpi sge, %28, %29 : vector<128x1xi32>
    %c-3_i32_8 = arith.constant -3 : i32
    %31 = vector.broadcast %c-3_i32_8 : i32 to vector<128x1xi32>
    %32 = arith.addi %17, %31 : vector<128x1xi32>
    %c32_i32_9 = arith.constant 32 : i32
    %33 = vector.broadcast %c32_i32_9 : i32 to vector<128x1xi32>
    %34 = arith.cmpi slt, %32, %33 : vector<128x1xi32>
    %35 = arith.andi %30, %34 : vector<128x1xi1>
    %c-2_i32 = arith.constant -2 : i32
    %36 = vector.broadcast %c-2_i32 : i32 to vector<128x1xi32>
    %37 = arith.addi %17, %36 : vector<128x1xi32>
    %c0_i32_10 = arith.constant 0 : i32
    %38 = vector.broadcast %c0_i32_10 : i32 to vector<128x1xi32>
    %39 = arith.cmpi sge, %37, %38 : vector<128x1xi32>
    %c-2_i32_11 = arith.constant -2 : i32
    %40 = vector.broadcast %c-2_i32_11 : i32 to vector<128x1xi32>
    %41 = arith.addi %17, %40 : vector<128x1xi32>
    %c32_i32_12 = arith.constant 32 : i32
    %42 = vector.broadcast %c32_i32_12 : i32 to vector<128x1xi32>
    %43 = arith.cmpi slt, %41, %42 : vector<128x1xi32>
    %44 = arith.andi %39, %43 : vector<128x1xi1>
    %c-1_i32 = arith.constant -1 : i32
    %45 = vector.broadcast %c-1_i32 : i32 to vector<128x1xi32>
    %46 = arith.addi %17, %45 : vector<128x1xi32>
    %c0_i32_13 = arith.constant 0 : i32
    %47 = vector.broadcast %c0_i32_13 : i32 to vector<128x1xi32>
    %48 = arith.cmpi sge, %46, %47 : vector<128x1xi32>
    %c-1_i32_14 = arith.constant -1 : i32
    %49 = vector.broadcast %c-1_i32_14 : i32 to vector<128x1xi32>
    %50 = arith.addi %17, %49 : vector<128x1xi32>
    %c32_i32_15 = arith.constant 32 : i32
    %51 = vector.broadcast %c32_i32_15 : i32 to vector<128x1xi32>
    %52 = arith.cmpi slt, %50, %51 : vector<128x1xi32>
    %53 = arith.andi %48, %52 : vector<128x1xi1>
    %c1_i32_16 = arith.constant 1 : i32
    %54 = vector.broadcast %c1_i32_16 : i32 to vector<128x1xi32>
    %55 = arith.addi %17, %54 : vector<128x1xi32>
    %c0_i32_17 = arith.constant 0 : i32
    %56 = vector.broadcast %c0_i32_17 : i32 to vector<128x1xi32>
    %57 = arith.cmpi sge, %55, %56 : vector<128x1xi32>
    %c1_i32_18 = arith.constant 1 : i32
    %58 = vector.broadcast %c1_i32_18 : i32 to vector<128x1xi32>
    %59 = arith.addi %17, %58 : vector<128x1xi32>
    %c32_i32_19 = arith.constant 32 : i32
    %60 = vector.broadcast %c32_i32_19 : i32 to vector<128x1xi32>
    %61 = arith.cmpi slt, %59, %60 : vector<128x1xi32>
    %62 = arith.andi %57, %61 : vector<128x1xi1>
    %c2_i32 = arith.constant 2 : i32
    %63 = vector.broadcast %c2_i32 : i32 to vector<128x1xi32>
    %64 = arith.addi %17, %63 : vector<128x1xi32>
    %c0_i32_20 = arith.constant 0 : i32
    %65 = vector.broadcast %c0_i32_20 : i32 to vector<128x1xi32>
    %66 = arith.cmpi sge, %64, %65 : vector<128x1xi32>
    %c2_i32_21 = arith.constant 2 : i32
    %67 = vector.broadcast %c2_i32_21 : i32 to vector<128x1xi32>
    %68 = arith.addi %17, %67 : vector<128x1xi32>
    %c32_i32_22 = arith.constant 32 : i32
    %69 = vector.broadcast %c32_i32_22 : i32 to vector<128x1xi32>
    %70 = arith.cmpi slt, %68, %69 : vector<128x1xi32>
    %71 = arith.andi %66, %70 : vector<128x1xi1>
    %c3_i32 = arith.constant 3 : i32
    %72 = vector.broadcast %c3_i32 : i32 to vector<128x1xi32>
    %73 = arith.addi %17, %72 : vector<128x1xi32>
    %c0_i32_23 = arith.constant 0 : i32
    %74 = vector.broadcast %c0_i32_23 : i32 to vector<128x1xi32>
    %75 = arith.cmpi sge, %73, %74 : vector<128x1xi32>
    %c3_i32_24 = arith.constant 3 : i32
    %76 = vector.broadcast %c3_i32_24 : i32 to vector<128x1xi32>
    %77 = arith.addi %17, %76 : vector<128x1xi32>
    %c32_i32_25 = arith.constant 32 : i32
    %78 = vector.broadcast %c32_i32_25 : i32 to vector<128x1xi32>
    %79 = arith.cmpi slt, %77, %78 : vector<128x1xi32>
    %80 = arith.andi %75, %79 : vector<128x1xi1>
    %c4_i32 = arith.constant 4 : i32
    %81 = vector.broadcast %c4_i32 : i32 to vector<128x1xi32>
    %82 = arith.addi %17, %81 : vector<128x1xi32>
    %c0_i32_26 = arith.constant 0 : i32
    %83 = vector.broadcast %c0_i32_26 : i32 to vector<128x1xi32>
    %84 = arith.cmpi sge, %82, %83 : vector<128x1xi32>
    %c4_i32_27 = arith.constant 4 : i32
    %85 = vector.broadcast %c4_i32_27 : i32 to vector<128x1xi32>
    %86 = arith.addi %17, %85 : vector<128x1xi32>
    %c32_i32_28 = arith.constant 32 : i32
    %87 = vector.broadcast %c32_i32_28 : i32 to vector<128x1xi32>
    %88 = arith.cmpi slt, %86, %87 : vector<128x1xi32>
    %89 = arith.andi %84, %88 : vector<128x1xi1>
    %c4_i32_29 = arith.constant 4 : i32
    %90 = tpu.dynamic_rotate %0 by %c4_i32_29 dim 0 : vector<128x128xf32>, i32 -> vector<128x128xf32>
    %cst = arith.constant 0.000000e+00 : f32
    %91 = vector.shape_cast %26 : vector<128x1xi1> to vector<128x1xi1>
    %92 = vector.broadcast %91 : vector<128x1xi1> to vector<128x128xi1>
    %93 = vector.broadcast %cst : f32 to vector<128x128xf32>
    %94 = arith.select %92, %90, %93 : vector<128x128xi1>, vector<128x128xf32>
    %95 = arith.truncf %94 : vector<128x128xf32> to vector<128x128xbf16>
    %c3_i32_30 = arith.constant 3 : i32
    %96 = tpu.dynamic_rotate %0 by %c3_i32_30 dim 0 : vector<128x128xf32>, i32 -> vector<128x128xf32>
    %cst_31 = arith.constant 0.000000e+00 : f32
    %97 = vector.shape_cast %35 : vector<128x1xi1> to vector<128x1xi1>
    %98 = vector.broadcast %97 : vector<128x1xi1> to vector<128x128xi1>
    %99 = vector.broadcast %cst_31 : f32 to vector<128x128xf32>
    %100 = arith.select %98, %96, %99 : vector<128x128xi1>, vector<128x128xf32>
    %101 = arith.truncf %100 : vector<128x128xf32> to vector<128x128xbf16>
    %c2_i32_32 = arith.constant 2 : i32
    %102 = tpu.dynamic_rotate %0 by %c2_i32_32 dim 0 : vector<128x128xf32>, i32 -> vector<128x128xf32>
    %cst_33 = arith.constant 0.000000e+00 : f32
    %103 = vector.shape_cast %44 : vector<128x1xi1> to vector<128x1xi1>
    %104 = vector.broadcast %103 : vector<128x1xi1> to vector<128x128xi1>
    %105 = vector.broadcast %cst_33 : f32 to vector<128x128xf32>
    %106 = arith.select %104, %102, %105 : vector<128x128xi1>, vector<128x128xf32>
    %107 = arith.truncf %106 : vector<128x128xf32> to vector<128x128xbf16>
    %c1_i32_34 = arith.constant 1 : i32
    %108 = tpu.dynamic_rotate %0 by %c1_i32_34 dim 0 : vector<128x128xf32>, i32 -> vector<128x128xf32>
    %cst_35 = arith.constant 0.000000e+00 : f32
    %109 = vector.shape_cast %53 : vector<128x1xi1> to vector<128x1xi1>
    %110 = vector.broadcast %109 : vector<128x1xi1> to vector<128x128xi1>
    %111 = vector.broadcast %cst_35 : f32 to vector<128x128xf32>
    %112 = arith.select %110, %108, %111 : vector<128x128xi1>, vector<128x128xf32>
    %113 = arith.truncf %112 : vector<128x128xf32> to vector<128x128xbf16>
    %114 = arith.truncf %0 : vector<128x128xf32> to vector<128x128xbf16>
    %c127_i32 = arith.constant 127 : i32
    %115 = tpu.dynamic_rotate %0 by %c127_i32 dim 0 : vector<128x128xf32>, i32 -> vector<128x128xf32>
    %cst_36 = arith.constant 0.000000e+00 : f32
    %116 = vector.shape_cast %62 : vector<128x1xi1> to vector<128x1xi1>
    %117 = vector.broadcast %116 : vector<128x1xi1> to vector<128x128xi1>
    %118 = vector.broadcast %cst_36 : f32 to vector<128x128xf32>
    %119 = arith.select %117, %115, %118 : vector<128x128xi1>, vector<128x128xf32>
    %120 = arith.truncf %119 : vector<128x128xf32> to vector<128x128xbf16>
    %c126_i32 = arith.constant 126 : i32
    %121 = tpu.dynamic_rotate %0 by %c126_i32 dim 0 : vector<128x128xf32>, i32 -> vector<128x128xf32>
    %cst_37 = arith.constant 0.000000e+00 : f32
    %122 = vector.shape_cast %71 : vector<128x1xi1> to vector<128x1xi1>
    %123 = vector.broadcast %122 : vector<128x1xi1> to vector<128x128xi1>
    %124 = vector.broadcast %cst_37 : f32 to vector<128x128xf32>
    %125 = arith.select %123, %121, %124 : vector<128x128xi1>, vector<128x128xf32>
    %126 = arith.truncf %125 : vector<128x128xf32> to vector<128x128xbf16>
    %c125_i32 = arith.constant 125 : i32
    %127 = tpu.dynamic_rotate %0 by %c125_i32 dim 0 : vector<128x128xf32>, i32 -> vector<128x128xf32>
    %cst_38 = arith.constant 0.000000e+00 : f32
    %128 = vector.shape_cast %80 : vector<128x1xi1> to vector<128x1xi1>
    %129 = vector.broadcast %128 : vector<128x1xi1> to vector<128x128xi1>
    %130 = vector.broadcast %cst_38 : f32 to vector<128x128xf32>
    %131 = arith.select %129, %127, %130 : vector<128x128xi1>, vector<128x128xf32>
    %132 = arith.truncf %131 : vector<128x128xf32> to vector<128x128xbf16>
    %c124_i32 = arith.constant 124 : i32
    %133 = tpu.dynamic_rotate %0 by %c124_i32 dim 0 : vector<128x128xf32>, i32 -> vector<128x128xf32>
    %cst_39 = arith.constant 0.000000e+00 : f32
    %134 = vector.shape_cast %89 : vector<128x1xi1> to vector<128x1xi1>
    %135 = vector.broadcast %134 : vector<128x1xi1> to vector<128x128xi1>
    %136 = vector.broadcast %cst_39 : f32 to vector<128x128xf32>
    %137 = arith.select %135, %133, %136 : vector<128x128xi1>, vector<128x128xf32>
    %138 = arith.truncf %137 : vector<128x128xf32> to vector<128x128xbf16>
    %139 = tpu.concatenate %95, %101, %107, %113, %114, %120, %126, %132, %138 in 1 : vector<128x128xbf16>, vector<128x128xbf16>, vector<128x128xbf16>, vector<128x128xbf16>, vector<128x128xbf16>, vector<128x128xbf16>, vector<128x128xbf16>, vector<128x128xbf16>, vector<128x128xbf16> -> vector<128x1152xbf16>
    %c0_40 = arith.constant 0 : index
    %c0_41 = arith.constant 0 : index
    %140 = vector.load %arg2[%c0_40, %c0_41] : memref<1152x128xbf16, #tpu.memory_space<vmem>>, vector<1152x128xbf16>
    %cst_42 = arith.constant dense<0.000000e+00> : vector<128x128xf32>
    %141 = tpu.matmul %139, %140, %cst_42 {dimension_numbers = #tpu.dot_dimension_numbers<[1], [0], [0], [1], [0, 0, 1, 1], [], []>} : vector<128x1152xbf16>, vector<1152x128xbf16>, vector<128x128xf32> -> vector<128x128xf32>
    %c0_43 = arith.constant 0 : index
    %c0_44 = arith.constant 0 : index
    %142 = vector.load %arg4[%c0_43, %c0_44] : memref<1x128xf32, #tpu.memory_space<vmem>>, vector<1x128xf32>
    %143 = vector.broadcast %142 : vector<1x128xf32> to vector<128x128xf32>
    %144 = arith.mulf %141, %143 : vector<128x128xf32>
    %c0_45 = arith.constant 0 : index
    %c0_46 = arith.constant 0 : index
    %145 = vector.load %arg5[%c0_45, %c0_46] : memref<1x128xf32, #tpu.memory_space<vmem>>, vector<1x128xf32>
    %146 = vector.broadcast %145 : vector<1x128xf32> to vector<128x128xf32>
    %147 = arith.addf %144, %146 : vector<128x128xf32>
    %cst_47 = arith.constant 0.000000e+00 : f32
    %148 = vector.broadcast %cst_47 : f32 to vector<128x128xf32>
    %149 = arith.maximumf %147, %148 : vector<128x128xf32>
    %c4_i32_48 = arith.constant 4 : i32
    %150 = tpu.dynamic_rotate %149 by %c4_i32_48 dim 0 : vector<128x128xf32>, i32 -> vector<128x128xf32>
    %cst_49 = arith.constant 0.000000e+00 : f32
    %151 = vector.shape_cast %26 : vector<128x1xi1> to vector<128x1xi1>
    %152 = vector.broadcast %151 : vector<128x1xi1> to vector<128x128xi1>
    %153 = vector.broadcast %cst_49 : f32 to vector<128x128xf32>
    %154 = arith.select %152, %150, %153 : vector<128x128xi1>, vector<128x128xf32>
    %155 = arith.truncf %154 : vector<128x128xf32> to vector<128x128xbf16>
    %c3_i32_50 = arith.constant 3 : i32
    %156 = tpu.dynamic_rotate %149 by %c3_i32_50 dim 0 : vector<128x128xf32>, i32 -> vector<128x128xf32>
    %cst_51 = arith.constant 0.000000e+00 : f32
    %157 = vector.shape_cast %35 : vector<128x1xi1> to vector<128x1xi1>
    %158 = vector.broadcast %157 : vector<128x1xi1> to vector<128x128xi1>
    %159 = vector.broadcast %cst_51 : f32 to vector<128x128xf32>
    %160 = arith.select %158, %156, %159 : vector<128x128xi1>, vector<128x128xf32>
    %161 = arith.truncf %160 : vector<128x128xf32> to vector<128x128xbf16>
    %c2_i32_52 = arith.constant 2 : i32
    %162 = tpu.dynamic_rotate %149 by %c2_i32_52 dim 0 : vector<128x128xf32>, i32 -> vector<128x128xf32>
    %cst_53 = arith.constant 0.000000e+00 : f32
    %163 = vector.shape_cast %44 : vector<128x1xi1> to vector<128x1xi1>
    %164 = vector.broadcast %163 : vector<128x1xi1> to vector<128x128xi1>
    %165 = vector.broadcast %cst_53 : f32 to vector<128x128xf32>
    %166 = arith.select %164, %162, %165 : vector<128x128xi1>, vector<128x128xf32>
    %167 = arith.truncf %166 : vector<128x128xf32> to vector<128x128xbf16>
    %c1_i32_54 = arith.constant 1 : i32
    %168 = tpu.dynamic_rotate %149 by %c1_i32_54 dim 0 : vector<128x128xf32>, i32 -> vector<128x128xf32>
    %cst_55 = arith.constant 0.000000e+00 : f32
    %169 = vector.shape_cast %53 : vector<128x1xi1> to vector<128x1xi1>
    %170 = vector.broadcast %169 : vector<128x1xi1> to vector<128x128xi1>
    %171 = vector.broadcast %cst_55 : f32 to vector<128x128xf32>
    %172 = arith.select %170, %168, %171 : vector<128x128xi1>, vector<128x128xf32>
    %173 = arith.truncf %172 : vector<128x128xf32> to vector<128x128xbf16>
    %174 = arith.truncf %149 : vector<128x128xf32> to vector<128x128xbf16>
    %c127_i32_56 = arith.constant 127 : i32
    %175 = tpu.dynamic_rotate %149 by %c127_i32_56 dim 0 : vector<128x128xf32>, i32 -> vector<128x128xf32>
    %cst_57 = arith.constant 0.000000e+00 : f32
    %176 = vector.shape_cast %62 : vector<128x1xi1> to vector<128x1xi1>
    %177 = vector.broadcast %176 : vector<128x1xi1> to vector<128x128xi1>
    %178 = vector.broadcast %cst_57 : f32 to vector<128x128xf32>
    %179 = arith.select %177, %175, %178 : vector<128x128xi1>, vector<128x128xf32>
    %180 = arith.truncf %179 : vector<128x128xf32> to vector<128x128xbf16>
    %c126_i32_58 = arith.constant 126 : i32
    %181 = tpu.dynamic_rotate %149 by %c126_i32_58 dim 0 : vector<128x128xf32>, i32 -> vector<128x128xf32>
    %cst_59 = arith.constant 0.000000e+00 : f32
    %182 = vector.shape_cast %71 : vector<128x1xi1> to vector<128x1xi1>
    %183 = vector.broadcast %182 : vector<128x1xi1> to vector<128x128xi1>
    %184 = vector.broadcast %cst_59 : f32 to vector<128x128xf32>
    %185 = arith.select %183, %181, %184 : vector<128x128xi1>, vector<128x128xf32>
    %186 = arith.truncf %185 : vector<128x128xf32> to vector<128x128xbf16>
    %c125_i32_60 = arith.constant 125 : i32
    %187 = tpu.dynamic_rotate %149 by %c125_i32_60 dim 0 : vector<128x128xf32>, i32 -> vector<128x128xf32>
    %cst_61 = arith.constant 0.000000e+00 : f32
    %188 = vector.shape_cast %80 : vector<128x1xi1> to vector<128x1xi1>
    %189 = vector.broadcast %188 : vector<128x1xi1> to vector<128x128xi1>
    %190 = vector.broadcast %cst_61 : f32 to vector<128x128xf32>
    %191 = arith.select %189, %187, %190 : vector<128x128xi1>, vector<128x128xf32>
    %192 = arith.truncf %191 : vector<128x128xf32> to vector<128x128xbf16>
    %c124_i32_62 = arith.constant 124 : i32
    %193 = tpu.dynamic_rotate %149 by %c124_i32_62 dim 0 : vector<128x128xf32>, i32 -> vector<128x128xf32>
    %cst_63 = arith.constant 0.000000e+00 : f32
    %194 = vector.shape_cast %89 : vector<128x1xi1> to vector<128x1xi1>
    %195 = vector.broadcast %194 : vector<128x1xi1> to vector<128x128xi1>
    %196 = vector.broadcast %cst_63 : f32 to vector<128x128xf32>
    %197 = arith.select %195, %193, %196 : vector<128x128xi1>, vector<128x128xf32>
    %198 = arith.truncf %197 : vector<128x128xf32> to vector<128x128xbf16>
    %199 = tpu.concatenate %155, %161, %167, %173, %174, %180, %186, %192, %198 in 1 : vector<128x128xbf16>, vector<128x128xbf16>, vector<128x128xbf16>, vector<128x128xbf16>, vector<128x128xbf16>, vector<128x128xbf16>, vector<128x128xbf16>, vector<128x128xbf16>, vector<128x128xbf16> -> vector<128x1152xbf16>
    %c0_64 = arith.constant 0 : index
    %c0_65 = arith.constant 0 : index
    %200 = vector.load %arg3[%c0_64, %c0_65] : memref<1152x128xbf16, #tpu.memory_space<vmem>>, vector<1152x128xbf16>
    %cst_66 = arith.constant dense<0.000000e+00> : vector<128x128xf32>
    %201 = tpu.matmul %199, %200, %cst_66 {dimension_numbers = #tpu.dot_dimension_numbers<[1], [0], [0], [1], [0, 0, 1, 1], [], []>} : vector<128x1152xbf16>, vector<1152x128xbf16>, vector<128x128xf32> -> vector<128x128xf32>
    %c0_67 = arith.constant 0 : index
    %c0_68 = arith.constant 0 : index
    %202 = vector.load %arg6[%c0_67, %c0_68] : memref<1x128xf32, #tpu.memory_space<vmem>>, vector<1x128xf32>
    %203 = vector.broadcast %202 : vector<1x128xf32> to vector<128x128xf32>
    %204 = arith.mulf %201, %203 : vector<128x128xf32>
    %c0_69 = arith.constant 0 : index
    %c0_70 = arith.constant 0 : index
    %205 = vector.load %arg7[%c0_69, %c0_70] : memref<1x128xf32, #tpu.memory_space<vmem>>, vector<1x128xf32>
    %206 = vector.broadcast %205 : vector<1x128xf32> to vector<128x128xf32>
    %207 = arith.addf %204, %206 : vector<128x128xf32>
    %208 = arith.addf %0, %207 : vector<128x128xf32>
    %cst_71 = arith.constant 0.000000e+00 : f32
    %209 = vector.broadcast %cst_71 : f32 to vector<128x128xf32>
    %210 = arith.maximumf %208, %209 : vector<128x128xf32>
    %c0_72 = arith.constant 0 : index
    %c0_73 = arith.constant 0 : index
    %211 = vector.load %arg8[%c0_72, %c0_73] : memref<128x128xf32, #tpu.memory_space<vmem>>, vector<128x128xf32>
    tpu.vector_store %arg8[%c0_72, %c0_73], %210 {strides = array<i32>} : memref<128x128xf32, #tpu.memory_space<vmem>>, vector<128x128xf32>,
    return
  }
  func.func @transform_0(%arg0: i32) -> (i32, i32) {
    %c0_i32 = arith.constant 0 : i32
    %c0_i32_0 = arith.constant 0 : i32
    return %arg0, %c0_i32 : i32, i32
  }
  func.func @transform_1(%arg0: i32) -> (i32, i32) {
    %c0_i32 = arith.constant 0 : i32
    %c0_i32_0 = arith.constant 0 : i32
    %c0_i32_1 = arith.constant 0 : i32
    return %c0_i32, %c0_i32_0 : i32, i32
  }
  func.func @transform_2(%arg0: i32) -> (i32, i32) {
    %c0_i32 = arith.constant 0 : i32
    %c0_i32_0 = arith.constant 0 : i32
    %c0_i32_1 = arith.constant 0 : i32
    return %c0_i32, %c0_i32_0 : i32, i32
  }
  func.func @transform_3(%arg0: i32) -> (i32, i32) {
    %c0_i32 = arith.constant 0 : i32
    %c0_i32_0 = arith.constant 0 : i32
    %c0_i32_1 = arith.constant 0 : i32
    return %c0_i32, %c0_i32_0 : i32, i32
  }
  func.func @transform_4(%arg0: i32) -> (i32, i32) {
    %c0_i32 = arith.constant 0 : i32
    %c0_i32_0 = arith.constant 0 : i32
    %c0_i32_1 = arith.constant 0 : i32
    return %c0_i32, %c0_i32_0 : i32, i32
  }
  func.func @transform_5(%arg0: i32) -> (i32, i32) {
    %c0_i32 = arith.constant 0 : i32
    %c0_i32_0 = arith.constant 0 : i32
    %c0_i32_1 = arith.constant 0 : i32
    return %c0_i32, %c0_i32_0 : i32, i32
  }
  func.func @transform_6(%arg0: i32) -> (i32, i32) {
    %c0_i32 = arith.constant 0 : i32
    %c0_i32_0 = arith.constant 0 : i32
    %c0_i32_1 = arith.constant 0 : i32
    return %c0_i32, %c0_i32_0 : i32, i32
  }
  func.func @transform_7(%arg0: i32) -> (i32, i32) {
    %c0_i32 = arith.constant 0 : i32
    %c0_i32_0 = arith.constant 0 : i32
    return %arg0, %c0_i32 : i32, i32
  }
}

</mosaic_0001>

<bundles_post_ra>
// kernel: tpu_custom_call.1
= control target key start
LH: loop header
LB: loop body
LE: loop exit
PB: predicated region body
PF: predicated region fallthrough
CT: control target
= control target key end

     0   :  { %12 = vsyncpa [#allocation3], 0  ;;  %s8615_s0 = inlined_call_operand.hbm [shape: f32[256,128], index: 0, kind: input, shape index: {}]   ;;  %s8616_s1 = inlined_call_operand.hbm [shape: bf16[1152,128], index: 1, kind: input, shape index: {}]   ;;  %s8617_s2 = inlined_call_operand.hbm [shape: bf16[1152,128], index: 2, kind: input, shape index: {}]   ;;  %s8618_s3 = inlined_call_operand.vmem [shape: f32[1,128], index: 3, kind: input, shape index: {}]   ;;  %s8619_s4 = inlined_call_operand.vmem [shape: f32[1,128], index: 4, kind: input, shape index: {}]   ;;  %s8620_s5 = inlined_call_operand.vmem [shape: f32[1,128], index: 5, kind: input, shape index: {}]   ;;  %s8621_s6 = inlined_call_operand.vmem [shape: f32[1,128], index: 6, kind: input, shape index: {}]   ;;  %s8622_s7 = inlined_call_operand.hbm [shape: f32[256,128], index: 7, kind: output, shape index: {}]  }
   0x1   :  { %14 = vsyncpa [#allocation3 + $0x1], 0 }
   0x2   :  { %15 = vsyncpa [#allocation6], 0 }
   0x3   :  { %16 = vsyncpa [#allocation4], 0 }
   0x4   :  { %18 = vsyncpa [#allocation4 + $0x1], 0  ;;  %s5980_s24 = smov 0   ;;  %s5982_s25 = smov 0  }
   0x5   :  { %s5984_s26 = smov 0   ;;  %s5986_s27 = smov 0  }
   0x6 LB: > { %s6001_s28 = sadd.s32 4294967295, %s5927_s27   ;;  %s4561_s29 = sadd.s32 4294967294, %s5927_s27   ;;  %s5927_s27 = sphi %s5986_s27, %s9273_s27   ;;  %s5923_s26 = sphi %s5984_s26, %s9272_s26   ;;  %s5919_s25 = sphi %s5982_s25, %s9271_s25   ;;  %s5915_s24 = sphi %s5980_s24, %s9270_s24  }
   0x7   : > { %p44_p0 = scmp.ne.s32.totalorder %s5919_s25, %s5915_s24  ;;  %p8623_p1 = scmp.eq.s32.totalorder %s6001_s28, 0 }
   0x8   : > { %p200_p3 = scmp.eq.s32.totalorder %s4561_s29, 1  ;;  %p4562_p5 = scmp.ge.s32.totalorder %s5927_s27, 1 }
   0x9   : > { %p6010_p4 = por %p8623_p1, %p44_p0  ;;  %p207_p7 = scmp.lt.s32.totalorder %s5927_s27, 3 }
   0xa   : > { %p6015_p6 = por %p200_p3, %p44_p0  ;;  %s5929_s10 = smov [#allocation5]  }
   0xb   : > { %s8738_s30 = scalar_select %p6010_p4, 1, 0 }
   0xc   : > { %s8739_s8 = scalar_select %p6015_p6, 1, 0 }
   0xd   : > { %p6020_p8 = pnand %p4562_p5, %p207_p7  ;;  %s219_s11 = sshll.u32 %s5929_s10, 4  ;;  %s6024_s11 = int_to_ptr.vmem [resolvable:$true] %s219_s11 }
   0xe   : > { %s5930_s13 = smov [#allocation7]   ;;  %s5771_s17 = scalar_lea.hbm %s8616_s1, 9216 }
   0xf   : > { %p5541_p9 = pneg %p6020_p8  ;;  %s232_s14 = sshll.u32 %s5930_s13, 4  ;;  %s6035_s14 = int_to_ptr.vmem [resolvable:$true] %s232_s14 }
  0x10   : > { %p5772_p12 = scmp.ne.s32.totalorder %s8616_s1, %s5771_s17  ;;  %p5778_p5 = scmp.lt.u32.totalorder %s5771_s17, %s8616_s1 }
  0x11   : > { %p6031_p11 = pnand %p5541_p9, %p8623_p1 }
  0x13   : > { %p5773_p13 = pneg %p6031_p11 }
  0x15   : > { %p5774_p0 = pnand %p5773_p13, %p5772_p12 }
  0x17   : > { %p5775_p3 = pneg %p5774_p0 }
  0x19   : > { %p5780_p7 = pnand %p5778_p5, %p5775_p3 }
  0x1b   : > { %5783 = shalt.err (!%p5780_p7)
}
  0x1c   : > { %s5784_s22 = scalar_lea.vmem %s6024_s11, 9216  ;;  %p5792_p2 = scmp.lt.s32.totalorder %s6024_s11, %s6024_s11 }
  0x1d   : > { %p5785_p9 = scmp.ne.s32.totalorder %s6024_s11, %s5784_s22  ;;  %p5793_p12 = scmp.lt.s32.totalorder %s5784_s22, %s5784_s22 }
  0x1f   : > { %p5787_p10 = pnand %p5785_p9, %p5773_p13  ;;  %p5794_p0 = por %p5793_p12, %p5792_p2 }
  0x21   : > { %p5788_p1 = pneg %p5787_p10 }
  0x23   : > { %p5795_p6 = pnand %p5794_p0, %p5788_p1 }
  0x25   : > { %5798 = shalt.err (!%p5795_p6)
}
  0x26   : > { %s5931_s23 = smov 64   ;;  %s5932_s29 = smov 4  }
  0x27   : > { %5544 = dma.hbm_to_vmem [thread:$0]  (!%p6031_p11), %s8616_s1, 9216, %s6024_s11, [#allocation6], %s5931_s23, %s5931_s23, %s5932_s29  }
  0x28   : > { %s5799_s17 = scalar_lea.hbm %s8617_s2, 9216 }
  0x29   : > { %p5800_p2 = scmp.ne.s32.totalorder %s8617_s2, %s5799_s17  ;;  %p5806_p10 = scmp.lt.u32.totalorder %s5799_s17, %s8617_s2 }
  0x2b   : > { %p5802_p1 = pnand %p5800_p2, %p5773_p13 }
  0x2d   : > { %p5803_p6 = pneg %p5802_p1 }
  0x2f   : > { %p5808_p3 = pnand %p5806_p10, %p5803_p6 }
  0x31   : > { %5811 = shalt.err (!%p5808_p3)
}
  0x32   : > { %s5812_s11 = scalar_lea.vmem %s6035_s14, 9216  ;;  %p5820_p12 = scmp.lt.s32.totalorder %s6035_s14, %s6035_s14 }
  0x33   : > { %p5813_p5 = scmp.ne.s32.totalorder %s6035_s14, %s5812_s11  ;;  %p5821_p0 = scmp.lt.s32.totalorder %s5812_s11, %s5812_s11 }
  0x35   : > { %p5815_p7 = pnand %p5813_p5, %p5773_p13  ;;  %p5822_p2 = por %p5821_p0, %p5820_p12 }
  0x37   : > { %p5816_p9 = pneg %p5815_p7 }
  0x39   : > { %p5823_p1 = pnand %p5822_p2, %p5816_p9 }
  0x3b   : > { %5826 = shalt.err (!%p5823_p1)
}
  0x3c   : > { %5547 = dma.hbm_to_vmem [thread:$0]  (!%p6031_p11), %s8617_s2, 9216, %s6035_s14, [#allocation6], %s5931_s23, %s5931_s23, %s5932_s29  }
  0x3d   : > { %s6090_s13 = sadd.s32 1, %s5927_s27   ;;  %s31_s12 = sadd.s32 1, %s5923_s26 }
  0x3e   : > { %s28_s15 = ssub.s32 %s5927_s27, %s6090_s13  ;;  %p38_p13 = scmp.ne.s32.totalorder %s5923_s26, %s5919_s25 }
  0x3f   : > { %p29_p6 = scmp.eq.s32.totalorder %s28_s15, 0  ;;  %p39_p10 = scmp.eq.s32.totalorder %s5927_s27, 0 }
  0x40   : > { %p8742_p3 = scmp.eq.s32.totalorder %s6001_s28, 1  ;;  %p5558_p7 = scmp.lt.s32.totalorder %s5927_s27, 2 }
  0x41   : > { %s6106_s17 = scalar_select %p29_p6, %s5923_s26, %s31_s12  }
  0x42   : > { %p6100_p5 = por %p8742_p3, %p38_p13  ;;  %p40_p9 = por %p39_p10, %p38_p13 }
  0x43   : > { %s258_s18 = sand.u32 1, %s5923_s26   ;;  %s4919_s14 = sshll.u32 %s5927_s27, 11 }
  0x44   : > { %s8743_s16 = scalar_select %p6100_p5, 1, 0 }
  0x45   : > { %s4566_s19 = sshll.u32 %s258_s18, 7  ;;  %s6113_s20 = scalar_lea.hbm %s8615_s0, %s4919_s14 }
  0x46   : > { %s262_s21 = scalar_lea.vmem [#allocation2], %s4566_s19  ;;  %p6117_p11 = pnand %p5558_p7, %p40_p9 }
  0x47   : > { %s269_s11 = sshll.u32 %s262_s21, 4  ;;  %s6121_s10 = scalar_lea.sflag [#allocation3], %s258_s18  ;;  %s6115_s11 = int_to_ptr.vmem [resolvable:$true] %s269_s11 }
  0x48   : > { %s5827_s12 = scalar_lea.hbm %s6113_s20, 2048  ;;  %p5829_p0 = pneg %p6117_p11 }
  0x49   : > { %p5828_p12 = scmp.ne.s32.totalorder %s6113_s20, %s5827_s12  ;;  %s5832_s14 = scalar_lea.hbm %s8615_s0, 4096 }
  0x4a   : > { %p5833_p13 = scmp.lt.u32.totalorder %s6113_s20, %s8615_s0  ;;  %p5834_p6 = scmp.lt.u32.totalorder %s5832_s14, %s5827_s12 }
  0x4b   : > { %p5830_p2 = pnand %p5829_p0, %p5828_p12  ;;  %p5836_p3 = scmp.lt.u32.totalorder %s5827_s12, %s6113_s20 }
  0x4c   : > { %p5835_p10 = por %p5834_p6, %p5833_p13 }
  0x4d   : > { %p5831_p1 = pneg %p5830_p2 }
  0x4e   : > { %p5837_p7 = por %p5836_p3, %p5835_p10 }
  0x50   : > { %p5838_p9 = pnand %p5837_p7, %p5831_p1 }
  0x52   : > { %5841 = shalt.err (!%p5838_p9)
}
  0x53   : > { %s5842_s18 = scalar_lea.vmem %s6115_s11, 2048  ;;  %s5933_s21 = smov [#allocation2]  }
  0x54   : > { %p5843_p12 = scmp.ne.s32.totalorder %s6115_s11, %s5842_s18  ;;  %s5847_s15 = sshll.u32 %s5933_s21, 4  ;;  %s5848_s15 = int_to_ptr.vmem [resolvable:$false] %s5847_s15 }
  0x55   : > { %s5849_s19 = scalar_lea.vmem %s5848_s15, 4096  ;;  %p5850_p4 = scmp.lt.s32.totalorder %s6115_s11, %s5848_s15 }
  0x56   : > { %p5845_p2 = pnand %p5843_p12, %p5829_p0  ;;  %p5851_p13 = scmp.lt.s32.totalorder %s5849_s19, %s5842_s18 }
  0x58   : > { %p5846_p5 = pneg %p5845_p2  ;;  %p5852_p6 = por %p5851_p13, %p5850_p4 }
  0x5a   : > { %p5853_p10 = pnand %p5852_p6, %p5846_p5 }
  0x5c   : > { %5856 = shalt.err (!%p5853_p10)
}
  0x5d   : > { %s5934_s12 = smov 128   ;;  %s5935_s14 = smov 8  }
  0x5e   : > { %5551 = dma.hbm_to_vmem [thread:$0]  (!%p6117_p11), %s6113_s20, 2048, %s6115_s11, %s6121_s10, %s5934_s12, %s5934_s12, %s5935_s14  }
  0x5f   : > { %281 = sbr.rel (%p6020_p8) target bundleno = 932 (0x3a4), region = 48 }
  0x66   : > { %s6152_s23 = sand.u32 1, %s5919_s25   ;;  %p8745_p4 = scmp.ne.s32.totalorder %s8738_s30, 0 }
  0x67   : > { %s4570_s29 = sshll.u32 %s6152_s23, 7  ;;  %s284_s18 = scalar_lea.sflag [#allocation3], %s6152_s23 }
  0x68   : > { %s6158_s21 = scalar_lea.vmem [#allocation2], %s4570_s29 }
  0x69   : > { %5902 = dma.done.wait (%p8745_p4), %s284_s18, 2048  }
  0x6a   : > { %5904 = vsyncadd (%p8745_p4), %s284_s18, 4294965248  ;;  %p8746_p5 = scmp.eq.s32.totalorder %s6001_s28, 0 }
  0x6c   : > { %5906 = dma.done.wait (%p8746_p5), [#allocation6], 18432   ;;  %p8747_p8 = pmov %p8746_p5 }
  0x6d   : > { %v5603_v0 = vld [vmem:[#allocation5 + $0x40] sm:$0xff]   ;;  %v5607_v4 = vld [vmem:[#allocation5 + $0x48] sm:$0xff]   ;;  %v345_v7 = vlaneseq  ;;  %v5611_v9 = vld [vmem:[#allocation5 + $0x50] sm:$0xff]   ;;  %vm8640_vm8 = vmmov 1   ;;  %s8500_s12 = scalar_lea.vmem [#allocation8], %s4570_s29  ;;  %s4920_s14 = sshll.u32 %s6001_s28, 11 }
  0x6e   : > { %5908 = vsyncadd (%p8747_p8), [#allocation6], 4294948864  ;;  %v5604_v1 = vld [vmem:[#allocation5 + $0xc0] sm:$0xff]   ;;  %4921 = vmatprep.subr.bf16.mxu0 %v5603_v0  ;;  %v5608_v5 = vld [vmem:[#allocation5 + $0xc8] sm:$0xff]   ;;  %s4469_s29 = sshll.u32 %s8500_s12, 4  ;;  %s8566_s9 = scalar_lea.hbm %s8622_s7, %s4920_s14  ;;  %s8568_s29 = int_to_ptr.vmem [resolvable:$true] %s4469_s29 }
  0x6f   : > { %v5605_v2 = vld [vmem:[#allocation5] sm:$0xff]   ;;  %4985 = vmatprep.subr.bf16.mxu1 %v5604_v1  ;;  %v5609_v6 = vld [vmem:[#allocation5 + $0x8] sm:$0xff]   ;;  %v5612_v10 = vld [vmem:[#allocation5 + $0xd0] sm:$0xff]   ;;  %v6168_v12 = vshrl.u32 %v345_v7, 7  ;;  %s4456_s28 = scalar_lea.sflag [#allocation4], %s6152_s23  ;;  %s5857_s20 = scalar_lea.vmem %s8568_s29, 2048 }
  0x70   : > { %v5606_v3 = vld [vmem:[#allocation5 + $0x80] sm:$0xff]   ;;  %4922 = vmatpush3.bf16.msra.mxu0 %v5605_v2  ;;  %v5610_v8 = vld [vmem:[#allocation5 + $0x88] sm:$0xff]   ;;  %v5613_v11 = vld [vmem:[#allocation5 + $0x10] sm:$0xff]   ;;  %p5858_p11 = scmp.ne.s32.totalorder %s8568_s29, %s5857_s20  ;;  %p9267_p0 = scmp.ne.s32.totalorder %s8743_s16, 0 }
  0x71   : > { %4986 = vmatpush3.bf16.msra.mxu1 %v5606_v3  ;;  %4923 = vmatprep.subr.bf16.mxu0 %v5607_v4  ;;  %v5614_v13 = vld [vmem:[#allocation5 + $0x90] sm:$0xff]   ;;  %v5615_v14 = vld [vmem:[#allocation5 + $0x58] sm:$0xff]   ;;  %v366_v17 = vand.u32 31, %v6168_v12  ;;  %v5619_v19 = vld [vmem:[#allocation5 + $0x60] sm:$0xff]   ;;  %v350_v28 = vadd.s32 32, %v6168_v12  ;;  %vm8630_vm1 = vcmp.lt.s32.totalorder %v6168_v12, 3 }
  0x72   : > { %4987 = vmatprep.subr.bf16.mxu1 %v5608_v5  ;;  %v5616_v15 = vld [vmem:[#allocation5 + $0xd8] sm:$0xff]   ;;  %v5620_v20 = vld [vmem:[#allocation5 + $0xe0] sm:$0xff]   ;;  %v5623_v25 = vld [vmem:[#allocation5 + $0x68] sm:$0xff]   ;;  %v354_v33 = vadd.s32 64, %v6168_v12  ;;  %vm8631_vm2 = vcmp.lt.s32.totalorder %v6168_v12, 4  ;;  %vm8628_vm3 = vcmp.lt.s32.totalorder %v6168_v12, 1  ;;  %p5859_p1 = pnand %p5858_p11, %p9267_p0 }
  0x73   : > { %v5617_v16 = vld [vmem:[#allocation5 + $0x18] sm:$0xff]   ;;  %v5621_v21 = vld [vmem:[#allocation5 + $0x20] sm:$0xff]   ;;  %v618_v22 = vadd.s32 4294967293, %v366_v17  ;;  %v6171_v24 = vadd.s32 4294967295, %v366_v17  ;;  %v6173_v26 = vadd.s32 4294967292, %v366_v17  ;;  %v5624_v27 = vld [vmem:[#allocation5 + $0xe8] sm:$0xff]  }
  0x74   : > { %4924 = vmatpush3.bf16.msra.mxu0 %v5609_v6  ;;  %v5618_v18 = vld [vmem:[#allocation5 + $0x98] sm:$0xff]   ;;  %v5622_v23 = vld [vmem:[#allocation5 + $0xa0] sm:$0xff]   ;;  %v5625_v29 = vld [vmem:[#allocation5 + $0x28] sm:$0xff]   ;;  %v6176_v30 = vadd.s32 4294967294, %v366_v17  ;;  %v394_v35 = vand.u32 31, %v350_v28  ;;  %vm8633_vm6 = vcmp.lt.s32.totalorder %v6168_v12, 2  ;;  %p5860_p3 = pneg %p5859_p1 }
  0x75   : > { %4988 = vmatpush3.bf16.msra.mxu1 %v5610_v8  ;;  %4925 = vmatprep.subr.bf16.mxu0 %v5611_v9  ;;  %v5626_v31 = vld [vmem:[#allocation5 + $0xa8] sm:$0xff]   ;;  %vm634_vm0 = vcmp.ge.s32.totalorder %v618_v22, 0  ;;  %v5627_v32 = vld [vmem:[#allocation5 + $0x70] sm:$0xff]   ;;  %vm762_vm4 = vcmp.ge.s32.totalorder %v6171_v24, 0  ;;  %vm570_vm5 = vcmp.ge.s32.totalorder %v6173_v26, 0  ;;  %v5631_v38 = vld [vmem:[#allocation5 + $0x78] sm:$0xff]  }
  0x76   : > { %4989 = vmatprep.subr.bf16.mxu1 %v5612_v10  ;;  %v5628_v34 = vld [vmem:[#allocation5 + $0xf0] sm:$0xff]   ;;  %vm698_vm7 = vcmp.ge.s32.totalorder %v6176_v30, 0  ;;  %v6186_v39 = vand.u32 31, %v354_v33  ;;  %v5632_v40 = vld [vmem:[#allocation5 + $0xf8] sm:$0xff]   ;;  %v6188_v41 = vadd.s32 4294967293, %v394_v35  ;;  %v6190_v43 = vadd.s32 4294967295, %v394_v35  ;;  %vm6217_vm9 = vmpackc.low %vm8640_vm8, %vm634_vm0 }
  0x77   : > { %v5629_v36 = vld [vmem:[#allocation5 + $0x30] sm:$0xff]   ;;  %v5633_v42 = vld [vmem:[#allocation5 + $0x38] sm:$0xff]   ;;  %v6192_v45 = vadd.s32 4294967292, %v394_v35  ;;  %v6195_v46 = vld [vmem:[%s6158_s21] sm:$0xff]  ;;  %v6203_v49 = vadd.s32 4294967294, %v394_v35  ;;  %v6209_v51 = vadd.s32 96, %v6168_v12 }
  0x78   : > { %4926 = vmatpush3.bf16.msra.mxu0 %v5613_v11  ;;  %v5630_v37 = vld [vmem:[#allocation5 + $0xb0] sm:$0xff]   ;;  %v5634_v44 = vld [vmem:[#allocation5 + $0xb8] sm:$0xff]   ;;  %v6198_v47 = vld [vmem:[%s6158_s21 + $0x8] sm:$0xff]  ;;  %v6206_v50 = vadd.s32 4294967293, %v6186_v39  ;;  %v1155_v52 = vrot.slane %v6195_v46, 5  ;;  %v1333_v55 = vrot.slane %v6195_v46, 7 }
  0x79   : > { %4990 = vmatpush3.bf16.msra.mxu1 %v5614_v13  ;;  %4927 = vmatprep.subr.bf16.mxu0 %v5615_v14  ;;  %v6201_v48 = vld [vmem:[%s6158_s21 + $0x78] sm:$0xff]  ;;  %v1156_v53 = vrot.slane %v6198_v47, 5  ;;  %v1334_v57 = vrot.slane %v6198_v47, 7  ;;  %v1066_v59 = vrot.slane %v6195_v46, 4  ;;  %v1067_v60 = vrot.slane %v6198_v47, 4  ;;  %vm6234_vm10 = vmpackc.low %vm8640_vm8, %vm762_vm4  ;;  %v5635_v2 = vld [vmem:[#allocation5 + $0x140] sm:$0xff]  }
  0x7a   : > { %4991 = vmatprep.subr.bf16.mxu1 %v5616_v15  ;;  %v8629_v54 = vrot.slane %v6201_v48, 5  ;;  %v8627_v58 = vrot.slane %v6201_v48, 7  ;;  %v8635_v0 = vrot.slane %v6201_v48, 4  ;;  %v1244_v1 = vrot.slane %v6195_v46, 6  ;;  %vm6254_vm12 = vmpackc.low %vm8640_vm8, %vm570_vm5  ;;  %v5636_v8 = vld [vmem:[#allocation5 + $0x100] sm:$0xff]   ;;  %v6268_v14 = vld [vmem:[%s6158_s21 + $0x10] sm:$0xff] }
  0x7b   : > { %v1186_v61 = vsel %vm8630_vm1, %v1155_v52, %v1156_v53  ;;  %vm638_vm11 = vcmp.ge.s32.totalorder %v6188_v41, 0  ;;  %v1364_v4 = vsel %vm8628_vm3, %v1333_v55, %v1334_v57  ;;  %v6249_v6 = vsel %vm8631_vm2, %v1066_v59, %v1067_v60  ;;  %v6271_v15 = vld [vmem:[%s6158_s21 + $0x18] sm:$0xff]  ;;  %vm6294_vm14 = vmpackc.low %vm8640_vm8, %vm698_vm7 }
  0x7c   : > { %4928 = vmatpush3.bf16.msra.mxu0 %v5617_v16  ;;  %v1187_v62 = vsel %vm8630_vm1, %v8629_v54, %v1155_v52  ;;  %v1365_v5 = vsel %vm8628_vm3, %v8627_v58, %v1333_v55  ;;  %vm766_vm13 = vcmp.ge.s32.totalorder %v6190_v43, 0  ;;  %v6263_v10 = vsel %vm8631_vm2, %v8635_v0, %v1066_v59  ;;  %v6274_v16 = vld [vmem:[%s6158_s21 + $0x20] sm:$0xff]  ;;  %vm6357_vm4 = vmpackc.low %vm8640_vm8, %vm638_vm11 }
  0x7d   : > { %4992 = vmatpush3.bf16.msra.mxu1 %v5618_v18  ;;  %4929 = vmatprep.subr.bf16.mxu0 %v5619_v19  ;;  %v4647_v3 = vpack.c.bf16 %v1186_v61, %v1187_v62  ;;  %v4671_v9 = vpack.c.bf16 %v1364_v4, %v1365_v5  ;;  %v1245_v11 = vrot.slane %v6198_v47, 6  ;;  %v8626_v13 = vrot.slane %v6201_v48, 6  ;;  %vm6369_vm5 = vmpackc.low %vm8640_vm8, %vm766_vm13 }
  0x7e   : > { %4993 = vmatprep.subr.bf16.mxu1 %v5620_v20  ;;  %v4650_v17 = vpack.c.bf16 %v6249_v6, %v6263_v10  ;;  %v1157_v18 = vrot.slane %v6268_v14, 5  ;;  %v1158_v19 = vrot.slane %v6271_v15, 5  ;;  %v1335_v20 = vrot.slane %v6268_v14, 7 }
  0x7f   : > { %4648 = vmatprep.mubr.msk.bf16.mxu0 %vm6217_vm9, %v4647_v3  ;;  %4672 = vmatprep.mubr.msk.bf16.mxu1 %vm6234_vm10, %v4671_v9  ;;  %v1275_v22 = vsel %vm8633_vm6, %v1244_v1, %v1245_v11  ;;  %v1068_v26 = vrot.slane %v6268_v14, 4  ;;  %v1069_v35 = vrot.slane %v6271_v15, 4  ;;  %vm574_vm15 = vcmp.ge.s32.totalorder %v6192_v45, 0  ;;  %v5640_v9 = vld [vmem:[#allocation5 + $0x110] sm:$0xff]  }
  0x80   : > { %4930 = vmatpush3.bf16.msra.mxu0 %v5621_v21  ;;  %v5637_v21 = vld [vmem:[#allocation5 + $0x148] sm:$0xff]   ;;  %v1184_v28 = vsel %vm8630_vm1, %v1157_v18, %v1158_v19  ;;  %v1363_v30 = vsel %vm8628_vm3, %v1334_v57, %v1335_v20  ;;  %v1159_v55 = vrot.slane %v6274_v16, 5  ;;  %vm702_vm0 = vcmp.ge.s32.totalorder %v6203_v49, 0  ;;  %vm6426_vm11 = vmpackc.low %vm8640_vm8, %vm574_vm15 }
  0x81   : > { %4994 = vmatpush3.bf16.msra.mxu1 %v5622_v23  ;;  %4931 = vmatprep.subr.bf16.mxu0 %v5623_v25  ;;  %v1276_v23 = vsel %vm8633_vm6, %v8626_v13, %v1244_v1  ;;  %v1336_v25 = vrot.slane %v6271_v15, 7  ;;  %v6344_v1 = vld [vmem:[%s6158_s21 + $0x30] sm:$0xff]  ;;  %v8758_v41 = vmov 0  ;;  %vm642_vm7 = vcmp.ge.s32.totalorder %v6206_v50, 0  ;;  %vm6447_vm13 = vmpackc.low %vm8640_vm8, %vm702_vm0 }
  0x82   : > { %4995 = vmatprep.subr.bf16.mxu1 %v5624_v27  ;;  %v4674_v27 = vpack.c.bf16 %v1275_v22, %v1276_v23  ;;  %v1183_v5 = vsel %vm8630_vm1, %v1158_v19, %v1159_v55  ;;  %v8759_v41 = vsel %vm6369_vm5, 4294967295, %v8758_v41  ;;  %v1161_v23 = vrot.slane %v6344_v1, 5  ;;  %vm6516_vm0 = vmpackc.low %vm8640_vm8, %vm642_vm7 }
  0x83   : > { %8760 = vst [vmem:[#allocation12_spill] sm:$0xff] %v8759_v41  ;;  %v1339_v43 = vrot.slane %v6344_v1, 7 }
  0x84   : > { %4932 = vmatpush3.bf16.msra.mxu0 %v5625_v29  ;;  %v1185_v29 = vsel %vm8630_vm1, %v1156_v53, %v1157_v18  ;;  %v6330_v53 = vsel %vm8631_vm2, %v1068_v26, %v1069_v35 }
  0x85   : > { %4996 = vmatpush3.bf16.msra.mxu1 %v5626_v31  ;;  %4933 = vmatprep.subr.bf16.mxu0 %v5627_v32  ;;  %v5638_v31 = vld [vmem:[#allocation5 + $0x108] sm:$0xff]   ;;  %v1237_v33 = vpack.c.bf16 %v1184_v28, %v1185_v29  ;;  %v5641_v28 = vld [vmem:[#allocation5 + $0x158] sm:$0xff]   ;;  %v5643_v29 = vld [vmem:[#allocation5 + $0x1c0] sm:$0xff]  }
  0x86   : > { %4997 = vmatprep.subr.bf16.mxu1 %v5628_v34  ;;  %v6309_v32 = vld [vmem:[%s6158_s21 + $0x28] sm:$0xff]  ;;  %v1362_v34 = vsel %vm8628_vm3, %v1335_v20, %v1336_v25 }
  0x87   : > { %v1160_v57 = vrot.slane %v6309_v32, 5  ;;  %v1338_v18 = vrot.slane %v6309_v32, 7  ;;  %v1071_v20 = vrot.slane %v6309_v32, 4  ;;  %v1249_v22 = vrot.slane %v6309_v32, 6 }
  0x88   : > { %4934 = vmatpush3.bf16.msra.mxu0 %v5629_v36  ;;  %v1070_v36 = vrot.slane %v6274_v16, 4 }
  0x89   : > { %4998 = vmatpush3.bf16.msra.mxu1 %v5630_v37  ;;  %4935 = vmatprep.subr.bf16.mxu0 %v5631_v38  ;;  %v1415_v37 = vpack.c.bf16 %v1362_v34, %v1363_v30  ;;  %v6319_v38 = vsel %vm8631_vm2, %v1067_v60, %v1068_v26  ;;  %v1182_v4 = vsel %vm8630_vm1, %v1159_v55, %v1160_v57  ;;  %v5642_v34 = vld [vmem:[#allocation5 + $0x118] sm:$0xff]  }
  0x8a   : > { %4999 = vmatprep.subr.bf16.mxu1 %v5632_v40  ;;  %v1246_v40 = vrot.slane %v6268_v14, 6  ;;  %v6326_v52 = vsel %vm8631_vm2, %v1069_v35, %v1070_v36  ;;  %v1148_v59 = vpack.c.bf16 %v6330_v53, %v6319_v38  ;;  %v5644_v35 = vld [vmem:[#allocation5 + $0x180] sm:$0xff]   ;;  %v1181_v55 = vsel %vm8630_vm1, %v1160_v57, %v1161_v23 }
  0x8c   : > { %4936 = vmatpush3.bf16.msra.mxu0 %v5633_v42  ;;  %v1247_v42 = vrot.slane %v6271_v15, 6  ;;  %v1274_v62 = vsel %vm8633_vm6, %v1245_v11, %v1246_v40 }
  0x8d   : > { %5000 = vmatpush3.bf16.msra.mxu1 %v5634_v44  ;;  %5049 = vmatprep.subr.bf16.mxu0 %v5635_v2  ;;  %v5639_v44 = vld [vmem:[#allocation5 + $0x150] sm:$0xff]   ;;  %v6347_v2 = vld [vmem:[%s6158_s21 + $0x38] sm:$0xff] }
  0x8e   : > { %v1273_v61 = vsel %vm8633_vm6, %v1246_v40, %v1247_v42  ;;  %v1162_v26 = vrot.slane %v6347_v2, 5  ;;  %5113 = vmatprep.subr.bf16.mxu1 %v5643_v29  ;;  %v8764_v29 = vmov 0 }
  0x8f   : > { %4651 = vmatmul.mubr.msk.bf16.vlgmr.msra.gmra.mrb[0].mxu0 %vm6254_vm12, %v4650_v17  ;;  %v1326_v3 = vpack.c.bf16 %v1273_v61, %v1274_v62  ;;  %v4653_v17 = vpack.c.bf16 %v1182_v4, %v1183_v5  ;;  %v1073_v61 = vrot.slane %v6347_v2, 4  ;;  %v6412_v62 = vld [vmem:[%s6158_s21 + $0x48] sm:$0xff]  ;;  %v1359_v4 = vsel %vm8628_vm3, %v1338_v18, %v1339_v43 }
  0x90   : > { %5050 = vmatpush3.bf16.msra.mxu0 %v5636_v8  ;;  %4675 = vmatmul.mubr.msk.bf16.vlgmr.msra.gmra.mrb[0].mxu1 %vm6294_vm14, %v4674_v27  ;;  %v1337_v8 = vrot.slane %v6274_v16, 7  ;;  %v6377_v27 = vld [vmem:[%s6158_s21 + $0x40] sm:$0xff]  ;;  %v8765_v29 = vsel %vm6447_vm13, 4294967295, %v8764_v29 }
  0x91   : > { %5051 = vmatprep.subr.bf16.mxu0 %v5637_v21  ;;  %2369 = vmatprep.mubr.bf16.mxu0 %v1237_v33  ;;  %v1248_v21 = vrot.slane %v6274_v16, 6  ;;  %v1340_v33 = vrot.slane %v6347_v2, 7  ;;  %v1074_v5 = vrot.slane %v6377_v27, 4  ;;  %8766 = vst [vmem:[#allocation14_spill] sm:$0xff] %v8765_v29  ;;  %v1341_v49 = vrot.slane %v6377_v27, 7  ;;  %v6661_v29 = vld [vmem:[#allocation5 + $0x200] sm:$0xff]  }
  0x92   : > { %2466 = vmatprep.mubr.bf16.mxu1 %v1415_v37  ;;  %v1361_v19 = vsel %vm8628_vm3, %v1336_v25, %v1337_v8  ;;  %v1360_v25 = vsel %vm8628_vm3, %v1337_v8, %v1338_v18  ;;  %v6392_v37 = vadd.s32 4294967295, %v6186_v39  ;;  %v5646_v8 = vld [vmem:[#allocation5 + $0x120] sm:$0xff]   ;;  %5114 = vmatpush3.bf16.msra.mxu1 %v5644_v35  ;;  %v6455_v35 = vadd.s32 4294967292, %v6186_v39 }
  0x93   : > { %v4677_v30 = vpack.c.bf16 %v1360_v25, %v1361_v19  ;;  %v1271_v40 = vsel %vm8633_vm6, %v1248_v21, %v1249_v22  ;;  %v1358_v57 = vsel %vm8628_vm3, %v1339_v43, %v1340_v33  ;;  %v6436_v18 = vsel %vm8631_vm2, %v1073_v61, %v1074_v5 }
  0x94   : > { %5052 = vmatpush3.bf16.msra.mxu0 %v5638_v31  ;;  %v6388_v31 = vsel %vm8631_vm2, %v1070_v36, %v1071_v20  ;;  %v1180_v36 = vsel %vm8630_vm1, %v1161_v23, %v1162_v26  ;;  %v1250_v23 = vrot.slane %v6344_v1, 6  ;;  %v1163_v25 = vrot.slane %v6377_v27, 5 }
  0x95   : > { %5053 = vmatprep.subr.bf16.mxu0 %v5639_v44  ;;  %v1272_v44 = vsel %vm8633_vm6, %v1247_v42, %v1248_v21  ;;  %v5645_v42 = vld [vmem:[#allocation5 + $0x160] sm:$0xff]   ;;  %v1239_v19 = vpack.c.bf16 %v1180_v36, %v1181_v55  ;;  %v1164_v43 = vrot.slane %v6412_v62, 5  ;;  %vm770_vm15 = vcmp.ge.s32.totalorder %v6392_v37, 0  ;;  %v6462_v36 = vld [vmem:[%s6158_s21 + $0x50] sm:$0xff]  ;;  %v5649_v55 = vld [vmem:[#allocation5 + $0x168] sm:$0xff]  }
  0x96   : > { %v4680_v21 = vpack.c.bf16 %v1271_v40, %v1272_v44  ;;  %v5648_v40 = vld [vmem:[#allocation5 + $0x188] sm:$0xff]   ;;  %v1342_v44 = vrot.slane %v6412_v62, 7  ;;  %v1076_v13 = vrot.slane %v6462_v36, 4  ;;  %v1165_v50 = vrot.slane %v6462_v36, 5 }
  0x97   : > { %2370 = vmatmul.mubr.bf16.gmra.mrb[4].mxu0 %v1148_v59  ;;  %v1072_v59 = vrot.slane %v6344_v1, 4  ;;  %vm578_vm7 = vcmp.ge.s32.totalorder %v6455_v35, 0  ;;  %v5658_v35 = vld [vmem:[#allocation5 + $0x1a0] sm:$0xff]  }
  0x98   : > { %4654 = vmatprep.mubr.msk.bf16.mxu0 %vm6357_vm4, %v4653_v17  ;;  %5054 = vmatpush3.bf16.msra.mxu0 %v5640_v9  ;;  %v5647_v9 = vld [vmem:[#allocation5 + $0x1c8] sm:$0xff]   ;;  %v8761_v17 = vmov 0 }
  0x99   : > { %2467 = vmatmul.mubr.bf16.gmra.mrb[4].mxu1 %v1326_v3  ;;  %5055 = vmatprep.subr.bf16.mxu0 %v5641_v28  ;;  %v4656_v3 = vpack.c.bf16 %v6388_v31, %v6326_v52  ;;  %v8762_v17 = vsel %vm6426_vm11, 4294967295, %v8761_v17  ;;  %v1251_v28 = vrot.slane %v6347_v2, 6  ;;  %v6440_v45 = vsel %vm8631_vm2, %v1072_v59, %v1073_v61 }
  0x9a   : > { %4678 = vmatprep.mubr.msk.bf16.mxu1 %vm6369_vm5, %v4677_v30  ;;  %8763 = vst [vmem:[#allocation13_spill] sm:$0xff] %v8762_v17  ;;  %v1417_v30 = vpack.c.bf16 %v1358_v57, %v1359_v4  ;;  %5115 = vmatprep.subr.bf16.mxu1 %v5647_v9  ;;  %v6468_v61 = vsel %vm8631_vm2, %v1071_v20, %v1072_v59  ;;  %v6478_v57 = vld [vmem:[%s6158_s21 + $0x58] sm:$0xff]  ;;  %v6481_v4 = vld [vmem:[%s6158_s21 + $0x60] sm:$0xff]  ;;  %v6484_v9 = vand.u32 31, %v6209_v51  ;;  %v8636_v51 = vrot.slane %v6412_v62, 4 }
  0x9b   : > { %v1270_v20 = vsel %vm8633_vm6, %v1249_v22, %v1250_v23  ;;  %v1179_v59 = vsel %vm8630_vm1, %v1162_v26, %v1163_v25  ;;  %v1150_v22 = vpack.c.bf16 %v6440_v45, %v6468_v61  ;;  %v1357_v26 = vsel %vm8628_vm3, %v1340_v33, %v1341_v49  ;;  %5116 = vmatpush3.bf16.msra.mxu1 %v5648_v40 }
  0x9c   : > { %5056 = vmatpush3.bf16.msra.mxu0 %v5642_v34  ;;  %v8767_v34 = vmov 0  ;;  %v1077_v58 = vrot.slane %v6478_v57, 4  ;;  %v8770_v33 = vmov 0  ;;  %v1166_v40 = vrot.slane %v6478_v57, 5 }
  0x9d   : > { %5057 = vmatprep.subr.bf16.mxu0 %v5645_v42  ;;  %v1269_v42 = vsel %vm8633_vm6, %v1250_v23, %v1251_v28  ;;  %v1356_v23 = vsel %vm8628_vm3, %v1341_v49, %v1342_v44  ;;  %v8768_v34 = vsel %vm6516_vm0, 4294967295, %v8767_v34  ;;  %vm6525_vm3 = vmpackc.low %vm8640_vm8, %vm770_vm15  ;;  %v1343_v49 = vrot.slane %v6462_v36, 7 }
  0x9e   : > { %8769 = vst [vmem:[#allocation15_spill] sm:$0xff] %v8768_v34  ;;  %v8771_v33 = vsel %vm6525_vm3, 4294967295, %v8770_v33  ;;  %v6540_v37 = vsel %vm8631_vm2, %v1074_v5, %v8636_v51  ;;  %v1167_v0 = vrot.slane %v6481_v4, 5  ;;  %v5659_v51 = vld [vmem:[#allocation5 + $0x1e8] sm:$0xff]   ;;  %v1256_v41 = vrot.slane %v6481_v4, 6 }
  0x9f   : > { %4657 = vmatmul.mubr.msk.bf16.gmra.mrb[8].mxu0 %vm6426_vm11, %v4656_v3  ;;  %v6475_v3 = vadd.s32 4294967294, %v6186_v39  ;;  %v1178_v39 = vsel %vm8630_vm1, %v1163_v25, %v1164_v43  ;;  %v8634_v25 = vrot.slane %v6412_v62, 6  ;;  %8772 = vst [vmem:[#allocation16_spill] sm:$0xff] %v8771_v33 }
  0xa0   : > { %2385 = vmatprep.mubr.bf16.mxu0 %v1239_v19  ;;  %5058 = vmatpush3.bf16.msra.mxu0 %v5646_v8  ;;  %v5650_v8 = vld [vmem:[#allocation5 + $0x128] sm:$0xff]   ;;  %v5651_v19 = vld [vmem:[#allocation5 + $0x1d0] sm:$0xff]   ;;  %v4659_v60 = vpack.c.bf16 %v1178_v39, %v1179_v59  ;;  %v4683_v39 = vpack.c.bf16 %v1356_v23, %v1357_v26  ;;  %v8639_v59 = vrot.slane %v6478_v57, 7  ;;  %v6550_v23 = vsel %vm8631_vm2, %v1076_v13, %v1077_v58 }
  0xa1   : > { %4681 = vmatmul.mubr.msk.bf16.gmra.mrb[8].mxu1 %vm6447_vm13, %v4680_v21  ;;  %5059 = vmatprep.subr.bf16.mxu0 %v5649_v55  ;;  %v1252_v21 = vrot.slane %v6377_v27, 6  ;;  %v1328_v55 = vpack.c.bf16 %v1269_v42, %v1270_v20  ;;  %v8632_v42 = vrot.slane %v6481_v4, 4  ;;  %v5653_v20 = vld [vmem:[#allocation5 + $0x1d8] sm:$0xff]   ;;  %vm706_vm15 = vcmp.ge.s32.totalorder %v6475_v3, 0 }
  0xa2   : > { %2482 = vmatprep.mubr.bf16.mxu1 %v1417_v30  ;;  %v5652_v30 = vld [vmem:[#allocation5 + $0x190] sm:$0xff]   ;;  %5117 = vmatprep.subr.bf16.mxu1 %v5651_v19  ;;  %v1176_v26 = vsel %vm8630_vm1, %v1165_v50, %v1166_v40  ;;  %v8781_v3 = vrot.slane %v6412_v62, 4 }
  0xa3   : > { %v5655_v19 = vld [vmem:[#allocation5 + $0x170] sm:$0xff]   ;;  %v6546_v54 = vsel %vm8631_vm2, %v1077_v58, %v8632_v42  ;;  %5118 = vmatpush3.bf16.msra.mxu1 %v5652_v30  ;;  %v1177_v58 = vsel %vm8630_vm1, %v1164_v43, %v1165_v50  ;;  %v4662_v30 = vpack.c.bf16 %v6540_v37, %v6436_v18  ;;  %v1268_v5 = vsel %vm8633_vm6, %v1251_v28, %v1252_v21  ;;  %v6578_v43 = vld [vmem:[%s6158_s21 + $0x68] sm:$0xff]  ;;  %vm6584_vm1 = vmpackc.low %vm8640_vm8, %vm578_vm7 }
  0xa4   : > { %5060 = vmatpush3.bf16.msra.mxu0 %v5650_v8  ;;  %v5654_v8 = vld [vmem:[#allocation5 + $0x198] sm:$0xff]   ;;  %5119 = vmatprep.subr.bf16.mxu1 %v5653_v20  ;;  %v758_v50 = vadd.s32 4294967295, %v6484_v9  ;;  %v5657_v20 = vld [vmem:[#allocation5 + $0x1e0] sm:$0xff]   ;;  %vm8776_vm2 = vcmp.lt.s32.totalorder %v6168_v12, 1  ;;  %v1168_v34 = vrot.slane %v6578_v43, 5 }
  0xa5   : > { %5061 = vmatprep.subr.bf16.mxu0 %v5655_v19  ;;  %v1354_v42 = vsel %vm8776_vm2, %v1343_v49, %v8639_v59  ;;  %v8646_v19 = vrot.slane %v6478_v57, 6  ;;  %v6601_v59 = vld [vmem:[%s6158_s21 + $0x70] sm:$0xff] }
  0xa7   : > { %2386 = vmatmul.mubr.bf16.gmra.mrb[12].mxu0 %v1150_v22  ;;  %v5656_v22 = vld [vmem:[#allocation5 + $0x130] sm:$0xff]   ;;  %5120 = vmatpush3.bf16.msra.mxu1 %v5654_v8  ;;  %v5660_v8 = vld [vmem:[#allocation5 + $0x1a8] sm:$0xff]  }
  0xa8   : > { %4660 = vmatprep.mubr.msk.bf16.mxu0 %vm6516_vm0, %v4659_v60  ;;  %v630_v60 = vadd.s32 4294967293, %v6484_v9  ;;  %5062 = vmatpush3.bf16.msra.mxu0 %v5656_v22  ;;  %v1345_v22 = vrot.slane %v6481_v4, 7 }
  0xa9   : > { %2483 = vmatmul.mubr.bf16.gmra.mrb[12].mxu1 %v1328_v55  ;;  %v1267_v55 = vsel %vm8633_vm6, %v1252_v21, %v8634_v25  ;;  %vm8777_vm6 = vmmov %vm8776_vm2  ;;  %v1254_v21 = vrot.slane %v6462_v36, 6  ;;  %v1241_v25 = vpack.c.bf16 %v1176_v26, %v1177_v58  ;;  %5121 = vmatprep.subr.bf16.mxu1 %v5657_v20  ;;  %v1346_v26 = vrot.slane %v6578_v43, 7  ;;  %v5661_v58 = vld [vmem:[#allocation5 + $0x178] sm:$0xff]  }
  0xaa   : > { %4684 = vmatprep.mubr.msk.bf16.mxu1 %vm6525_vm3, %v4683_v39  ;;  %v8773_v39 = vmov 0  ;;  %v1355_v28 = vsel %vm8777_vm6, %v1342_v44, %v1343_v49  ;;  %v4686_v33 = vpack.c.bf16 %v1267_v55, %v1268_v5  ;;  %vm6606_vm2 = vmpackc.low %vm8640_vm8, %vm706_vm15  ;;  %v8778_v44 = vmov 0  ;;  %5063 = vmatprep.subr.bf16.mxu0 %v5661_v58 }
  0xab   : > { %v8774_v39 = vsel %vm6584_vm1, 4294967295, %v8773_v39  ;;  %v8779_v44 = vsel %vm6606_vm2, 4294967295, %v8778_v44  ;;  %v1419_v49 = vpack.c.bf16 %v1354_v42, %v1355_v28  ;;  %v8645_v5 = vrot.slane %v6601_v59, 4  ;;  %5122 = vmatpush3.bf16.msra.mxu1 %v5658_v35  ;;  %v5662_v42 = vld [vmem:[#allocation5 + $0x138] sm:$0xff]  }
  0xac   : > { %8775 = vst [vmem:[#allocation17_spill] sm:$0xff] %v8774_v39  ;;  %8780 = vst [vmem:[#allocation18_spill] sm:$0xff] %v8779_v44  ;;  %vm8782_vm6 = vcmp.lt.s32.totalorder %v6168_v12, 4  ;;  %vm646_vm7 = vcmp.ge.s32.totalorder %v630_v60, 0  ;;  %vm8783_vm15 = vcmp.lt.s32.totalorder %v6168_v12, 3  ;;  %5123 = vmatprep.subr.bf16.mxu1 %v5659_v51  ;;  %v5663_v60 = vld [vmem:[#allocation5 + $0x1f0] sm:$0xff]   ;;  %5064 = vmatpush3.bf16.msra.mxu0 %v5662_v42 }
  0xad   : > { %v6619_v55 = vsel %vm8782_vm6, %v8781_v3, %v1076_v13  ;;  %v1174_v20 = vsel %vm8783_vm15, %v1167_v0, %v1168_v34  ;;  %vm8784_vm8 = vmmov %vm8783_vm15  ;;  %vm8789_vm15 = vmmov 1   ;;  %v8790_v35 = vmov 0  ;;  %v5664_v51 = vld [vmem:[#allocation5 + $0x1b0] sm:$0xff]   ;;  %v5665_v39 = vld [vmem:[#allocation5 + $0x1f8] sm:$0xff]   ;;  %5465 = vmatprep.subr.bf16.mxu0 %v6661_v29 }
  0xae   : > { %v1175_v28 = vsel %vm8784_vm8, %v1166_v40, %v1167_v0  ;;  %v1152_v40 = vpack.c.bf16 %v6550_v23, %v6619_v55  ;;  %vm8793_vm3 = vcmp.lt.s32.totalorder %v6168_v12, 1  ;;  %v8794_v3 = vrot.slane %v6478_v57, 7 }
  0xaf   : > { %4663 = vmatmul.mubr.msk.bf16.gmra.mrb[16].mxu0 %vm6584_vm1, %v4662_v30  ;;  %v8787_v30 = vrot.slane %v6412_v62, 6  ;;  %vm774_vm1 = vcmp.ge.s32.totalorder %v758_v50, 0  ;;  %5124 = vmatpush3.bf16.msra.mxu1 %v5660_v8  ;;  %v1169_v44 = vrot.slane %v6601_v59, 5  ;;  %v8796_v8 = vmov 0  ;;  %v5666_v50 = vld [vmem:[#allocation5 + $0x1b8] sm:$0xff]  }
  0xb0   : > { %2401 = vmatprep.mubr.bf16.mxu0 %v1241_v25  ;;  %v8785_v25 = vrot.slane %v6201_v48, 4  ;;  %5125 = vmatprep.subr.bf16.mxu1 %v5663_v60  ;;  %v694_v58 = vadd.s32 4294967294, %v6484_v9  ;;  %v1347_v42 = vrot.slane %v6601_v59, 7  ;;  %v8801_v60 = vrot.slane %v6201_v48, 5 }
  0xb1   : > { %4687 = vmatmul.mubr.msk.bf16.gmra.mrb[16].mxu1 %vm6606_vm2, %v4686_v33  ;;  %vm8786_vm2 = vcmp.lt.s32.totalorder %v6168_v12, 2 }
  0xb2   : > { %v6633_v13 = vsel %vm8782_vm6, %v8645_v5, %v8785_v25  ;;  %2498 = vmatprep.mubr.bf16.mxu1 %v1419_v49  ;;  %v1265_v33 = vsel %vm8786_vm2, %v1254_v21, %v8646_v19  ;;  %vm8788_vm8 = vmmov %vm8786_vm2  ;;  %v1352_v49 = vsel %vm8793_vm3, %v1345_v22, %v1346_v26  ;;  %v4665_v25 = vpack.c.bf16 %v1174_v20, %v1175_v28 }
  0xb3   : > { %v1266_v0 = vsel %vm8788_vm8, %v8787_v30, %v1254_v21  ;;  %vm6648_vm6 = vmpackc.low %vm8789_vm15, %vm646_vm7  ;;  %v1079_v30 = vrot.slane %v6578_v43, 4  ;;  %v566_v19 = vadd.s32 4294967292, %v6484_v9  ;;  %v8799_v20 = vrot.slane %v6481_v4, 4  ;;  %5126 = vmatpush3.bf16.msra.mxu1 %v5664_v51 }
  0xb4   : > { %v8791_v35 = vsel %vm6648_vm6, 4294967295, %v8790_v35  ;;  %vm8795_vm2 = vmmov %vm8793_vm3  ;;  %v1330_v5 = vpack.c.bf16 %v1265_v33, %v1266_v0  ;;  %vm8800_vm7 = vcmp.lt.s32.totalorder %v6168_v12, 4  ;;  %vm8802_vm8 = vcmp.lt.s32.totalorder %v6168_v12, 3  ;;  %5127 = vmatprep.subr.bf16.mxu1 %v5665_v39 }
  0xb5   : > { %8792 = vst [vmem:[#allocation19_spill] sm:$0xff] %v8791_v35  ;;  %v1353_v21 = vsel %vm8795_vm2, %v8794_v3, %v1345_v22  ;;  %v1257_v22 = vrot.slane %v6578_v43, 6  ;;  %vm6667_vm3 = vmpackc.low %vm8789_vm15, %vm774_vm1  ;;  %v6680_v28 = vsel %vm8800_vm7, %v8799_v20, %v1079_v30  ;;  %vm582_vm1 = vcmp.ge.s32.totalorder %v566_v19, 0  ;;  %v5670_v35 = vld [vmem:[#allocation5 + $0x218] sm:$0xff]  }
  0xb6   : > { %v4689_v17 = vpack.c.bf16 %v1352_v49, %v1353_v21  ;;  %v8797_v8 = vsel %vm6667_vm3, 4294967295, %v8796_v8  ;;  %v1172_v9 = vsel %vm8802_vm8, %v1169_v44, %v8801_v60  ;;  %vm8803_vm2 = vmmov %vm8802_vm8  ;;  %v8805_v51 = vrot.slane %v6478_v57, 6 }
  0xb7   : > { %2402 = vmatmul.mubr.bf16.gmra.mrb[20].mxu0 %v1152_v40  ;;  %8798 = vst [vmem:[#allocation20_spill] sm:$0xff] %v8797_v8  ;;  %v1173_v33 = vsel %vm8803_vm2, %v1168_v34, %v1169_v44  ;;  %vm710_vm0 = vcmp.ge.s32.totalorder %v694_v58, 0  ;;  %v8807_v40 = vrot.slane %v6201_v48, 7  ;;  %vm8808_vm8 = vcmp.lt.s32.totalorder %v6168_v12, 1  ;;  %5128 = vmatpush3.bf16.msra.mxu1 %v5666_v50 }
  0xb8   : > { %4666 = vmatprep.mubr.msk.bf16.mxu0 %vm6648_vm6, %v4665_v25  ;;  %vm8804_vm6 = vcmp.lt.s32.totalorder %v6168_v12, 2  ;;  %vm8809_vm2 = vmmov %vm8808_vm8  ;;  %v8810_v39 = vmov 0  ;;  %v8655_v49 = vrot.slane %v6195_v46, 1  ;;  %v1431_v3 = vrot.slane %v6198_v47, 1 }
  0xb9   : > { %2499 = vmatmul.mubr.bf16.gmra.mrb[20].mxu1 %v1330_v5  ;;  %v1263_v0 = vsel %vm8804_vm6, %v1256_v41, %v1257_v22  ;;  %vm8806_vm7 = vmmov %vm8804_vm6  ;;  %v4668_v5 = vpack.c.bf16 %v6680_v28, %v6546_v54  ;;  %v1350_v34 = vsel %vm8808_vm8, %v1347_v42, %v8807_v40  ;;  %v1432_v21 = vrot.slane %v6268_v14, 1 }
  0xba   : > { %4690 = vmatprep.mubr.msk.bf16.mxu1 %vm6667_vm3, %v4689_v17  ;;  %v1264_v19 = vsel %vm8806_vm7, %v8805_v51, %v1256_v41  ;;  %v1351_v17 = vsel %vm8809_vm2, %v1346_v26, %v1347_v42  ;;  %vm8660_vm3 = vcmp.lt.s32.totalorder %v6168_v12, 7  ;;  %vm6706_vm6 = vmpackc.low %vm8789_vm15, %vm582_vm1  ;;  %v1243_v41 = vpack.c.bf16 %v1172_v9, %v1173_v33 }
  0xbb   : > { %v8811_v39 = vsel %vm6706_vm6, 4294967295, %v8810_v39  ;;  %v4692_v44 = vpack.c.bf16 %v1263_v0, %v1264_v19  ;;  %vm6714_vm7 = vmpackc.low %vm8789_vm15, %vm710_vm0  ;;  %v8813_v25 = vmov 0  ;;  %v1421_v26 = vpack.c.bf16 %v1350_v34, %v1351_v17 }
  0xbc   : > { %8812 = vst [vmem:[#allocation21_spill] sm:$0xff] %v8811_v39  ;;  %v8814_v25 = vsel %vm6714_vm7, 4294967295, %v8813_v25  ;;  %v1258_v58 = vrot.slane %v6601_v59, 6  ;;  %v349_v42 = vadd.s32 24, %v6168_v12  ;;  %v8658_v20 = vrot.slane %v6195_v46, 3 }
  0xbd   : > { %8815 = vst [vmem:[#allocation22_spill] sm:$0xff] %v8814_v25  ;;  %v1609_v50 = vrot.slane %v6198_v47, 3  ;;  %v1610_v60 = vrot.slane %v6268_v14, 3  ;;  %vm8663_vm1 = vcmp.lt.s32.totalorder %v6168_v12, 5  ;;  %v8816_v9 = vrot.slane %v6601_v59, 4 }
  0xbe   : > { %vm8817_vm0 = vcmp.lt.s32.totalorder %v6168_v12, 4  ;;  %v1460_v0 = vsel %vm8660_vm3, %v1431_v3, %v1432_v21  ;;  %v1461_v51 = vsel %vm8660_vm3, %v8655_v49, %v1431_v3  ;;  %v8818_v19 = vrot.slane %v6201_v48, 6 }
  0xbf   : > { %4669 = vmatmul.mubr.msk.bf16.gmra.mrb[24].mxu0 %vm6706_vm6, %v4668_v5  ;;  %v6730_v33 = vsel %vm8817_vm0, %v1079_v30, %v8816_v9  ;;  %vm8819_vm8 = vcmp.lt.s32.totalorder %v6168_v12, 2  ;;  %v6746_v40 = vand.u32 31, %v349_v42  ;;  %vm8661_vm0 = vcmp.lt.s32.totalorder %v6168_v12, 6 }
  0xc0   : > { %2417 = vmatprep.mubr.bf16.mxu0 %v1243_v41  ;;  %v1261_v5 = vsel %vm8819_vm8, %v1258_v58, %v8818_v19  ;;  %vm8820_vm2 = vmmov %vm8819_vm8  ;;  %v1154_v34 = vpack.c.bf16 %v6633_v13, %v6730_v33  ;;  %v1638_v17 = vsel %vm8663_vm1, %v1609_v50, %v1610_v60  ;;  %v1639_v48 = vsel %vm8663_vm1, %v8658_v20, %v1609_v50 }
  0xc1   : > { %4693 = vmatmul.mubr.msk.bf16.gmra.mrb[24].mxu1 %vm6714_vm7, %v4692_v44  ;;  %v1262_v30 = vsel %vm8820_vm2, %v1257_v22, %v1258_v58  ;;  %v1511_v41 = vpack.c.bf16 %v1460_v0, %v1461_v51  ;;  %v1520_v44 = vrot.slane %v6198_v47, 2  ;;  %v1521_v22 = vrot.slane %v6268_v14, 2 }
  0xc2   : > { %2514 = vmatprep.mubr.bf16.mxu1 %v1421_v26  ;;  %v353_v3 = vadd.s32 56, %v6168_v12  ;;  %v1332_v26 = vpack.c.bf16 %v1261_v5, %v1262_v30  ;;  %v8657_v58 = vrot.slane %v6195_v46, 2  ;;  %v1433_v42 = vrot.slane %v6271_v15, 1 }
  0xc3   : > { %v1434_v9 = vrot.slane %v6274_v16, 1  ;;  %v1689_v19 = vpack.c.bf16 %v1638_v17, %v1639_v48  ;;  %v813_v49 = vadd.s32 1, %v6746_v40  ;;  %v941_v25 = vadd.s32 3, %v6746_v40 }
  0xc4   : > { %v1611_v50 = vrot.slane %v6271_v15, 3  ;;  %v1612_v0 = vrot.slane %v6274_v16, 3  ;;  %v1549_v51 = vsel %vm8661_vm0, %v1520_v44, %v1521_v22  ;;  %v1550_v5 = vsel %vm8661_vm0, %v8657_v58, %v1520_v44 }
  0xc5   : > { %v1458_v30 = vsel %vm8660_vm3, %v1433_v42, %v1434_v9  ;;  %v877_v17 = vadd.s32 2, %v6746_v40  ;;  %v1422_v48 = vpack.c.bf16 %v6198_v47, %v6195_v46  ;;  %vm845_vm8 = vcmp.lt.s32.totalorder %v813_v49, 32 }
  0xc6   : > { %vm973_vm2 = vcmp.lt.s32.totalorder %v941_v25, 32  ;;  %v1636_v44 = vsel %vm8663_vm1, %v1611_v50, %v1612_v0  ;;  %v1637_v58 = vsel %vm8663_vm1, %v1610_v60, %v1611_v50  ;;  %v1522_v20 = vrot.slane %v6271_v15, 2 }
  0xc7   : > { %2418 = vmatmul.mubr.bf16.gmra.mrb[28].mxu0 %v1154_v34  ;;  %v1459_v34 = vsel %vm8660_vm3, %v1432_v21, %v1433_v42  ;;  %v1600_v21 = vpack.c.bf16 %v1549_v51, %v1550_v5  ;;  %v1523_v39 = vrot.slane %v6274_v16, 2  ;;  %v1435_v47 = vrot.slane %v6309_v32, 1  ;;  %vm6790_vm3 = vmpackc.low %vm845_vm8, %vm8789_vm15 }
  0xc8   : > { %2555 = vmatprep.mubr.bf16.mxu0 %v1511_v41  ;;  %v6780_v41 = vand.u32 31, %v353_v3  ;;  %v4695_v42 = vpack.c.bf16 %v1458_v30, %v1459_v34  ;;  %v8821_v49 = vmov 0  ;;  %v1423_v50 = vpack.c.bf16 %v6271_v15, %v6268_v14  ;;  %vm6805_vm8 = vmpackc.low %vm973_vm2, %vm8789_vm15  ;;  %v5669_v3 = vld [vmem:[#allocation5 + $0x210] sm:$0xff]  }
  0xc9   : > { %2515 = vmatmul.mubr.bf16.gmra.mrb[28].mxu1 %v1332_v26  ;;  %v5668_v26 = vld [vmem:[#allocation5 + $0x208] sm:$0xff]   ;;  %v8822_v49 = vsel %vm6790_vm3, 4294967295, %v8821_v49  ;;  %v4707_v51 = vpack.c.bf16 %v1636_v44, %v1637_v58  ;;  %v1524_v5 = vrot.slane %v6309_v32, 2  ;;  %v8824_v34 = vmov 0 }
  0xca   : > { %2652 = vmatprep.mubr.bf16.mxu1 %v1689_v19  ;;  %8823 = vst [vmem:[#allocation23_spill] sm:$0xff] %v8822_v49  ;;  %v1613_v19 = vrot.slane %v6309_v32, 3  ;;  %v6801_v30 = vadd.s32 1, %v6780_v41  ;;  %v8825_v34 = vsel %vm6805_vm8, 4294967295, %v8824_v34  ;;  %v1437_v60 = vrot.slane %v6347_v2, 1 }
  0xcb   : > { %8826 = vst [vmem:[#allocation24_spill] sm:$0xff] %v8825_v34  ;;  %v6812_v14 = vadd.s32 3, %v6780_v41  ;;  %v357_v15 = vadd.s32 88, %v6168_v12  ;;  %vm8827_vm2 = vcmp.lt.s32.totalorder %v6168_v12, 6  ;;  %v6824_v44 = vadd.s32 2, %v6780_v41 }
  0xcc   : > { %v1547_v25 = vsel %vm8827_vm2, %v1522_v20, %v1523_v39  ;;  %vm8828_vm0 = vmmov %vm8827_vm2  ;;  %v8829_v8 = vrot.slane %v6344_v1, 1  ;;  %vm8830_vm1 = vcmp.lt.s32.totalorder %v6168_v12, 7  ;;  %v1615_v49 = vrot.slane %v6347_v2, 3 }
  0xcd   : > { %v1548_v58 = vsel %vm8828_vm0, %v1521_v22, %v1522_v20  ;;  %v6849_v20 = vand.u32 31, %v357_v15  ;;  %vm8840_vm2 = vmmov %vm8828_vm0 }
  0xce   : > { %v4710_v34 = vpack.c.bf16 %v1547_v25, %v1548_v58  ;;  %v5671_v58 = vld [vmem:[#allocation5 + $0x220] sm:$0xff]  }
  0xcf   : > { %2556 = vmatmul.mubr.bf16.vlgmr.msra.gmra.mrb[32].mxu0 %v1422_v48  ;;  %v8832_v48 = vrot.slane %v6344_v1, 3 }
  0xd0   : > { %5466 = vmatpush3.bf16.msra.mxu0 %v6661_v29  ;;  %4696 = vmatprep.mubr.msk.bf16.mxu0 %vm6790_vm3, %v4695_v42  ;;  %v1456_v29 = vsel %vm8830_vm1, %v1435_v47, %v8829_v8  ;;  %vm8831_vm3 = vmmov %vm8830_vm1 }
  0xd1   : > { %2653 = vmatmul.mubr.bf16.vlgmr.msra.gmra.mrb[32].mxu1 %v1600_v21  ;;  %5467 = vmatprep.subr.bf16.mxu0 %v5668_v26  ;;  %v1457_v42 = vsel %vm8831_vm3, %v1434_v9, %v1435_v47  ;;  %vm8833_vm3 = vcmp.lt.s32.totalorder %v6168_v12, 5  ;;  %v1618_v21 = vrot.slane %v6462_v36, 3 }
  0xd2   : > { %4708 = vmatprep.mubr.msk.bf16.mxu1 %vm6805_vm8, %v4707_v51  ;;  %v1634_v9 = vsel %vm8833_vm3, %v1613_v19, %v8832_v48  ;;  %vm8834_vm1 = vmmov %vm8833_vm3  ;;  %v1617_v51 = vrot.slane %v6412_v62, 3  ;;  %v1513_v22 = vpack.c.bf16 %v1456_v29, %v1457_v42  ;;  %v1424_v48 = vpack.c.bf16 %v6309_v32, %v6274_v16  ;;  %v5748_v29 = vld [vmem:[%s6158_s21 + $0x30] sm:$0xff] }
  0xd3   : > { %v1635_v47 = vsel %vm8834_vm1, %v1612_v0, %v1613_v19  ;;  %vm8835_vm3 = vcmp.lt.s32.totalorder %v877_v17, 32  ;;  %v8836_v0 = vmov 0  ;;  %v1546_v16 = vsel %vm8840_vm2, %v1523_v39, %v1524_v5 }
  0xd4   : > { %5468 = vmatpush3.bf16.msra.mxu0 %v5668_v26  ;;  %vm6858_vm1 = vmpackc.low %vm8835_vm3, %vm8789_vm15  ;;  %v1691_v19 = vpack.c.bf16 %v1634_v9, %v1635_v47  ;;  %v8839_v26 = vrot.slane %v6344_v1, 2  ;;  %v8841_v32 = vrot.slane %v6377_v27, 1  ;;  %vm8842_vm3 = vcmp.lt.s32.totalorder %v6168_v12, 7 }
  0xd5   : > { %5469 = vmatprep.subr.bf16.mxu0 %v5669_v3  ;;  %v8837_v0 = vsel %vm6858_vm1, 4294967295, %v8836_v0  ;;  %v6875_v42 = vadd.s32 1, %v6849_v20  ;;  %v361_v9 = vadd.s32 120, %v6168_v12  ;;  %v1442_v47 = vrot.slane %v6481_v4, 1 }
  0xd6   : > { %8838 = vst [vmem:[#allocation25_spill] sm:$0xff] %v8837_v0  ;;  %v1545_v15 = vsel %vm8828_vm0, %v1524_v5, %v8839_v26  ;;  %v1454_v17 = vsel %vm8842_vm3, %v1437_v60, %v8841_v32  ;;  %v8843_v5 = vmov %v8829_v8  ;;  %vm8844_vm0 = vmmov %vm8842_vm3  ;;  %vm8846_vm2 = vcmp.lt.s32.totalorder %v6168_v12, 5 }
  0xd7   : > { %2564 = vmatmul.mubr.bf16.gmra.mrb[36].mxu0 %v1423_v50  ;;  %v949_v50 = vadd.s32 3, %v6849_v20  ;;  %v1455_v32 = vsel %vm8844_vm0, %v8843_v5, %v1437_v60  ;;  %v8845_v60 = vrot.slane %v6377_v27, 3  ;;  %vm8848_vm3 = vmmov %vm8846_vm2  ;;  %v6908_v26 = vand.u32 31, %v361_v9 }
  0xd8   : > { %2571 = vmatprep.mubr.bf16.mxu0 %v1513_v22  ;;  %5470 = vmatpush3.bf16.msra.mxu0 %v5669_v3  ;;  %v6889_v22 = vadd.s32 2, %v6849_v20  ;;  %v8847_v3 = vrot.slane %v6344_v1, 3  ;;  %v4698_v39 = vpack.c.bf16 %v1454_v17, %v1455_v32  ;;  %v1602_v25 = vpack.c.bf16 %v1545_v15, %v1546_v16  ;;  %v6929_v16 = vld [vmem:[%s6158_s21 + $0x78] sm:$0xff] }
  0xd9   : > { %4711 = vmatmul.mubr.msk.bf16.gmra.mrb[36].mxu1 %vm6858_vm1, %v4710_v34  ;;  %5471 = vmatprep.subr.bf16.mxu0 %v5670_v35  ;;  %v1632_v5 = vsel %vm8846_vm2, %v1615_v49, %v8845_v60  ;;  %v1622_v34 = vrot.slane %v6601_v59, 3  ;;  %vm8849_vm2 = vcmp.lt.s32.totalorder %v6801_v30, 32  ;;  %v8850_v60 = vmov 0 }
  0xda   : > { %2668 = vmatprep.mubr.bf16.mxu1 %v1691_v19  ;;  %v1633_v8 = vsel %vm8848_vm3, %v8847_v3, %v1615_v49  ;;  %v5672_v19 = vld [vmem:[#allocation5 + $0x228] sm:$0xff]   ;;  %vm6915_vm8 = vmpackc.low %vm8849_vm2, %vm8789_vm15  ;;  %vm8853_vm3 = vcmp.lt.s32.totalorder %v6812_v14, 32  ;;  %vm8857_vm2 = vcmp.lt.s32.totalorder %v6824_v44, 32  ;;  %v8858_v32 = vmov 0  ;;  %v5673_v14 = vld [vmem:[#allocation5 + $0x230] sm:$0xff]  }
  0xdb   : > { %v8851_v60 = vsel %vm6915_vm8, 4294967295, %v8850_v60  ;;  %vm6924_vm1 = vmpackc.low %vm8853_vm3, %vm8789_vm15  ;;  %v4713_v15 = vpack.c.bf16 %v1632_v5, %v1633_v8  ;;  %v6941_v3 = vadd.s32 1, %v6908_v26  ;;  %v6944_v8 = vadd.s32 3, %v6908_v26 }
  0xdc   : > { %5472 = vmatpush3.bf16.msra.mxu0 %v5670_v35  ;;  %8852 = vst [vmem:[#allocation26_spill] sm:$0xff] %v8851_v60  ;;  %v8854_v35 = vmov 0  ;;  %vm6936_vm0 = vmpackc.low %vm8857_vm2, %vm8789_vm15  ;;  %v8862_v44 = vrot.slane %v6412_v62, 1  ;;  %vm8863_vm3 = vcmp.lt.s32.totalorder %v6168_v12, 7  ;;  %v8865_v49 = vrot.slane %v6377_v27, 1  ;;  %v5708_v60 = vld [vmem:[#allocation7 + $0x100] sm:$0xff]  }
  0xdd   : > { %5473 = vmatprep.subr.bf16.mxu0 %v5671_v58  ;;  %v8855_v35 = vsel %vm6924_vm1, 4294967295, %v8854_v35  ;;  %v8859_v32 = vsel %vm6936_vm0, 4294967295, %v8858_v32  ;;  %vm8866_vm2 = vmmov %vm8863_vm3 }
  0xde   : > { %8856 = vst [vmem:[#allocation27_spill] sm:$0xff] %v8855_v35  ;;  %8860 = vst [vmem:[#allocation28_spill] sm:$0xff] %v8859_v32  ;;  %v8864_v17 = vmov %v8862_v44 }
  0xdf   : > { %2572 = vmatmul.mubr.bf16.gmra.mrb[40].mxu0 %v1424_v48  ;;  %v8861_v48 = vrot.slane %v6462_v36, 1  ;;  %v1453_v9 = vsel %vm8866_vm2, %v8865_v49, %v8864_v17  ;;  %v5749_v49 = vld [vmem:[%s6158_s21 + $0x38] sm:$0xff]  ;;  %vm8873_vm2 = vcmp.lt.s32.totalorder %v6168_v12, 5 }
  0xe0   : > { %4699 = vmatprep.mubr.msk.bf16.mxu0 %vm6915_vm8, %v4698_v39  ;;  %5474 = vmatpush3.bf16.msra.mxu0 %v5671_v58  ;;  %v8868_v58 = vrot.slane %v6347_v2, 2  ;;  %vm8869_vm8 = vcmp.lt.s32.totalorder %v6168_v12, 6  ;;  %v1425_v17 = vpack.c.bf16 %v5749_v49, %v5748_v29  ;;  %v5674_v2 = vld [vmem:[#allocation5 + $0x238] sm:$0xff]  }
  0xe1   : > { %2669 = vmatmul.mubr.bf16.gmra.mrb[40].mxu1 %v1602_v25  ;;  %v1452_v5 = vsel %vm8863_vm3, %v8862_v44, %v8861_v48  ;;  %5475 = vmatprep.subr.bf16.mxu0 %v5672_v19  ;;  %v8867_v25 = vrot.slane %v6377_v27, 2  ;;  %v8871_v44 = vrot.slane %v6344_v1, 2  ;;  %vm8872_vm3 = vmmov %vm8869_vm8 }
  0xe2   : > { %4714 = vmatprep.mubr.msk.bf16.mxu1 %vm6924_vm1, %v4713_v15  ;;  %v8870_v48 = vmov %v8868_v58  ;;  %v1630_v15 = vsel %vm8873_vm2, %v1617_v51, %v1618_v21  ;;  %vm8891_vm1 = vcmp.lt.s32.totalorder %v6168_v12, 6 }
  0xe3   : > { %v1543_v39 = vsel %vm8869_vm8, %v8868_v58, %v8867_v25  ;;  %v1544_v30 = vsel %vm8872_vm3, %v8871_v44, %v8870_v48  ;;  %v8874_v25 = vrot.slane %v6377_v27, 3  ;;  %vm8875_vm8 = vmmov %vm8873_vm2  ;;  %v1515_v58 = vpack.c.bf16 %v1452_v5, %v1453_v9 }
  0xe4   : > { %5476 = vmatpush3.bf16.msra.mxu0 %v5672_v19  ;;  %v4716_v29 = vpack.c.bf16 %v1543_v39, %v1544_v30  ;;  %vm8876_vm3 = vcmp.lt.s32.totalorder %v6875_v42, 32  ;;  %v8877_v48 = vmov 0  ;;  %vm8880_vm2 = vcmp.lt.s32.totalorder %v949_v50, 32 }
  0xe5   : > { %v1631_v1 = vsel %vm8875_vm8, %v8874_v25, %v1617_v51  ;;  %vm6992_vm7 = vmpackc.low %vm8876_vm3, %vm8789_vm15  ;;  %5477 = vmatprep.subr.bf16.mxu0 %v5673_v14  ;;  %v8881_v51 = vmov 0  ;;  %v8884_v42 = vrot.slane %v6478_v57, 1  ;;  %vm8885_vm3 = vcmp.lt.s32.totalorder %v6168_v12, 7  ;;  %v5750_v25 = vld [vmem:[%s6158_s21 + $0x40] sm:$0xff] }
  0xe6   : > { %v8878_v48 = vsel %vm6992_vm7, 4294967295, %v8877_v48  ;;  %v1693_v44 = vpack.c.bf16 %v1630_v15, %v1631_v1  ;;  %vm6998_vm8 = vmpackc.low %vm8880_vm2, %vm8789_vm15  ;;  %v8887_v50 = vrot.slane %v6462_v36, 1  ;;  %v8890_v5 = vrot.slane %v6412_v62, 2  ;;  %v5751_v1 = vld [vmem:[%s6158_s21 + $0x48] sm:$0xff] }
  0xe7   : > { %8879 = vst [vmem:[#allocation29_spill] sm:$0xff] %v8878_v48  ;;  %2580 = vmatmul.mubr.bf16.gmra.mrb[44].mxu0 %v1425_v17  ;;  %v8882_v51 = vsel %vm6998_vm8, 4294967295, %v8881_v51  ;;  %v1450_v19 = vsel %vm8885_vm3, %v8884_v42, %v1442_v47  ;;  %v8886_v9 = vmov %v8884_v42  ;;  %vm8888_vm2 = vmmov %vm8885_vm3  ;;  %v8893_v17 = vrot.slane %v6377_v27, 2 }
  0xe8   : > { %8883 = vst [vmem:[#allocation30_spill] sm:$0xff] %v8882_v51  ;;  %2587 = vmatprep.mubr.bf16.mxu0 %v1515_v58  ;;  %5478 = vmatpush3.bf16.msra.mxu0 %v5673_v14  ;;  %v1451_v30 = vsel %vm8888_vm2, %v8887_v50, %v8886_v9  ;;  %v8889_v14 = vrot.slane %v6462_v36, 2  ;;  %v8892_v49 = vmov %v8890_v5  ;;  %vm8894_vm3 = vmmov %vm8891_vm1  ;;  %v1426_v58 = vpack.c.bf16 %v5751_v1, %v5750_v25 }
  0xe9   : > { %4717 = vmatmul.mubr.msk.bf16.gmra.mrb[44].mxu1 %vm6936_vm0, %v4716_v29  ;;  %5479 = vmatprep.subr.bf16.mxu0 %v5674_v2  ;;  %v1542_v15 = vsel %vm8894_vm3, %v8893_v17, %v8892_v49  ;;  %v8895_v29 = vrot.slane %v6481_v4, 3  ;;  %vm8897_vm2 = vcmp.lt.s32.totalorder %v6168_v12, 5  ;;  %v4701_v62 = vpack.c.bf16 %v1450_v19, %v1451_v30 }
  0xea   : > { %2684 = vmatprep.mubr.bf16.mxu1 %v1693_v44  ;;  %v1541_v39 = vsel %vm8891_vm1, %v8890_v5, %v8889_v14  ;;  %v8896_v44 = vrot.slane %v6478_v57, 3  ;;  %vm8899_vm1 = vmmov %vm8897_vm2  ;;  %vm8900_vm3 = vcmp.lt.s32.totalorder %v6889_v22, 32  ;;  %v8901_v5 = vmov 0 }
  0xeb   : > { %v1604_v50 = vpack.c.bf16 %v1541_v39, %v1542_v15  ;;  %vm7045_vm0 = vmpackc.low %vm8900_vm3, %vm8789_vm15  ;;  %v8904_v49 = vrot.slane %v6601_v59, 1  ;;  %v8909_v30 = vrot.slane %v6481_v4, 2  ;;  %v8910_v39 = vrot.slane %v6478_v57, 2 }
  0xec   : > { %v1628_v42 = vsel %vm8897_vm2, %v8896_v44, %v8895_v29  ;;  %v8898_v9 = vmov %v8896_v44  ;;  %5480 = vmatpush3.bf16.msra.mxu0 %v5674_v2  ;;  %v8902_v5 = vsel %vm7045_vm0, 4294967295, %v8901_v5  ;;  %vm8906_vm2 = vcmp.lt.s32.totalorder %v6168_v12, 7 }
  0xed   : > { %v1629_v27 = vsel %vm8899_vm1, %v1618_v21, %v8898_v9  ;;  %8903 = vst [vmem:[#allocation31_spill] sm:$0xff] %v8902_v5  ;;  %v8905_v21 = vrot.slane %v6578_v43, 1  ;;  %vm8908_vm1 = vmmov %vm8906_vm2  ;;  %vm8911_vm3 = vcmp.lt.s32.totalorder %v6168_v12, 6  ;;  %v8912_v15 = vmov %v8910_v39 }
  0xee   : > { %v4719_v14 = vpack.c.bf16 %v1628_v42, %v1629_v27  ;;  %v1539_v17 = vsel %vm8911_vm3, %v8910_v39, %v8909_v30  ;;  %v8913_v25 = vrot.slane %v6462_v36, 2  ;;  %v8915_v44 = vrot.slane %v6578_v43, 3 }
  0xef   : > { %2588 = vmatmul.mubr.bf16.gmra.mrb[48].mxu0 %v1426_v58  ;;  %v1448_v2 = vsel %vm8906_vm2, %v8905_v21, %v8904_v49  ;;  %v8907_v19 = vmov %v8905_v21  ;;  %vm8914_vm2 = vmmov %vm8911_vm3  ;;  %v5753_v58 = vld [vmem:[%s6158_s21 + $0x58] sm:$0xff]  ;;  %v8918_v36 = vrot.slane %v6481_v4, 3  ;;  %v8925_v30 = vrot.slane %v6601_v59, 2 }
  0xf0   : > { %4702 = vmatprep.mubr.msk.bf16.mxu0 %vm6992_vm7, %v4701_v62  ;;  %v1449_v22 = vsel %vm8908_vm1, %v1442_v47, %v8907_v19  ;;  %v1540_v1 = vsel %vm8914_vm2, %v8913_v25, %v8912_v15  ;;  %vm857_vm7 = vcmp.lt.s32.totalorder %v6941_v3, 32  ;;  %v5752_v47 = vld [vmem:[%s6158_s21 + $0x50] sm:$0xff]  ;;  %vm8916_vm1 = vcmp.lt.s32.totalorder %v6168_v12, 5 }
  0xf1   : > { %2685 = vmatmul.mubr.bf16.gmra.mrb[48].mxu1 %v1604_v50  ;;  %v1427_v29 = vpack.c.bf16 %v5753_v58, %v5752_v47  ;;  %v1626_v42 = vsel %vm8916_vm1, %v8915_v44, %v1622_v34  ;;  %v8917_v57 = vmov %v8915_v44  ;;  %vm8919_vm3 = vmmov %vm8916_vm1  ;;  %v1517_v27 = vpack.c.bf16 %v1448_v2, %v1449_v22  ;;  %v5754_v47 = vld [vmem:[%s6158_s21 + $0x60] sm:$0xff] }
  0xf2   : > { %4720 = vmatprep.mubr.msk.bf16.mxu1 %vm6998_vm8, %v4719_v14  ;;  %v1627_v9 = vsel %vm8919_vm3, %v8918_v36, %v8917_v57  ;;  %v4722_v62 = vpack.c.bf16 %v1539_v17, %v1540_v1  ;;  %v8920_v14 = vrot.slane %v6929_v16, 1  ;;  %vm8921_vm1 = vcmp.lt.s32.totalorder %v6168_v12, 7 }
  0xf3   : > { %v1695_v50 = vpack.c.bf16 %v1626_v42, %v1627_v9  ;;  %v8922_v19 = vrot.slane %v6195_v46, 1  ;;  %vm8924_vm3 = vmmov %vm8921_vm1  ;;  %v8926_v39 = vrot.slane %v6578_v43, 2  ;;  %v8928_v25 = vrot.slane %v6481_v4, 2 }
  0xf4   : > { %v1447_v21 = vsel %vm8921_vm1, %v8904_v49, %v8920_v14  ;;  %v8923_v2 = vmov %v8920_v14  ;;  %vm8929_vm1 = vmmov %vm8914_vm2  ;;  %v1428_v58 = vpack.c.bf16 %v6578_v43, %v5754_v47  ;;  %v8932_v42 = vrot.slane %v6195_v46, 3 }
  0xf5   : > { %v1462_v22 = vsel %vm8924_vm3, %v8923_v2, %v8922_v19  ;;  %v1537_v17 = vsel %vm8914_vm2, %v8926_v39, %v8925_v30  ;;  %v8927_v15 = vmov %v8926_v39  ;;  %vm8931_vm3 = vcmp.lt.s32.totalorder %v6168_v12, 5 }
  0xf6   : > { %v1538_v1 = vsel %vm8929_vm1, %v8928_v25, %v8927_v15  ;;  %vm8934_vm2 = vmmov %vm8931_vm3  ;;  %v4704_v36 = vpack.c.bf16 %v1462_v22, %v1447_v21  ;;  %v8935_v43 = vmov 0  ;;  %v8942_v3 = vmov %v8925_v30 }
  0xf7   : > { %2596 = vmatmul.mubr.bf16.gmra.mrb[52].mxu0 %v1427_v29  ;;  %v8930_v29 = vrot.slane %v6929_v16, 3  ;;  %v1606_v9 = vpack.c.bf16 %v1537_v17, %v1538_v1  ;;  %vm7136_vm1 = vmpackc.low %vm857_vm7, %vm8789_vm15  ;;  %vm8943_vm7 = vcmp.lt.s32.totalorder %v6168_v12, 6  ;;  %v1429_v21 = vpack.c.bf16 %v6929_v16, %v6601_v59 }
  0xf8   : > { %2603 = vmatprep.mubr.bf16.mxu0 %v1517_v27  ;;  %v8936_v43 = vsel %vm7136_vm1, 4294967295, %v8935_v43  ;;  %v1745_v19 = vpack.c.bf16 %v6319_v38, %v6249_v6  ;;  %v1005_v22 = vadd.s32 4, %v6746_v40  ;;  %v8946_v30 = vmov 0 }
  0xf9   : > { %4723 = vmatmul.mubr.msk.bf16.gmra.mrb[52].mxu1 %vm7045_vm0, %v4722_v62  ;;  %v1625_v44 = vsel %vm8931_vm3, %v1622_v34, %v8930_v29  ;;  %v8933_v57 = vmov %v8930_v29  ;;  %8937 = vst [vmem:[#allocation32_spill] sm:$0xff] %v8936_v43  ;;  %v1534_v62 = vrot.slane %v6929_v16, 2  ;;  %vm8938_vm3 = vcmp.lt.s32.totalorder %v6944_v8, 32 }
  0xfa   : > { %2700 = vmatprep.mubr.bf16.mxu1 %v1695_v50  ;;  %v1640_v4 = vsel %vm8934_vm2, %v8933_v57, %v8932_v42  ;;  %vm7144_vm0 = vmpackc.low %vm8938_vm3, %vm8789_vm15  ;;  %v8939_v34 = vmov 0  ;;  %v889_v50 = vadd.s32 2, %v6908_v26  ;;  %v8944_v8 = vrot.slane %v6195_v46, 2 }
  0xfb   : > { %v4725_v27 = vpack.c.bf16 %v1640_v4, %v1625_v44  ;;  %v8940_v34 = vsel %vm7144_vm0, 4294967295, %v8939_v34  ;;  %v1536_v14 = vsel %vm8943_vm7, %v8942_v3, %v1534_v62  ;;  %vm8945_vm2 = vmmov %vm8943_vm7  ;;  %vm1037_vm7 = vcmp.lt.s32.totalorder %v1005_v22, 32 }
  0xfc   : > { %8941 = vst [vmem:[#allocation33_spill] sm:$0xff] %v8940_v34  ;;  %v1551_v49 = vsel %vm8945_vm2, %v1534_v62, %v8944_v8  ;;  %vm921_vm3 = vcmp.lt.s32.totalorder %v889_v50, 32  ;;  %vm7174_vm2 = vmpackc.low %vm1037_vm7, %vm8789_vm15  ;;  %v8949_v46 = vmov 0  ;;  %v1747_v6 = vpack.c.bf16 %v6468_v61, %v6388_v31  ;;  %v5684_v62 = vld [vmem:[#allocation7 + $0xc0] sm:$0xff]  }
  0xfd   : > { %v4728_v2 = vpack.c.bf16 %v1551_v49, %v1536_v14  ;;  %v8950_v46 = vsel %vm7174_vm2, 4294967295, %v8949_v46  ;;  %v1009_v38 = vadd.s32 4, %v6780_v41  ;;  %v8952_v59 = vpack.c.bf16 %v6326_v52, %v6330_v53  ;;  %v5686_v8 = vld [vmem:[#allocation7 + $0x80] sm:$0xff]   ;;  %5257 = vmatprep.subr.bf16.mxu0 %v5684_v62 }
  0xfe   : > { %8951 = vst [vmem:[#allocation35_spill] sm:$0xff] %v8950_v46  ;;  %v8953_v40 = vmov 0  ;;  %v1013_v16 = vadd.s32 4, %v6849_v20  ;;  %v8956_v31 = vpack.c.bf16 %v6436_v18, %v6440_v45  ;;  %v8957_v52 = vpack.c.bf16 %v6619_v55, %v6540_v37  ;;  %v5677_v55 = vld [vmem:[#allocation7 + $0x48] sm:$0xff]  }
  0xff   : > { %2604 = vmatmul.mubr.bf16.gmra.mrb[56].mxu0 %v1428_v58  ;;  %v8958_v53 = vmov 0  ;;  %v1017_v61 = vadd.s32 4, %v6908_v26  ;;  %v8961_v41 = vpack.c.bf16 %v6546_v54, %v6550_v23  ;;  %v8962_v18 = vpack.c.bf16 %v6730_v33, %v6680_v28  ;;  %v5675_v54 = vld [vmem:[#allocation7 + $0x40] sm:$0xff]   ;;  %v5678_v20 = vld [vmem:[#allocation7 + $0x8] sm:$0xff]   ;;  %v5679_v28 = vld [vmem:[#allocation7 + $0x50] sm:$0xff]  }
 0x100   : > { %4705 = vmatprep.mubr.msk.bf16.mxu0 %vm7136_vm1, %v4704_v36  ;;  %vm1045_vm7 = vcmp.lt.s32.totalorder %v1013_v16, 32  ;;  %v8963_v45 = vmov 0  ;;  %v8966_v37 = vpack.c.bf16 %v6263_v10, %v6633_v13  ;;  %v5676_v23 = vld [vmem:[#allocation7] sm:$0xff]   ;;  %5193 = vmatprep.subr.bf16.mxu1 %v5675_v54  ;;  %v5680_v33 = vld [vmem:[#allocation7 + $0x10] sm:$0xff]   ;;  %v5681_v36 = vld [vmem:[#allocation7 + $0x58] sm:$0xff]  }
 0x101   : > { %2701 = vmatmul.mubr.bf16.gmra.mrb[56].mxu1 %v1606_v9  ;;  %v5690_v54 = vld [vmem:[#allocation7 + $0xd0] sm:$0xff]  }
 0x102   : > { %4726 = vmatprep.mubr.msk.bf16.mxu1 %vm7144_vm0, %v4725_v27  ;;  %vm7167_vm0 = vmpackc.low %vm921_vm3, %vm8789_vm15  ;;  %vm1041_vm3 = vcmp.lt.s32.totalorder %v1009_v38, 32  ;;  %5194 = vmatpush3.bf16.msra.mxu1 %v5676_v23  ;;  %v5682_v27 = vld [vmem:[#allocation7 + $0x18] sm:$0xff]   ;;  %v5687_v38 = vld [vmem:[#allocation7 + $0xc8] sm:$0xff]  }
 0x103   : > { %v8947_v30 = vsel %vm7167_vm0, 4294967295, %v8946_v30  ;;  %5195 = vmatprep.subr.bf16.mxu1 %v5677_v55 }
 0x104   : > { %8948 = vst [vmem:[#allocation34_spill] sm:$0xff] %v8947_v30 }
 0x106   : > { %5196 = vmatpush3.bf16.msra.mxu1 %v5678_v20 }
 0x107   : > { %2612 = vmatmul.mubr.bf16.gmra.mrb[60].mxu0 %v1429_v21  ;;  %5197 = vmatprep.subr.bf16.mxu1 %v5679_v28  ;;  %v5692_v28 = vld [vmem:[#allocation7 + $0x90] sm:$0xff]  }
 0x108   : > { %5481 = vmatprep.mubr.bf16.mxu0 %v1745_v19 }
 0x109   : > { %4729 = vmatmul.mubr.msk.bf16.gmra.mrb[60].mxu1 %vm7167_vm0, %v4728_v2  ;;  %vm7187_vm0 = vmpackc.low %vm1041_vm3, %vm8789_vm15  ;;  %vm1049_vm3 = vcmp.lt.s32.totalorder %v1017_v61, 32 }
 0x10a   : > { %v8954_v40 = vsel %vm7187_vm0, 4294967295, %v8953_v40  ;;  %5198 = vmatpush3.bf16.msra.mxu1 %v5680_v33 }
 0x10b   : > { %8955 = vst [vmem:[#allocation36_spill] sm:$0xff] %v8954_v40  ;;  %5199 = vmatprep.subr.bf16.mxu1 %v5681_v36  ;;  %v5691_v36 = vld [vmem:[#allocation7 + $0x28] sm:$0xff]  }
 0x10e   : > { %5200 = vmatpush3.bf16.msra.mxu1 %v5682_v27 }
 0x10f   : > { %5482 = vmatmul.mubr.msk.bf16.vlgmr.msra.gmra.mrb[64].mxu0 %vm7174_vm2, %v8952_v59  ;;  %vm7201_vm2 = vmpackc.low %vm1045_vm7, %vm8789_vm15  ;;  %vm8971_vm7 = vcmp.lt.s32.totalorder %v6168_v12, 1 }
 0x110   : > { %5485 = vmatprep.mubr.bf16.mxu0 %v1747_v6  ;;  %v8959_v53 = vsel %vm7201_vm2, 4294967295, %v8958_v53  ;;  %5258 = vmatpush3.bf16.msra.mxu0 %v5686_v8 }
 0x111   : > { %8960 = vst [vmem:[#allocation37_spill] sm:$0xff] %v8959_v53  ;;  %5259 = vmatprep.subr.bf16.mxu0 %v5687_v38 }
 0x117   : > { %5486 = vmatmul.mubr.msk.bf16.gmra.mrb[68].mxu0 %vm7187_vm0, %v8956_v31  ;;  %vm7215_vm0 = vmpackc.low %vm1049_vm3, %vm8789_vm15  ;;  %v5688_v31 = vld [vmem:[#allocation7 + $0x88] sm:$0xff]   ;;  %vm8970_vm15 = vcmp.lt.s32.totalorder %v6168_v12, 3  ;;  %vm8973_vm3 = vcmp.lt.s32.totalorder %v6168_v12, 4 }
 0x118   : > { %5489 = vmatprep.mubr.bf16.mxu0 %v8957_v52  ;;  %v8964_v45 = vsel %vm7215_vm0, 4294967295, %v8963_v45  ;;  %5260 = vmatpush3.bf16.msra.mxu0 %v5688_v31 }
 0x119   : > { %8965 = vst [vmem:[#allocation38_spill] sm:$0xff] %v8964_v45  ;;  %5261 = vmatprep.subr.bf16.mxu0 %v5690_v54  ;;  %v5702_v54 = vld [vmem:[#allocation7 + $0xf0] sm:$0xff]  }
 0x11c   : > { %5262 = vmatpush3.bf16.msra.mxu0 %v5692_v28  ;;  %v5701_v28 = vld [vmem:[#allocation7 + $0x78] sm:$0xff]  }
 0x11f   : > { %5490 = vmatmul.mubr.msk.bf16.gmra.mrb[72].mxu0 %vm7201_vm2, %v8961_v41  ;;  %v5683_v41 = vld [vmem:[#allocation7 + $0x60] sm:$0xff]  }
 0x120   : > { %5493 = vmatprep.mubr.bf16.mxu0 %v8962_v18  ;;  %5201 = vmatprep.subr.bf16.mxu1 %v5683_v41  ;;  %v5695_v41 = vld [vmem:[#allocation7 + $0x70] sm:$0xff]  }
 0x127   : > { %5494 = vmatmul.mubr.msk.bf16.gmra.mrb[76].mxu0 %vm7215_vm0, %v8966_v37  ;;  %v5685_v37 = vld [vmem:[#allocation7 + $0x20] sm:$0xff]  }
 0x128   : > { %5202 = vmatpush3.bf16.msra.mxu1 %v5685_v37  ;;  %v5697_v37 = vld [vmem:[#allocation7 + $0x30] sm:$0xff]  }
 0x162   : > { %v4937_v26 = vpop.f32.mrb[0].mxu0 }
 0x163   : > { %v4938_v39 = vpop.f32.mrb[1].mxu0  ;;  %v5001_v17 = vpop.f32.mrb[0].mxu1 }
 0x164   : > { %v4939_v15 = vadd.f32 %v4938_v39, %v4937_v26  ;;  %v4940_v10 = vpop.f32.mrb[2].mxu0  ;;  %v5002_v13 = vpop.f32.mrb[1].mxu1 }
 0x165   : > { %v4941_v25 = vpop.f32.mrb[3].mxu0  ;;  %v5003_v1 = vadd.f32 %v5002_v13, %v5001_v17  ;;  %v5004_v47 = vpop.f32.mrb[2].mxu1  ;;  %v5693_v13 = vld [vmem:[#allocation7 + $0xd8] sm:$0xff]  }
 0x166   : > { %v4942_v58 = vadd.f32 %v4941_v25, %v4940_v10  ;;  %v5005_v29 = vpop.f32.mrb[3].mxu1  ;;  %5263 = vmatprep.subr.bf16.mxu0 %v5693_v13 }
 0x167   : > { %v7224_v44 = vadd.f32 %v5003_v1, %v4939_v15  ;;  %v5006_v42 = vadd.f32 %v5005_v29, %v5004_v47  ;;  %v5694_v47 = vld [vmem:[#allocation7 + $0x98] sm:$0xff]  }
 0x168   : > { %5264 = vmatpush3.bf16.msra.mxu0 %v5694_v47  ;;  %v5706_v47 = vld [vmem:[#allocation7 + $0xb8] sm:$0xff]  }
 0x169   : > { %v7226_v57 = vadd.f32 %v5006_v42, %v4942_v58  ;;  %v5689_v42 = vld [vmem:[#allocation7 + $0x68] sm:$0xff]  }
 0x16a   : > { %v4943_v4 = vpop.f32.mrb[4].mxu0  ;;  %5203 = vmatprep.subr.bf16.mxu1 %v5689_v42 }
 0x16b   : > { %v4944_v9 = vpop.f32.mrb[5].mxu0  ;;  %5204 = vmatpush3.bf16.msra.mxu1 %v5691_v36 }
 0x16c   : > { %v5007_v50 = vpop.f32.mrb[4].mxu1  ;;  %v4945_v3 = vadd.f32 %v4944_v9, %v4943_v4  ;;  %v4946_v14 = vpop.f32.mrb[6].mxu0  ;;  %v5696_v9 = vld [vmem:[#allocation7 + $0xe0] sm:$0xff]   ;;  %5205 = vmatprep.subr.bf16.mxu1 %v5695_v41 }
 0x16d   : > { %v5008_v49 = vpop.f32.mrb[5].mxu1  ;;  %v4947_v21 = vpop.f32.mrb[7].mxu0  ;;  %5265 = vmatprep.subr.bf16.mxu0 %v5696_v9 }
 0x16e   : > { %v5009_v19 = vadd.f32 %v5008_v49, %v5007_v50  ;;  %v5010_v2 = vpop.f32.mrb[6].mxu1  ;;  %v4948_v22 = vadd.f32 %v4947_v21, %v4946_v14 }
 0x16f   : > { %v5011_v6 = vpop.f32.mrb[7].mxu1  ;;  %5206 = vmatpush3.bf16.msra.mxu1 %v5697_v37 }
 0x170   : > { %v7228_v59 = vadd.f32 %v5009_v19, %v4945_v3  ;;  %v5012_v16 = vadd.f32 %v5011_v6, %v5010_v2  ;;  %v5698_v3 = vld [vmem:[#allocation7 + $0xa0] sm:$0xff]   ;;  %5207 = vmatprep.subr.bf16.mxu1 %v5701_v28 }
 0x171   : > { %5266 = vmatpush3.bf16.msra.mxu0 %v5698_v3 }
 0x172   : > { %v7230_v52 = vadd.f32 %v5012_v16, %v4948_v22  ;;  %v4949_v61 = vpop.f32.mrb[8].mxu0  ;;  %v5699_v22 = vld [vmem:[#allocation7 + $0xe8] sm:$0xff]  }
 0x173   : > { %v4950_v18 = vpop.f32.mrb[9].mxu0  ;;  %v5700_v16 = vld [vmem:[#allocation7 + $0xa8] sm:$0xff]   ;;  %5267 = vmatprep.subr.bf16.mxu0 %v5699_v22 }
 0x174   : > { %v5013_v23 = vpop.f32.mrb[8].mxu1  ;;  %v4951_v55 = vadd.f32 %v4950_v18, %v4949_v61  ;;  %v4952_v20 = vpop.f32.mrb[10].mxu0 }
 0x175   : > { %v5014_v33 = vpop.f32.mrb[9].mxu1  ;;  %v4953_v26 = vpop.f32.mrb[11].mxu0  ;;  %5268 = vmatpush3.bf16.msra.mxu0 %v5700_v16 }
 0x176   : > { %v5015_v39 = vadd.f32 %v5014_v33, %v5013_v23  ;;  %v5016_v17 = vpop.f32.mrb[10].mxu1  ;;  %v4954_v15 = vadd.f32 %v4953_v26, %v4952_v20  ;;  %v5704_v33 = vld [vmem:[#allocation7 + $0xb0] sm:$0xff]   ;;  %5269 = vmatprep.subr.bf16.mxu0 %v5702_v54 }
 0x177   : > { %v5017_v10 = vpop.f32.mrb[11].mxu1 }
 0x178   : > { %v7232_v25 = vadd.f32 %v5015_v39, %v4951_v55  ;;  %v5018_v1 = vadd.f32 %v5017_v10, %v5016_v17  ;;  %v5703_v17 = vld [vmem:[#allocation7 + $0x38] sm:$0xff]  }
 0x179   : > { %5270 = vmatpush3.bf16.msra.mxu0 %v5704_v33  ;;  %5208 = vmatpush3.bf16.msra.mxu1 %v5703_v17 }
 0x17a   : > { %v7234_v58 = vadd.f32 %v5018_v1, %v4954_v15  ;;  %v4955_v29 = vpop.f32.mrb[12].mxu0  ;;  %v5705_v15 = vld [vmem:[#allocation7 + $0xf8] sm:$0xff]  }
 0x17b   : > { %v4956_v4 = vpop.f32.mrb[13].mxu0  ;;  %5271 = vmatprep.subr.bf16.mxu0 %v5705_v15 }
 0x17c   : > { %v5019_v27 = vpop.f32.mrb[12].mxu1  ;;  %v4957_v62 = vadd.f32 %v4956_v4, %v4955_v29  ;;  %v4958_v50 = vpop.f32.mrb[14].mxu0 }
 0x17d   : > { %v5020_v14 = vpop.f32.mrb[13].mxu1  ;;  %v4959_v8 = vpop.f32.mrb[15].mxu0  ;;  %5272 = vmatpush3.bf16.msra.mxu0 %v5706_v47 }
 0x17e   : > { %v5021_v49 = vadd.f32 %v5020_v14, %v5019_v27  ;;  %v5022_v21 = vpop.f32.mrb[14].mxu1  ;;  %v4960_v19 = vadd.f32 %v4959_v8, %v4958_v50 }
 0x17f   : > { %v5023_v2 = vpop.f32.mrb[15].mxu1 }
 0x180   : > { %v7236_v6 = vadd.f32 %v5021_v49, %v4957_v62  ;;  %v5024_v38 = vadd.f32 %v5023_v2, %v5022_v21  ;;  %v5707_v62 = vld [vmem:[#allocation7 + $0x140] sm:$0xff]  }
 0x181   : > { %5321 = vmatprep.subr.bf16.mxu1 %v5707_v62 }
 0x182   : > { %v7238_v31 = vadd.f32 %v5024_v38, %v4960_v19  ;;  %v4961_v61 = vpop.f32.mrb[16].mxu0 }
 0x183   : > { %v4962_v18 = vpop.f32.mrb[17].mxu0 }
 0x184   : > { %v5025_v23 = vpop.f32.mrb[16].mxu1  ;;  %v4963_v55 = vadd.f32 %v4962_v18, %v4961_v61  ;;  %v4964_v20 = vpop.f32.mrb[18].mxu0 }
 0x185   : > { %v5026_v26 = vpop.f32.mrb[17].mxu1  ;;  %v4965_v39 = vpop.f32.mrb[19].mxu0 }
 0x186   : > { %v5027_v10 = vadd.f32 %v5026_v26, %v5025_v23  ;;  %v5028_v13 = vpop.f32.mrb[18].mxu1  ;;  %v4966_v1 = vadd.f32 %v4965_v39, %v4964_v20 }
 0x187   : > { %v5029_v29 = vpop.f32.mrb[19].mxu1 }
 0x188   : > { %v7240_v42 = vadd.f32 %v5027_v10, %v4963_v55  ;;  %v5030_v4 = vadd.f32 %v5029_v29, %v5028_v13 }
 0x18a   : > { %v7242_v36 = vadd.f32 %v5030_v4, %v4966_v1  ;;  %v4967_v9 = vpop.f32.mrb[20].mxu0 }
 0x18b   : > { %v4968_v27 = vpop.f32.mrb[21].mxu0 }
 0x18c   : > { %v5031_v50 = vpop.f32.mrb[20].mxu1  ;;  %v4969_v3 = vadd.f32 %v4968_v27, %v4967_v9  ;;  %v4970_v14 = vpop.f32.mrb[22].mxu0 }
 0x18d   : > { %v5032_v8 = vpop.f32.mrb[21].mxu1  ;;  %v4971_v49 = vpop.f32.mrb[23].mxu0 }
 0x18e   : > { %v5033_v21 = vadd.f32 %v5032_v8, %v5031_v50  ;;  %v5034_v19 = vpop.f32.mrb[22].mxu1  ;;  %v4972_v2 = vadd.f32 %v4971_v49, %v4970_v14 }
 0x18f   : > { %v5035_v22 = vpop.f32.mrb[23].mxu1 }
 0x190   : > { %v7244_v38 = vadd.f32 %v5033_v21, %v4969_v3  ;;  %v5036_v16 = vadd.f32 %v5035_v22, %v5034_v19 }
 0x192   : > { %v7246_v61 = vadd.f32 %v5036_v16, %v4972_v2  ;;  %v4973_v41 = vpop.f32.mrb[24].mxu0 }
 0x193   : > { %v4974_v18 = vpop.f32.mrb[25].mxu0 }
 0x194   : > { %v5037_v37 = vpop.f32.mrb[24].mxu1  ;;  %v4975_v54 = vadd.f32 %v4974_v18, %v4973_v41  ;;  %v4976_v23 = vpop.f32.mrb[26].mxu0  ;;  %v5715_v18 = vld [vmem:[#allocation7 + $0x1c0] sm:$0xff]  }
 0x195   : > { %v5038_v55 = vpop.f32.mrb[25].mxu1  ;;  %v4977_v20 = vpop.f32.mrb[27].mxu0  ;;  %5385 = vmatprep.subr.bf16.mxu0 %v5715_v18 }
 0x196   : > { %v5039_v28 = vadd.f32 %v5038_v55, %v5037_v37  ;;  %v5040_v33 = vpop.f32.mrb[26].mxu1  ;;  %v4978_v26 = vadd.f32 %v4977_v20, %v4976_v23 }
 0x197   : > { %v5041_v39 = vpop.f32.mrb[27].mxu1 }
 0x198   : > { %v7248_v17 = vadd.f32 %v5039_v28, %v4975_v54  ;;  %v5042_v15 = vadd.f32 %v5041_v39, %v5040_v33 }
 0x19a   : > { %v7250_v10 = vadd.f32 %v5042_v15, %v4978_v26  ;;  %v4979_v13 = vpop.f32.mrb[28].mxu0 }
 0x19b   : > { %v4980_v1 = vpop.f32.mrb[29].mxu0 }
 0x19c   : > { %v5043_v47 = vpop.f32.mrb[28].mxu1  ;;  %v4981_v29 = vadd.f32 %v4980_v1, %v4979_v13  ;;  %v4982_v4 = vpop.f32.mrb[30].mxu0 }
 0x19d   : > { %v5044_v9 = vpop.f32.mrb[29].mxu1  ;;  %v4983_v27 = vpop.f32.mrb[31].mxu0 }
 0x19e   : > { %v5045_v62 = vadd.f32 %v5044_v9, %v5043_v47  ;;  %v5046_v50 = vpop.f32.mrb[30].mxu1  ;;  %v4984_v3 = vadd.f32 %v4983_v27, %v4982_v4 }
 0x19f   : > { %v5047_v14 = vpop.f32.mrb[31].mxu1 }
 0x1a0   : > { %v7252_v8 = vadd.f32 %v5045_v62, %v4981_v29  ;;  %v5048_v49 = vadd.f32 %v5047_v14, %v5046_v50 }
 0x1a2   : > { %v7254_v21 = vadd.f32 %v5048_v49, %v4984_v3  ;;  %v5065_v19 = vpop.f32.mrb[32].mxu0 }
 0x1a3   : > { %v5066_v2 = vpop.f32.mrb[33].mxu0 }
 0x1a4   : > { %v5067_v22 = vadd.f32 %v5066_v2, %v5065_v19  ;;  %v5068_v16 = vpop.f32.mrb[34].mxu0  ;;  %v5129_v41 = vpop.f32.mrb[32].mxu1 }
 0x1a5   : > { %v5069_v37 = vpop.f32.mrb[35].mxu0  ;;  %v5130_v54 = vpop.f32.mrb[33].mxu1 }
 0x1a6   : > { %v2558_v23 = vadd.f32 %v5067_v22, %v7224_v44  ;;  %v5070_v55 = vadd.f32 %v5069_v37, %v5068_v16  ;;  %v5131_v20 = vadd.f32 %v5130_v54, %v5129_v41  ;;  %v5132_v28 = vpop.f32.mrb[34].mxu1 }
 0x1a7   : > { %v5133_v33 = vpop.f32.mrb[35].mxu1 }
 0x1a8   : > { %v2561_v26 = vadd.f32 %v5070_v55, %v7226_v57  ;;  %v5134_v39 = vadd.f32 %v5133_v33, %v5132_v28  ;;  %v7258_v15 = vadd.f32 %v5131_v20, %v2558_v23 }
 0x1aa   : > { %v5071_v13 = vpop.f32.mrb[36].mxu0  ;;  %v7260_v1 = vadd.f32 %v5134_v39, %v2561_v26 }
 0x1ab   : > { %v5072_v47 = vpop.f32.mrb[37].mxu0 }
 0x1ac   : > { %v5073_v29 = vadd.f32 %v5072_v47, %v5071_v13  ;;  %v5074_v4 = vpop.f32.mrb[38].mxu0  ;;  %v5135_v9 = vpop.f32.mrb[36].mxu1 }
 0x1ad   : > { %v5075_v27 = vpop.f32.mrb[39].mxu0  ;;  %v5136_v62 = vpop.f32.mrb[37].mxu1 }
 0x1ae   : > { %v2566_v44 = vadd.f32 %v5073_v29, %v7228_v59  ;;  %v5076_v50 = vadd.f32 %v5075_v27, %v5074_v4  ;;  %v5137_v3 = vadd.f32 %v5136_v62, %v5135_v9  ;;  %v5138_v14 = vpop.f32.mrb[38].mxu1 }
 0x1af   : > { %v5139_v49 = vpop.f32.mrb[39].mxu1 }
 0x1b0   : > { %v2569_v57 = vadd.f32 %v5076_v50, %v7230_v52  ;;  %v5140_v19 = vadd.f32 %v5139_v49, %v5138_v14  ;;  %v7264_v2 = vadd.f32 %v5137_v3, %v2566_v44 }
 0x1b2   : > { %v5077_v22 = vpop.f32.mrb[40].mxu0  ;;  %v7266_v16 = vadd.f32 %v5140_v19, %v2569_v57 }
 0x1b3   : > { %v5078_v41 = vpop.f32.mrb[41].mxu0 }
 0x1b4   : > { %v5079_v18 = vadd.f32 %v5078_v41, %v5077_v22  ;;  %v5080_v37 = vpop.f32.mrb[42].mxu0  ;;  %v5141_v54 = vpop.f32.mrb[40].mxu1 }
 0x1b5   : > { %v5081_v23 = vpop.f32.mrb[43].mxu0  ;;  %v5142_v55 = vpop.f32.mrb[41].mxu1 }
 0x1b6   : > { %v2574_v59 = vadd.f32 %v5079_v18, %v7232_v25  ;;  %v5082_v20 = vadd.f32 %v5081_v23, %v5080_v37  ;;  %v5143_v28 = vadd.f32 %v5142_v55, %v5141_v54  ;;  %v5144_v33 = vpop.f32.mrb[42].mxu1 }
 0x1b7   : > { %v5145_v26 = vpop.f32.mrb[43].mxu1 }
 0x1b8   : > { %v2577_v52 = vadd.f32 %v5082_v20, %v7234_v58  ;;  %v5146_v39 = vadd.f32 %v5145_v26, %v5144_v33  ;;  %v7270_v13 = vadd.f32 %v5143_v28, %v2574_v59 }
 0x1ba   : > { %v5083_v47 = vpop.f32.mrb[44].mxu0  ;;  %v7272_v29 = vadd.f32 %v5146_v39, %v2577_v52 }
 0x1bb   : > { %v5084_v4 = vpop.f32.mrb[45].mxu0 }
 0x1bc   : > { %v5085_v9 = vadd.f32 %v5084_v4, %v5083_v47  ;;  %v5086_v27 = vpop.f32.mrb[46].mxu0  ;;  %v5147_v62 = vpop.f32.mrb[44].mxu1 }
 0x1bd   : > { %v5087_v44 = vpop.f32.mrb[47].mxu0  ;;  %v5148_v50 = vpop.f32.mrb[45].mxu1 }
 0x1be   : > { %v2582_v25 = vadd.f32 %v5085_v9, %v7236_v6  ;;  %v5088_v3 = vadd.f32 %v5087_v44, %v5086_v27  ;;  %v5149_v14 = vadd.f32 %v5148_v50, %v5147_v62  ;;  %v5150_v49 = vpop.f32.mrb[46].mxu1 }
 0x1bf   : > { %v5151_v57 = vpop.f32.mrb[47].mxu1 }
 0x1c0   : > { %v2585_v58 = vadd.f32 %v5088_v3, %v7238_v31  ;;  %v5152_v19 = vadd.f32 %v5151_v57, %v5150_v49  ;;  %v7276_v22 = vadd.f32 %v5149_v14, %v2582_v25 }
 0x1c2   : > { %v5089_v41 = vpop.f32.mrb[48].mxu0  ;;  %v7278_v18 = vadd.f32 %v5152_v19, %v2585_v58 }
 0x1c3   : > { %v5090_v37 = vpop.f32.mrb[49].mxu0 }
 0x1c4   : > { %v5091_v54 = vadd.f32 %v5090_v37, %v5089_v41  ;;  %v5092_v23 = vpop.f32.mrb[50].mxu0  ;;  %v5153_v55 = vpop.f32.mrb[48].mxu1 }
 0x1c5   : > { %v5093_v59 = vpop.f32.mrb[51].mxu0  ;;  %v5154_v20 = vpop.f32.mrb[49].mxu1 }
 0x1c6   : > { %v2590_v6 = vadd.f32 %v5091_v54, %v7240_v42  ;;  %v5094_v28 = vadd.f32 %v5093_v59, %v5092_v23  ;;  %v5155_v33 = vadd.f32 %v5154_v20, %v5153_v55  ;;  %v5156_v26 = vpop.f32.mrb[50].mxu1 }
 0x1c7   : > { %v5157_v52 = vpop.f32.mrb[51].mxu1 }
 0x1c8   : > { %v2593_v31 = vadd.f32 %v5094_v28, %v7242_v36  ;;  %v5158_v39 = vadd.f32 %v5157_v52, %v5156_v26  ;;  %v7282_v47 = vadd.f32 %v5155_v33, %v2590_v6 }
 0x1ca   : > { %v5095_v4 = vpop.f32.mrb[52].mxu0  ;;  %v7284_v9 = vadd.f32 %v5158_v39, %v2593_v31 }
 0x1cb   : > { %v5096_v27 = vpop.f32.mrb[53].mxu0 }
 0x1cc   : > { %v5097_v62 = vadd.f32 %v5096_v27, %v5095_v4  ;;  %v5098_v44 = vpop.f32.mrb[54].mxu0  ;;  %v5159_v50 = vpop.f32.mrb[52].mxu1 }
 0x1cd   : > { %v5099_v25 = vpop.f32.mrb[55].mxu0  ;;  %v5160_v3 = vpop.f32.mrb[53].mxu1 }
 0x1ce   : > { %v2598_v42 = vadd.f32 %v5097_v62, %v7244_v38  ;;  %v5100_v14 = vadd.f32 %v5099_v25, %v5098_v44  ;;  %v5161_v49 = vadd.f32 %v5160_v3, %v5159_v50  ;;  %v5162_v57 = vpop.f32.mrb[54].mxu1 }
 0x1cf   : > { %v5163_v58 = vpop.f32.mrb[55].mxu1 }
 0x1d0   : > { %v2601_v36 = vadd.f32 %v5100_v14, %v7246_v61  ;;  %v5164_v19 = vadd.f32 %v5163_v58, %v5162_v57  ;;  %v7288_v41 = vadd.f32 %v5161_v49, %v2598_v42 }
 0x1d2   : > { %v5101_v37 = vpop.f32.mrb[56].mxu0  ;;  %v7290_v54 = vadd.f32 %v5164_v19, %v2601_v36 }
 0x1d3   : > { %v5102_v23 = vpop.f32.mrb[57].mxu0 }
 0x1d4   : > { %v5103_v55 = vadd.f32 %v5102_v23, %v5101_v37  ;;  %v5104_v59 = vpop.f32.mrb[58].mxu0  ;;  %v5165_v20 = vpop.f32.mrb[56].mxu1 }
 0x1d5   : > { %v5105_v6 = vpop.f32.mrb[59].mxu0  ;;  %v5166_v28 = vpop.f32.mrb[57].mxu1 }
 0x1d6   : > { %v2606_v38 = vadd.f32 %v5103_v55, %v7248_v17  ;;  %v5106_v33 = vadd.f32 %v5105_v6, %v5104_v59  ;;  %v5167_v26 = vadd.f32 %v5166_v28, %v5165_v20  ;;  %v5168_v52 = vpop.f32.mrb[58].mxu1  ;;  %v7305_v55 = vld [vmem:[%s8618_s3] ss:$0 sm:$0xff] }
 0x1d7   : > { %v5169_v31 = vpop.f32.mrb[59].mxu1  ;;  %v7313_v6 = vld [vmem:[%s8619_s4] ss:$0 sm:$0xff] }
 0x1d8   : > { %v2609_v61 = vadd.f32 %v5106_v33, %v7250_v10  ;;  %v5170_v39 = vadd.f32 %v5169_v31, %v5168_v52  ;;  %v7294_v4 = vadd.f32 %v5167_v26, %v2606_v38 }
 0x1da   : > { %v5107_v27 = vpop.f32.mrb[60].mxu0  ;;  %v7296_v62 = vadd.f32 %v5170_v39, %v2609_v61 }
 0x1db   : > { %v5108_v44 = vpop.f32.mrb[61].mxu0 }
 0x1dc   : > { %v5109_v50 = vadd.f32 %v5108_v44, %v5107_v27  ;;  %v5110_v25 = vpop.f32.mrb[62].mxu0  ;;  %v5171_v3 = vpop.f32.mrb[60].mxu1 }
 0x1dd   : > { %v5111_v42 = vpop.f32.mrb[63].mxu0  ;;  %v5172_v14 = vpop.f32.mrb[61].mxu1 }
 0x1de   : > { %v2614_v17 = vadd.f32 %v5109_v50, %v7252_v8  ;;  %v5112_v49 = vadd.f32 %v5111_v42, %v5110_v25  ;;  %v5173_v57 = vadd.f32 %v5172_v14, %v5171_v3  ;;  %v5174_v58 = vpop.f32.mrb[62].mxu1 }
 0x1df   : > { %v5175_v36 = vpop.f32.mrb[63].mxu1 }
 0x1e0   : > { %v2617_v10 = vadd.f32 %v5112_v49, %v7254_v21  ;;  %v5176_v19 = vadd.f32 %v5175_v36, %v5174_v58  ;;  %v7300_v37 = vadd.f32 %v5173_v57, %v2614_v17 }
 0x1e2   : > { %v5483_v23 = vpop.f32.mrb[64].mxu0  ;;  %v7307_v59 = vadd.f32 %v5176_v19, %v2617_v10 }
 0x1e3   : > { %v2760_v20 = vadd.f32 %v5483_v23, %v7264_v2  ;;  %v2751_v8 = vpop.f32.mrb[65].mxu0 }
 0x1e4   : > { %v2752_v21 = vadd.f32 %v2751_v8, %v7258_v15  ;;  %v5484_v28 = vpop.f32.mrb[66].mxu0 }
 0x1e5   : > { %v2823_v38 = vmul.f32 %v7305_v55, %v2760_v20  ;;  %v2763_v33 = vadd.f32 %v5484_v28, %v7266_v16  ;;  %v2754_v26 = vpop.f32.mrb[67].mxu0 }
 0x1e6   : > { %v2821_v52 = vmul.f32 %v7305_v55, %v2752_v21  ;;  %v2755_v31 = vadd.f32 %v2754_v26, %v7260_v1 }
 0x1e7   : > { %v2846_v2 = vadd.f32 %v7313_v6, %v2823_v38  ;;  %v2824_v61 = vmul.f32 %v7305_v55, %v2763_v33 }
 0x1e8   : > { %v2844_v39 = vadd.f32 %v7313_v6, %v2821_v52  ;;  %v2822_v27 = vmul.f32 %v7305_v55, %v2755_v31 }
 0x1e9   : > { %v7324_v44 = vmax.f32 %v2846_v2, 0.0  ;;  %v2847_v15 = vadd.f32 %v7313_v6, %v2824_v61 }
 0x1ea   : > { %v7327_v50 = vmax.f32 %v2844_v39, 0.0  ;;  %v2845_v16 = vadd.f32 %v7313_v6, %v2822_v27  ;;  %v5487_v25 = vpop.f32.mrb[68].mxu0 }
 0x1eb   : > { %8967 = vst [vmem:[#allocation39_spill] sm:$0xff] %v7324_v44  ;;  %v7330_v3 = vmax.f32 %v2847_v15, 0.0  ;;  %v2776_v1 = vadd.f32 %v5487_v25, %v7276_v22  ;;  %v2767_v42 = vpop.f32.mrb[69].mxu0  ;;  %v2934_v14 = vrot.slane %v7324_v44, 5  ;;  %v3046_v17 = vrot.slane %v7324_v44, 7 }
 0x1ec   : > { %v7335_v49 = vmax.f32 %v2845_v16, 0.0  ;;  %v2768_v57 = vadd.f32 %v2767_v42, %v7270_v13  ;;  %v5488_v58 = vpop.f32.mrb[70].mxu0  ;;  %v8683_v36 = vrot.slane %v7327_v50, 5  ;;  %v8682_v10 = vrot.slane %v7327_v50, 7 }
 0x1ed   : > { %8968 = vst [vmem:[#allocation40_spill] sm:$0xff] %v7330_v3  ;;  %v2827_v19 = vmul.f32 %v7305_v55, %v2776_v1  ;;  %v2779_v23 = vadd.f32 %v5488_v58, %v7278_v18  ;;  %v2770_v20 = vpop.f32.mrb[71].mxu0  ;;  %v8681_v22 = vrot.slane %v7327_v50, 4  ;;  %v8680_v8 = vrot.slane %v7327_v50, 6 }
 0x1ee   : > { %8969 = vst [vmem:[#allocation41_spill] sm:$0xff] %v7335_v49  ;;  %v2825_v21 = vmul.f32 %v7305_v55, %v2768_v57  ;;  %v2771_v28 = vadd.f32 %v2770_v20, %v7272_v29  ;;  %v2933_v13 = vrot.slane %v7335_v49, 5  ;;  %v3045_v38 = vrot.slane %v7335_v49, 7 }
 0x1ef   : > { %v2850_v33 = vadd.f32 %v7313_v6, %v2827_v19  ;;  %v2828_v26 = vmul.f32 %v7305_v55, %v2779_v23  ;;  %v2877_v52 = vrot.slane %v7335_v49, 4  ;;  %v2989_v18 = vrot.slane %v7335_v49, 6 }
 0x1f0   : > { %v2848_v31 = vadd.f32 %v7313_v6, %v2825_v21  ;;  %v2826_v2 = vmul.f32 %v7305_v55, %v2771_v28  ;;  %v7358_v29 = vsel %vm8970_vm15, %v8683_v36, %v2933_v13  ;;  %v7364_v61 = vsel %vm8971_vm7, %v8682_v10, %v3045_v38 }
 0x1f1   : > { %v7366_v39 = vmax.f32 %v2850_v33, 0.0  ;;  %v2851_v27 = vadd.f32 %v7313_v6, %v2828_v26  ;;  %v7373_v15 = vsel %vm8973_vm3, %v8681_v22, %v2877_v52  ;;  %vm8975_vm15 = vcmp.lt.s32.totalorder %v6168_v12, 2 }
 0x1f2   : > { %8974 = vst [vmem:[#allocation43_spill] sm:$0xff] %v7373_v15  ;;  %v7379_v16 = vsel %vm8975_vm15, %v8680_v8, %v2989_v18  ;;  %v7381_v25 = vmax.f32 %v2848_v31, 0.0  ;;  %v2849_v1 = vadd.f32 %v7313_v6, %v2826_v2  ;;  %v5491_v42 = vpop.f32.mrb[72].mxu0  ;;  %v2935_v57 = vrot.slane %v7330_v3, 5 }
 0x1f3   : > { %8972 = vst [vmem:[#allocation42_spill] sm:$0xff] %v7366_v39  ;;  %vm8977_vm7 = vcmp.lt.s32.totalorder %v6168_v12, 3  ;;  %v7389_v19 = vmax.f32 %v2851_v27, 0.0  ;;  %v2792_v23 = vadd.f32 %v5491_v42, %v7288_v41  ;;  %v2783_v20 = vpop.f32.mrb[73].mxu0  ;;  %v3047_v21 = vrot.slane %v7330_v3, 7 }
 0x1f4   : > { %8976 = vst [vmem:[#allocation44_spill] sm:$0xff] %v7381_v25  ;;  %v7387_v58 = vsel %vm8977_vm7, %v2933_v13, %v2934_v14  ;;  %vm8979_vm3 = vcmp.lt.s32.totalorder %v6168_v12, 1  ;;  %v7397_v33 = vmax.f32 %v2849_v1, 0.0  ;;  %v2784_v26 = vadd.f32 %v2783_v20, %v7282_v47  ;;  %v5492_v31 = vpop.f32.mrb[74].mxu0  ;;  %vm8980_vm15 = vmmov %vm8977_vm7 }
 0x1f5   : > { %8978 = vst [vmem:[#allocation45_spill] sm:$0xff] %v7389_v19  ;;  %v7395_v28 = vsel %vm8979_vm3, %v3045_v38, %v3046_v17  ;;  %v7402_v13 = vsel %vm8980_vm15, %v2934_v14, %v2935_v57  ;;  %v2878_v2 = vrot.slane %v7324_v44, 4  ;;  %v2831_v41 = vmul.f32 %v7305_v55, %v2792_v23  ;;  %v2786_v42 = vpop.f32.mrb[75].mxu0  ;;  %vm8981_vm7 = vmmov %vm8979_vm3 }
 0x1f6   : > { %v2795_v27 = vadd.f32 %v5492_v31, %v7290_v54  ;;  %v7411_v1 = vsel %vm8981_vm7, %v3046_v17, %v3047_v21  ;;  %v2829_v47 = vmul.f32 %v7305_v55, %v2784_v26  ;;  %v2787_v20 = vadd.f32 %v2786_v42, %v7284_v9 }
 0x1f7   : > { %v2879_v8 = vrot.slane %v7330_v3, 4  ;;  %v2854_v23 = vadd.f32 %v7313_v6, %v2831_v41  ;;  %v2880_v31 = vrot.slane %v7381_v25, 4  ;;  %vm8982_vm3 = vcmp.lt.s32.totalorder %v6168_v12, 4 }
 0x1f8   : > { %v2832_v54 = vmul.f32 %v7305_v55, %v2795_v27  ;;  %v7423_v38 = vsel %vm8982_vm3, %v2877_v52, %v2878_v2  ;;  %v2852_v17 = vadd.f32 %v7313_v6, %v2829_v47  ;;  %v2830_v26 = vmul.f32 %v7305_v55, %v2787_v20  ;;  %vm8984_vm15 = vmmov %vm8982_vm3 }
 0x1f9   : > { %8983 = vst [vmem:[#allocation46_spill] sm:$0xff] %v7423_v38  ;;  %v7429_v9 = vsel %vm8984_vm15, %v2878_v2, %v2879_v8  ;;  %v2990_v42 = vrot.slane %v7324_v44, 6  ;;  %v7432_v14 = vmax.f32 %v2854_v23, 0.0  ;;  %vm8987_vm7 = vmmov %vm8982_vm3  ;;  %v2991_v23 = vrot.slane %v7330_v3, 6 }
 0x1fa   : > { %8985 = vst [vmem:[#allocation47_spill] sm:$0xff] %v7429_v9  ;;  %v2855_v41 = vadd.f32 %v7313_v6, %v2832_v54  ;;  %v7437_v27 = vsel %vm8987_vm7, %v2879_v8, %v2880_v31  ;;  %v7441_v47 = vmax.f32 %v2852_v17, 0.0  ;;  %v2853_v20 = vadd.f32 %v7313_v6, %v2830_v26  ;;  %v5495_v22 = vpop.f32.mrb[76].mxu0 }
 0x1fb   : > { %8986 = vst [vmem:[#allocation48_spill] sm:$0xff] %v7432_v14  ;;  %8988 = vst [vmem:[#allocation49_spill] sm:$0xff] %v7437_v27  ;;  %v2808_v54 = vadd.f32 %v5495_v22, %v7300_v37  ;;  %v2799_v36 = vpop.f32.mrb[77].mxu0  ;;  %vm8991_vm3 = vcmp.lt.s32.totalorder %v6168_v12, 2  ;;  %v2936_v17 = vrot.slane %v7381_v25, 5  ;;  %vm8994_vm7 = vcmp.lt.s32.totalorder %v6168_v12, 3 }
 0x1fc   : > { %8989 = vst [vmem:[#allocation50_spill] sm:$0xff] %v7441_v47  ;;  %v7447_v10 = vmax.f32 %v2855_v41, 0.0  ;;  %v7452_v8 = vsel %vm8991_vm3, %v2989_v18, %v2990_v42  ;;  %v7455_v52 = vmax.f32 %v2853_v20, 0.0  ;;  %v2800_v26 = vadd.f32 %v2799_v36, %v7294_v4  ;;  %v5496_v45 = vpop.f32.mrb[78].mxu0  ;;  %vm8993_vm15 = vmmov %vm8991_vm3 }
 0x1fd   : > { %v7460_v2 = vsel %vm8993_vm15, %v2990_v42, %v2991_v23  ;;  %v2937_v41 = vrot.slane %v7397_v33, 5  ;;  %v2835_v37 = vmul.f32 %v7305_v55, %v2808_v54  ;;  %v2811_v22 = vadd.f32 %v5496_v45, %v7307_v59  ;;  %v2802_v53 = vpop.f32.mrb[79].mxu0  ;;  %vm8995_vm3 = vmmov %vm8994_vm7 }
 0x1fe   : > { %8990 = vst [vmem:[#allocation51_spill] sm:$0xff] %v7447_v10  ;;  %8992 = vst [vmem:[#allocation52_spill] sm:$0xff] %v7455_v52  ;;  %v7469_v20 = vsel %vm8994_vm7, %v2935_v57, %v2936_v17  ;;  %v2833_v4 = vmul.f32 %v7305_v55, %v2800_v26  ;;  %v2803_v36 = vadd.f32 %v2802_v53, %v7296_v62  ;;  %v3048_v54 = vrot.slane %v7381_v25, 7 }
 0x1ff   : > { %v7475_v42 = vsel %vm8995_vm3, %v2936_v17, %v2937_v41  ;;  %v2858_v45 = vadd.f32 %v7313_v6, %v2835_v37  ;;  %v2836_v59 = vmul.f32 %v7305_v55, %v2811_v22  ;;  %v3049_v57 = vrot.slane %v7397_v33, 7 }
 0x200   : > { %v2856_v40 = vadd.f32 %v7313_v6, %v2833_v4  ;;  %v2834_v26 = vmul.f32 %v7305_v55, %v2803_v36  ;;  %vm8996_vm15 = vcmp.lt.s32.totalorder %v6168_v12, 1  ;;  %v2881_v62 = vrot.slane %v7397_v33, 4 }
 0x201   : > { %v7487_v53 = vsel %vm8996_vm15, %v3047_v21, %v3048_v54  ;;  %v7490_v17 = vmax.f32 %v2858_v45, 0.0  ;;  %v2859_v37 = vadd.f32 %v7313_v6, %v2836_v59  ;;  %vm8997_vm7 = vmmov %vm8996_vm15  ;;  %v2992_v18 = vrot.slane %v7381_v25, 6 }
 0x202   : > { %v7495_v22 = vsel %vm8997_vm7, %v3048_v54, %v3049_v57  ;;  %v7498_v46 = vmax.f32 %v2856_v40, 0.0  ;;  %v2857_v55 = vadd.f32 %v7313_v6, %v2834_v26  ;;  %vm8999_vm3 = vcmp.lt.s32.totalorder %v6168_v12, 4 }
 0x203   : > { %v7505_v4 = vsel %vm8999_vm3, %v2880_v31, %v2881_v62  ;;  %v7507_v36 = vmax.f32 %v2859_v37, 0.0  ;;  %v2993_v54 = vrot.slane %v7397_v33, 6  ;;  %vm9000_vm15 = vcmp.lt.s32.totalorder %v6168_v12, 2 }
 0x204   : > { %8998 = vst [vmem:[#allocation53_spill] sm:$0xff] %v7498_v46  ;;  %v7514_v40 = vsel %vm9000_vm15, %v2991_v23, %v2992_v18  ;;  %v7516_v59 = vmax.f32 %v2857_v55, 0.0  ;;  %v2938_v6 = vrot.slane %v7366_v39, 5  ;;  %v2939_v26 = vrot.slane %v7389_v19, 5  ;;  %vm9002_vm7 = vmmov %vm9000_vm15 }
 0x205   : > { %v3050_v31 = vrot.slane %v7366_v39, 7  ;;  %v7527_v23 = vsel %vm9002_vm7, %v2992_v18, %v2993_v54  ;;  %vm9003_vm3 = vcmp.lt.s32.totalorder %v6168_v12, 3  ;;  %v3051_v37 = vrot.slane %v7389_v19, 7 }
 0x206   : > { %9001 = vst [vmem:[#allocation54_spill] sm:$0xff] %v7516_v59  ;;  %v7531_v55 = vsel %vm9003_vm3, %v2938_v6, %v2939_v26  ;;  %vm9004_vm15 = vmmov %vm9003_vm3  ;;  %v9005_v21 = vrot.slane %v7327_v50, 5  ;;  %v9006_v45 = vrot.slane %v7507_v36, 5  ;;  %v9008_v18 = vrot.slane %v7327_v50, 7 }
 0x207   : > { %v7535_v34 = vsel %vm9004_vm15, %v2937_v41, %v2938_v6  ;;  %vm9007_vm0 = vmmov %vm9003_vm3  ;;  %v9009_v43 = vrot.slane %v7507_v36, 7  ;;  %vm9010_vm7 = vcmp.lt.s32.totalorder %v6168_v12, 1  ;;  %v9011_v51 = vrot.slane %v7327_v50, 4 }
 0x208   : > { %v2963_v30 = vsel %vm9007_vm0, %v9006_v45, %v9005_v21  ;;  %v9012_v41 = vrot.slane %v7507_v36, 4  ;;  %vm9013_vm3 = vcmp.lt.s32.totalorder %v6168_v12, 4  ;;  %v9015_v48 = vrot.slane %v7327_v50, 6  ;;  %vm9018_vm15 = vmmov %vm9010_vm7 }
 0x209   : > { %v3075_v5 = vsel %vm9010_vm7, %v9009_v43, %v9008_v18  ;;  %v9016_v32 = vrot.slane %v7507_v36, 6  ;;  %vm9017_vm0 = vcmp.lt.s32.totalorder %v6168_v12, 2  ;;  %v4817_v45 = vpack.c.bf16 %v7358_v29, %v2963_v30 }
 0x20a   : > { %v7556_v6 = vsel %vm9013_vm3, %v9012_v41, %v9011_v51  ;;  %v4841_v35 = vpack.c.bf16 %v7364_v61, %v3075_v5  ;;  %v7575_v0 = vsel %vm9018_vm15, %v3050_v31, %v3051_v37  ;;  %v2882_v30 = vrot.slane %v7366_v39, 4  ;;  %v5720_v5 = vld [vmem:[#allocation7 + $0x188] sm:$0xff]   ;;  %v5713_v41 = vld [vmem:[#allocation7 + $0x158] sm:$0xff]  }
 0x20b   : > { %9014 = vst [vmem:[#allocation55_spill] sm:$0xff] %v7556_v6  ;;  %v3019_v21 = vsel %vm9017_vm0, %v9016_v32, %v9015_v48  ;;  %v4820_v43 = vpack.c.bf16 %v7373_v15, %v7556_v6  ;;  %v7579_v32 = vsel %vm9010_vm7, %v3049_v57, %v3050_v31  ;;  %4818 = vmatprep.mubr.msk.bf16.mxu1 %vm6217_vm9, %v4817_v45  ;;  %v5709_v48 = vld [vmem:[#allocation7 + $0x148] sm:$0xff]   ;;  %v2883_v29 = vrot.slane %v7389_v19, 4  ;;  %vm9021_vm9 = vmmov %vm9013_vm3 }
 0x20c   : > { %v4844_v18 = vpack.c.bf16 %v7379_v16, %v3019_v21  ;;  %4842 = vmatprep.mubr.msk.bf16.mxu0 %vm6234_vm10, %v4841_v35  ;;  %v2884_v61 = vrot.slane %v7441_v47, 4  ;;  %v5716_v16 = vld [vmem:[#allocation7 + $0x180] sm:$0xff]   ;;  %v2994_v56 = vrot.slane %v7366_v39, 6  ;;  %v2995_v63 = vrot.slane %v7389_v19, 6  ;;  %v5719_v31 = vld [vmem:[#allocation7 + $0x1c8] sm:$0xff]   ;;  %vm9023_vm10 = vmmov %vm9013_vm3 }
 0x20d   : > { %4821 = vmatmul.mubr.msk.bf16.vlgmr.msra.gmra.mrb[64].mxu1 %vm6254_vm12, %v4820_v43  ;;  %v2940_v35 = vrot.slane %v7441_v47, 5  ;;  %v2941_v57 = vrot.slane %v7455_v52, 5  ;;  %v9019_v21 = vpack.c.bf16 %v7402_v13, %v7387_v58  ;;  %v9020_v7 = vpack.c.bf16 %v7411_v1, %v7395_v28  ;;  %vm9025_vm12 = vmmov %vm9013_vm3  ;;  %v5710_v58 = vld [vmem:[#allocation7 + $0x108] sm:$0xff]  }
 0x20e   : > { %4845 = vmatmul.mubr.msk.bf16.vlgmr.msra.gmra.mrb[80].mxu0 %vm6294_vm14, %v4844_v18  ;;  %v7606_v24 = vsel %vm9021_vm9, %v2883_v29, %v2884_v61  ;;  %v7610_v45 = vsel %vm9023_vm10, %v2882_v30, %v2883_v29  ;;  %v7614_v43 = vsel %vm9025_vm12, %v2881_v62, %v2882_v30  ;;  %v3052_v18 = vrot.slane %v7441_v47, 7  ;;  %5322 = vmatpush3.bf16.msra.mxu1 %v5708_v60  ;;  %vm9026_vm14 = vmmov %vm9017_vm0  ;;  %v5711_v62 = vld [vmem:[#allocation7 + $0x150] sm:$0xff]  }
 0x20f   : > { %3916 = vmatprep.mubr.bf16.mxu1 %v9019_v21  ;;  %4013 = vmatprep.mubr.bf16.mxu0 %v9020_v7  ;;  %9022 = vst [vmem:[#allocation56_spill] sm:$0xff] %v7606_v24  ;;  %9024 = vst [vmem:[#allocation57_spill] sm:$0xff] %v7610_v45  ;;  %v7623_v1 = vsel %vm9026_vm14, %v2994_v56, %v2995_v63  ;;  %v3053_v7 = vrot.slane %v7455_v52, 7  ;;  %v2996_v13 = vrot.slane %v7441_v47, 6  ;;  %v3055_v15 = vrot.slane %v7447_v10, 7 }
 0x210   : > { %vm9027_vm3 = vmmov %vm9017_vm0  ;;  %5323 = vmatprep.subr.bf16.mxu1 %v5709_v48  ;;  %vm9028_vm0 = vcmp.lt.s32.totalorder %v6168_v12, 3  ;;  %5386 = vmatpush3.bf16.msra.mxu0 %v5716_v16  ;;  %v7644_v48 = vsel %vm9010_vm7, %v3051_v37, %v3052_v18  ;;  %v2942_v16 = vrot.slane %v7432_v14, 5  ;;  %v9034_v37 = vpack.c.bf16 %v7429_v9, %v7423_v38  ;;  %v5714_v9 = vld [vmem:[#allocation7 + $0x118] sm:$0xff]  }
 0x211   : > { %v7627_v29 = vsel %vm9027_vm3, %v2993_v54, %v2994_v56  ;;  %v7633_v30 = vsel %vm9028_vm0, %v2940_v35, %v2941_v57  ;;  %vm9029_vm15 = vmmov %vm9028_vm0  ;;  %v2885_v56 = vrot.slane %v7455_v52, 4  ;;  %5387 = vmatprep.subr.bf16.mxu0 %v5719_v31  ;;  %v5712_v54 = vld [vmem:[#allocation7 + $0x110] sm:$0xff]   ;;  %v3056_v38 = vrot.slane %v7498_v46, 7 }
 0x212   : > { %v7637_v21 = vsel %vm9029_vm15, %v2939_v26, %v2940_v35  ;;  %vm9030_vm9 = vmmov %vm9010_vm7  ;;  %v2997_v26 = vrot.slane %v7455_v52, 6  ;;  %v2943_v35 = vrot.slane %v7447_v10, 5  ;;  %5324 = vmatpush3.bf16.msra.mxu1 %v5710_v58  ;;  %v2887_v58 = vrot.slane %v7447_v10, 4 }
 0x213   : > { %v7650_v60 = vsel %vm9030_vm9, %v3052_v18, %v3053_v7  ;;  %v7659_v28 = vsel %vm9023_vm10, %v2884_v61, %v2885_v56  ;;  %vm9031_vm12 = vmmov %vm9027_vm3  ;;  %v3054_v18 = vrot.slane %v7432_v14, 7  ;;  %5325 = vmatprep.subr.bf16.mxu1 %v5711_v62  ;;  %v9035_v62 = vpack.c.bf16 %v7460_v2, %v7452_v8  ;;  %v5725_v8 = vld [vmem:[#allocation7 + $0x1d8] sm:$0xff]  }
 0x214   : > { %v7663_v31 = vsel %vm9031_vm12, %v2995_v63, %v2996_v13  ;;  %vm9032_vm14 = vmmov %vm9027_vm3  ;;  %v7678_v63 = vsel %vm9028_vm0, %v2941_v57, %v2942_v16  ;;  %v9038_v2 = vpack.c.bf16 %v7495_v22, %v7487_v53  ;;  %5388 = vmatpush3.bf16.msra.mxu0 %v5720_v5  ;;  %v2945_v53 = vrot.slane %v7516_v59, 5  ;;  %v5724_v22 = vld [vmem:[#allocation7 + $0x190] sm:$0xff]  }
 0x215   : > { %v7670_v51 = vsel %vm9032_vm14, %v2996_v13, %v2997_v26  ;;  %vm9033_vm3 = vmmov %vm9028_vm0  ;;  %3917 = vmatmul.mubr.bf16.gmra.mrb[68].mxu1 %v9034_v37  ;;  %v9037_v37 = vpack.c.bf16 %v7475_v42, %v7469_v20  ;;  %v2998_v13 = vrot.slane %v7432_v14, 6  ;;  %v7711_v11 = vsel %vm9010_vm7, %v3054_v18, %v3055_v15 }
 0x216   : > { %v7674_v61 = vsel %vm9033_vm3, %v2942_v16, %v2943_v35  ;;  %4014 = vmatmul.mubr.bf16.gmra.mrb[84].mxu0 %v9035_v62  ;;  %vm9036_vm15 = vmmov %vm9010_vm7  ;;  %v5722_v16 = vld [vmem:[#allocation7 + $0x1d0] sm:$0xff]   ;;  %v2886_v62 = vrot.slane %v7432_v14, 4  ;;  %5326 = vmatpush3.bf16.msra.mxu1 %v5712_v54  ;;  %v2999_v20 = vrot.slane %v7447_v10, 6  ;;  %v2944_v42 = vrot.slane %v7498_v46, 5 }
 0x217   : > { %v7693_v57 = vsel %vm9036_vm15, %v3053_v7, %v3054_v18  ;;  %4824 = vmatprep.mubr.msk.bf16.mxu1 %vm6357_vm4, %v9037_v37  ;;  %4848 = vmatprep.mubr.msk.bf16.mxu0 %vm6369_vm5, %v9038_v2  ;;  %v2888_v7 = vrot.slane %v7498_v46, 4  ;;  %v5717_v37 = vld [vmem:[#allocation7 + $0x160] sm:$0xff]   ;;  %vm9040_vm4 = vmmov %vm9023_vm10 }
 0x218   : > { %5327 = vmatprep.subr.bf16.mxu1 %v5713_v41  ;;  %vm9041_vm5 = vmmov %vm9040_vm4  ;;  %5389 = vmatprep.subr.bf16.mxu0 %v5722_v16  ;;  %v5718_v41 = vld [vmem:[#allocation7 + $0x120] sm:$0xff]   ;;  %v5726_v16 = vld [vmem:[#allocation7 + $0x198] sm:$0xff]  }
 0x219   : > { %v7720_v54 = vsel %vm9040_vm4, %v2887_v58, %v2888_v7  ;;  %v7724_v18 = vsel %vm9041_vm5, %v2886_v62, %v2887_v58  ;;  %vm9043_vm9 = vmmov %vm9040_vm4  ;;  %5390 = vmatpush3.bf16.msra.mxu0 %v5724_v22  ;;  %v9053_v22 = vpack.c.bf16 %v7505_v4, %v7437_v27 }
 0x21a   : > { %9042 = vst [vmem:[#allocation12_spill] sm:$0xff] %v7724_v18  ;;  %v7728_v5 = vsel %vm9043_vm9, %v2885_v56, %v2886_v62  ;;  %vm9044_vm10 = vmmov %vm9031_vm12  ;;  %5328 = vmatpush3.bf16.msra.mxu1 %v5714_v9  ;;  %v2889_v56 = vrot.slane %v7516_v59, 4  ;;  %5391 = vmatprep.subr.bf16.mxu0 %v5725_v8  ;;  %v3001_v9 = vrot.slane %v7516_v59, 6 }
 0x21b   : > { %v7736_v2 = vsel %vm9044_vm10, %v2998_v13, %v2999_v20  ;;  %vm9046_vm12 = vmmov %vm9044_vm10  ;;  %5329 = vmatprep.subr.bf16.mxu1 %v5717_v37  ;;  %v9055_v37 = vpack.c.bf16 %v7527_v23, %v7514_v40  ;;  %v9060_v40 = vpack.c.bf16 %v7531_v55, %v7535_v34  ;;  %v9072_v34 = vrot.slane %v7507_v36, 6 }
 0x21c   : > { %9045 = vst [vmem:[#allocation58_spill] sm:$0xff] %v7736_v2  ;;  %v7740_v10 = vsel %vm9046_vm12, %v2997_v26, %v2998_v13  ;;  %vm9048_vm14 = vmmov %vm9028_vm0  ;;  %v3057_v13 = vrot.slane %v7516_v59, 7  ;;  %v5721_v2 = vld [vmem:[#allocation7 + $0x168] sm:$0xff]   ;;  %v2946_v26 = vrot.slane %v7490_v17, 5  ;;  %v3110_v23 = vrot.slane %v7324_v44, 1 }
 0x21d   : > { %9047 = vst [vmem:[#allocation59_spill] sm:$0xff] %v7740_v10  ;;  %v7746_v58 = vsel %vm9048_vm14, %v2944_v42, %v2945_v53  ;;  %vm9050_vm3 = vmmov %vm9028_vm0  ;;  %v3000_v10 = vrot.slane %v7498_v46, 6  ;;  %4827 = vmatmul.mubr.msk.bf16.gmra.mrb[72].mxu1 %vm6426_vm11, %v9053_v22  ;;  %v9061_v46 = vpack.c.bf16 %v7575_v0, %v7579_v32  ;;  %v5723_v22 = vld [vmem:[#allocation7 + $0x128] sm:$0xff]   ;;  %5392 = vmatpush3.bf16.msra.mxu0 %v5726_v16  ;;  %v9063_v0 = vrot.slane %v7507_v36, 5 }
 0x21e   : > { %9049 = vst [vmem:[#allocation60_spill] sm:$0xff] %v7746_v58  ;;  %v7750_v62 = vsel %vm9050_vm3, %v2943_v35, %v2944_v42  ;;  %vm9052_vm0 = vmmov %vm9010_vm7  ;;  %v5728_v42 = vld [vmem:[#allocation7 + $0x1e0] sm:$0xff]   ;;  %4851 = vmatmul.mubr.msk.bf16.gmra.mrb[88].mxu0 %vm6447_vm13, %v9055_v37  ;;  %v2890_v58 = vrot.slane %v7490_v17, 4  ;;  %3932 = vmatprep.mubr.bf16.mxu1 %v9060_v40  ;;  %v8711_v37 = vrot.slane %v7327_v50, 1  ;;  %v9066_v40 = vrot.slane %v7507_v36, 7 }
 0x21f   : > { %9051 = vst [vmem:[#allocation61_spill] sm:$0xff] %v7750_v62  ;;  %v7760_v35 = vsel %vm9052_vm0, %v3055_v15, %v3056_v38  ;;  %v3058_v62 = vrot.slane %v7490_v17, 7  ;;  %vm9057_vm15 = vmmov %vm9052_vm0  ;;  %4029 = vmatprep.mubr.bf16.mxu0 %v9061_v46  ;;  %5330 = vmatpush3.bf16.msra.mxu1 %v5718_v41  ;;  %v5727_v41 = vld [vmem:[#allocation7 + $0x170] sm:$0xff]  }
 0x220   : > { %v7777_v15 = vsel %vm9057_vm15, %v3056_v38, %v3057_v13  ;;  %vm9058_vm7 = vmmov %vm9040_vm4  ;;  %5331 = vmatprep.subr.bf16.mxu1 %v5721_v2  ;;  %5393 = vmatprep.subr.bf16.mxu0 %v5728_v42  ;;  %v9069_v42 = vrot.slane %v7507_v36, 4  ;;  %vm9075_vm15 = vcmp.lt.s32.totalorder %v6168_v12, 7  ;;  %v9077_v2 = vpack.c.bf16 %v7610_v45, %v7614_v43  ;;  %v9082_v45 = vld [vmem:[#allocation15_spill] sm:$0xff] }
 0x221   : > { %v7781_v8 = vsel %vm9058_vm7, %v2888_v7, %v2889_v56  ;;  %vm9059_vm4 = vmmov %vm9044_vm10  ;;  %v3165_v38 = vrot.slane %v7335_v49, 2 }
 0x222   : > { %v7785_v27 = vsel %vm9059_vm4, %v2999_v20, %v3000_v10  ;;  %vm9062_vm11 = vmmov %vm9059_vm4  ;;  %v3002_v20 = vrot.slane %v7490_v17, 6 }
 0x223   : > { %v7800_v7 = vsel %vm9062_vm11, %v3000_v10, %v3001_v9  ;;  %vm9064_vm13 = vmmov %vm9050_vm3  ;;  %v5730_v10 = vld [vmem:[#allocation7 + $0x1a0] sm:$0xff]   ;;  %5332 = vmatpush3.bf16.msra.mxu1 %v5723_v22  ;;  %v5734_v22 = vld [vmem:[#allocation7 + $0x1f0] sm:$0xff]   ;;  %vm9083_vm11 = vnez %v9082_v45 }
 0x224   : > { %v7809_v55 = vsel %vm9064_vm13, %v2946_v26, %v9063_v0  ;;  %vm9065_vm5 = vmmov %vm9050_vm3  ;;  %5394 = vmatpush3.bf16.msra.mxu0 %v5730_v10  ;;  %5333 = vmatprep.subr.bf16.mxu1 %v5727_v41  ;;  %v9078_v41 = vpack.c.bf16 %v7623_v1, %v7627_v29  ;;  %v9084_v1 = vpack.c.bf16 %v7650_v60, %v7644_v48  ;;  %v9085_v29 = vld [vmem:[#allocation16_spill] sm:$0xff]  ;;  %v5735_v45 = vld [vmem:[#allocation7 + $0x138] sm:$0xff]   ;;  %v9089_v48 = vrot.slane %v7327_v50, 2 }
 0x225   : > { %v7813_v32 = vsel %vm9065_vm5, %v2945_v53, %v2946_v26  ;;  %vm9067_vm9 = vmmov %vm9052_vm0  ;;  %v5731_v53 = vld [vmem:[#allocation7 + $0x1e8] sm:$0xff]   ;;  %v3109_v26 = vrot.slane %v7335_v49, 1  ;;  %3933 = vmatmul.mubr.bf16.gmra.mrb[76].mxu1 %v9077_v2  ;;  %v9081_v2 = vpack.c.bf16 %v7633_v30, %v7637_v21  ;;  %vm9086_vm13 = vnez %v9085_v29  ;;  %v5736_v30 = vld [vmem:[#allocation7 + $0x1b0] sm:$0xff]  }
 0x226   : > { %v7822_v46 = vsel %vm9067_vm9, %v3058_v62, %v9066_v40  ;;  %vm9068_vm10 = vmmov %vm9052_vm0  ;;  %5395 = vmatprep.subr.bf16.mxu0 %v5731_v53  ;;  %4030 = vmatmul.mubr.bf16.gmra.mrb[92].mxu0 %v9078_v41  ;;  %v3112_v53 = vrot.slane %v7381_v25, 1  ;;  %vm9088_vm9 = vcmp.lt.s32.totalorder %v6168_v12, 6 }
 0x227   : > { %v7826_v0 = vsel %vm9068_vm10, %v3057_v13, %v3058_v62  ;;  %vm9070_vm12 = vmmov %vm9058_vm7  ;;  %v7862_v13 = vsel %vm9075_vm15, %v8711_v37, %v3109_v26  ;;  %v3166_v37 = vrot.slane %v7324_v44, 2  ;;  %4830 = vmatprep.mubr.msk.bf16.mxu1 %vm9083_vm11, %v9081_v2  ;;  %4854 = vmatprep.mubr.msk.bf16.mxu0 %vm9086_vm13, %v9084_v1  ;;  %v3224_v2 = vrot.slane %v7381_v25, 3  ;;  %v7922_v1 = vld [vmem:[#allocation7 + $0x200] sm:$0xff]  }
 0x228   : > { %v7835_v16 = vsel %vm9070_vm12, %v2890_v58, %v9069_v42  ;;  %vm9071_vm14 = vmmov %vm9058_vm7 }
 0x229   : > { %v7839_v40 = vsel %vm9071_vm14, %v2889_v56, %v2890_v58  ;;  %vm9073_vm3 = vmmov %vm9059_vm4  ;;  %v5729_v56 = vld [vmem:[#allocation7 + $0x130] sm:$0xff]   ;;  %v5732_v58 = vld [vmem:[#allocation7 + $0x1a8] sm:$0xff]   ;;  %vm9080_vm4 = vcmp.lt.s32.totalorder %v6168_v12, 5  ;;  %v7911_v21 = vsel %vm9088_vm9, %v3165_v38, %v3166_v37 }
 0x22a   : > { %v7845_v62 = vsel %vm9073_vm3, %v3002_v20, %v9072_v34  ;;  %vm9074_vm0 = vmmov %vm9073_vm3  ;;  %v3222_v34 = vrot.slane %v7324_v44, 3  ;;  %5334 = vmatpush3.bf16.msra.mxu1 %v5729_v56  ;;  %5396 = vmatpush3.bf16.msra.mxu0 %v5732_v58  ;;  %v5737_v56 = vld [vmem:[#allocation7 + $0x1f8] sm:$0xff]   ;;  %v3226_v58 = vrot.slane %v7366_v39, 3  ;;  %v3170_v44 = vrot.slane %v7366_v39, 2  ;;  %v9176_v12 = vld [vmem:[#allocation41_spill] sm:$0xff] }
 0x22b   : > { %v7853_v42 = vsel %vm9074_vm0, %v3001_v9, %v3002_v20  ;;  %v3221_v9 = vrot.slane %v7335_v49, 3  ;;  %v5733_v20 = vld [vmem:[#allocation7 + $0x178] sm:$0xff]   ;;  %vm9076_vm7 = vmmov %vm9075_vm15  ;;  %v3223_v49 = vrot.slane %v7330_v3, 3  ;;  %5397 = vmatprep.subr.bf16.mxu0 %v5734_v22 }
 0x22c   : > { %v7868_v10 = vsel %vm9076_vm7, %v3109_v26, %v3110_v23  ;;  %v9079_v26 = vrot.slane %v7327_v50, 3  ;;  %vm9087_vm5 = vmmov %vm9080_vm4  ;;  %5335 = vmatprep.subr.bf16.mxu1 %v5733_v20  ;;  %v3113_v20 = vrot.slane %v7397_v33, 1 }
 0x22d   : > { %v7902_v41 = vsel %vm9087_vm5, %v3221_v9, %v3222_v34  ;;  %vm9090_vm10 = vmmov %vm9088_vm9 }
 0x22e   : > { %v7886_v6 = vsel %vm9080_vm4, %v9079_v26, %v3221_v9  ;;  %v3111_v26 = vrot.slane %v7330_v3, 1  ;;  %v7917_v9 = vsel %vm9090_vm10, %v9089_v48, %v3165_v38  ;;  %vm9092_vm12 = vmmov %vm9076_vm7  ;;  %v3167_v38 = vrot.slane %v7330_v3, 2  ;;  %5336 = vmatpush3.bf16.msra.mxu1 %v5735_v45  ;;  %5398 = vmatpush3.bf16.msra.mxu0 %v5736_v30 }
 0x22f   : > { %9091 = vst [vmem:[#allocation13_spill] sm:$0xff] %v7917_v9  ;;  %vm9093_vm14 = vmmov %vm9076_vm7  ;;  %5399 = vmatprep.subr.bf16.mxu0 %v5737_v56  ;;  %5497 = vmatprep.subr.bf16.mxu1 %v7922_v1  ;;  %v3169_v30 = vrot.slane %v7397_v33, 2  ;;  %v9101_v3 = vpack.c.bf16 %v7659_v28, %v7606_v24  ;;  %v9104_v56 = vpack.c.bf16 %v7670_v51, %v7663_v31 }
 0x230   : > { %v7926_v29 = vsel %vm9092_vm12, %v3111_v26, %v3112_v53  ;;  %v7930_v60 = vsel %vm9093_vm14, %v3110_v23, %v3111_v26  ;;  %vm9095_vm3 = vmmov %vm9080_vm4  ;;  %v3168_v26 = vrot.slane %v7381_v25, 2  ;;  %v9105_v23 = vld [vmem:[#allocation18_spill] sm:$0xff]  ;;  %v9110_v51 = vpack.c.bf16 %v7711_v11, %v7693_v57 }
 0x231   : > { %9094 = vst [vmem:[#allocation14_spill] sm:$0xff] %v7930_v60  ;;  %v7937_v22 = vsel %vm9095_vm3, %v3223_v49, %v3224_v2  ;;  %vm9096_vm0 = vmmov %vm9095_vm3  ;;  %v5738_v60 = vld [vmem:[#allocation7 + $0x1b8] sm:$0xff]   ;;  %vm9106_vm13 = vnez %v9105_v23  ;;  %v3227_v11 = vrot.slane %v7389_v19, 3 }
 0x232   : > { %v7941_v48 = vsel %vm9096_vm0, %v3222_v34, %v3223_v49  ;;  %vm9098_vm15 = vmmov %vm9088_vm9  ;;  %v3114_v49 = vrot.slane %v7366_v39, 1  ;;  %v3225_v34 = vrot.slane %v7397_v33, 3  ;;  %4857 = vmatmul.mubr.msk.bf16.gmra.mrb[96].mxu0 %vm9106_vm13, %v9104_v56  ;;  %v3116_v56 = vrot.slane %v7441_v47, 1 }
 0x233   : > { %9097 = vst [vmem:[#allocation15_spill] sm:$0xff] %v7941_v48  ;;  %v7950_v9 = vsel %vm9098_vm15, %v3166_v37, %v3167_v38  ;;  %vm9099_vm7 = vmmov %vm9088_vm9  ;;  %v9102_v48 = vld [vmem:[#allocation17_spill] sm:$0xff]  ;;  %4045 = vmatprep.mubr.bf16.mxu0 %v9110_v51  ;;  %5400 = vmatpush3.bf16.msra.mxu0 %v5738_v60  ;;  %v3228_v60 = vrot.slane %v7441_v47, 3  ;;  %v3172_v51 = vrot.slane %v7441_v47, 2 }
 0x234   : > { %v7961_v37 = vsel %vm9099_vm7, %v3167_v38, %v3168_v26  ;;  %vm9100_vm4 = vmmov %vm9092_vm12  ;;  %vm9103_vm11 = vnez %v9102_v48  ;;  %v3115_v48 = vrot.slane %v7389_v19, 1  ;;  %v9140_v47 = vld [vmem:[#allocation53_spill] sm:$0xff] }
 0x235   : > { %v7965_v45 = vsel %vm9100_vm4, %v3112_v53, %v3113_v20  ;;  %4833 = vmatmul.mubr.msk.bf16.gmra.mrb[80].mxu1 %vm9103_vm11, %v9101_v3  ;;  %vm9107_vm5 = vmmov %vm9100_vm4  ;;  %v9109_v3 = vpack.c.bf16 %v7674_v61, %v7678_v63  ;;  %v3118_v61 = vrot.slane %v7432_v14, 1 }
 0x236   : > { %v7983_v38 = vsel %vm9107_vm5, %v3113_v20, %v3114_v49  ;;  %vm9108_vm9 = vmmov %vm9096_vm0 }
 0x237   : > { %v7987_v25 = vsel %vm9108_vm9, %v3225_v34, %v3226_v58  ;;  %3948 = vmatprep.mubr.bf16.mxu1 %v9109_v3  ;;  %vm9111_vm10 = vmmov %vm9096_vm0  ;;  %v3229_v3 = vrot.slane %v7455_v52, 3 }
 0x238   : > { %v8000_v20 = vsel %vm9111_vm10, %v3224_v2, %v3225_v34  ;;  %vm9112_vm12 = vmmov %vm9099_vm7  ;;  %v3117_v2 = vrot.slane %v7455_v52, 1 }
 0x239   : > { %v8004_v23 = vsel %vm9112_vm12, %v3169_v30, %v3170_v44  ;;  %vm9113_vm14 = vmmov %vm9099_vm7 }
 0x23a   : > { %v8011_v63 = vsel %vm9113_vm14, %v3168_v26, %v3169_v30  ;;  %vm9114_vm3 = vmmov %vm9100_vm4  ;;  %v3171_v30 = vrot.slane %v7389_v19, 2  ;;  %v9128_v19 = vld [vmem:[#allocation59_spill] sm:$0xff] }
 0x23b   : > { %v8015_v57 = vsel %vm9114_vm3, %v3114_v49, %v3115_v48  ;;  %vm9115_vm0 = vmmov %vm9114_vm3 }
 0x23c   : > { %v8022_v34 = vsel %vm9115_vm0, %v3115_v48, %v3116_v56  ;;  %vm9116_vm15 = vmmov %vm9108_vm9 }
 0x23d   : > { %v8031_v49 = vsel %vm9116_vm15, %v3226_v58, %v3227_v11  ;;  %vm9118_vm7 = vmmov %vm9108_vm9 }
 0x23e   : > { %9117 = vst [vmem:[#allocation16_spill] sm:$0xff] %v8031_v49  ;;  %v8037_v48 = vsel %vm9118_vm7, %v3227_v11, %v3228_v60  ;;  %vm9119_vm4 = vmmov %vm9112_vm12  ;;  %v3230_v11 = vrot.slane %v7432_v14, 3 }
 0x23f   : > { %v8046_v58 = vsel %vm9119_vm4, %v3171_v30, %v3172_v51  ;;  %vm9121_vm11 = vmmov %vm9119_vm4 }
 0x240   : > { %9120 = vst [vmem:[#allocation17_spill] sm:$0xff] %v8046_v58  ;;  %v8050_v31 = vsel %vm9121_vm11, %v3170_v44, %v3171_v30  ;;  %vm9123_vm13 = vmmov %vm9115_vm0  ;;  %v9126_v44 = vpack.c.bf16 %v7724_v18, %v7728_v5  ;;  %v9127_v30 = vld [vmem:[#allocation58_spill] sm:$0xff]  ;;  %v9132_v58 = vld [vmem:[#allocation61_spill] sm:$0xff] }
 0x241   : > { %9122 = vst [vmem:[#allocation18_spill] sm:$0xff] %v8050_v31  ;;  %v8057_v24 = vsel %vm9123_vm13, %v3117_v2, %v3118_v61  ;;  %vm9124_vm5 = vmmov %vm9115_vm0  ;;  %v9129_v49 = vpack.c.bf16 %v9127_v30, %v9128_v19  ;;  %v9136_v19 = vpack.c.bf16 %v7777_v15, %v7760_v35  ;;  %v3174_v30 = vrot.slane %v7432_v14, 2 }
 0x242   : > { %v8061_v26 = vsel %vm9124_vm5, %v3116_v56, %v3117_v2  ;;  %vm9125_vm9 = vmmov %vm9118_vm7  ;;  %3949 = vmatmul.mubr.bf16.gmra.mrb[84].mxu1 %v9126_v44  ;;  %v3173_v2 = vrot.slane %v7455_v52, 2  ;;  %v9134_v44 = vld [vmem:[#allocation19_spill] sm:$0xff]  ;;  %v3120_v52 = vrot.slane %v9140_v47, 1  ;;  %v3232_v35 = vrot.slane %v9140_v47, 3 }
 0x243   : > { %v8065_v39 = vsel %vm9125_vm9, %v3228_v60, %v3229_v3  ;;  %4046 = vmatmul.mubr.bf16.gmra.mrb[100].mxu0 %v9129_v49  ;;  %vm9130_vm10 = vmmov %vm9118_vm7  ;;  %v9131_v60 = vld [vmem:[#allocation60_spill] sm:$0xff]  ;;  %vm9135_vm12 = vnez %v9134_v44  ;;  %v9139_v56 = vld [vmem:[#allocation51_spill] sm:$0xff]  ;;  %v3122_v15 = vrot.slane %v7490_v17, 1 }
 0x244   : > { %v8077_v31 = vsel %vm9130_vm10, %v3229_v3, %v3230_v11  ;;  %v9133_v18 = vpack.c.bf16 %v9131_v60, %v9132_v58  ;;  %v9137_v49 = vld [vmem:[#allocation20_spill] sm:$0xff]  ;;  %v3119_v53 = vrot.slane %v9139_v56, 1  ;;  %vm9141_vm3 = vmmov %vm9119_vm4 }
 0x245   : > { %vm9138_vm14 = vnez %v9137_v49  ;;  %v8099_v58 = vsel %vm9141_vm3, %v3172_v51, %v3173_v2  ;;  %vm9142_vm0 = vmmov %vm9141_vm3  ;;  %v3175_v51 = vrot.slane %v9139_v56, 2  ;;  %v3121_v49 = vrot.slane %v7516_v59, 1 }
 0x246   : > { %4836 = vmatprep.mubr.msk.bf16.mxu1 %vm9135_vm12, %v9133_v18  ;;  %4860 = vmatprep.mubr.msk.bf16.mxu0 %vm9138_vm14, %v9136_v19  ;;  %v3231_v18 = vrot.slane %v9139_v56, 3  ;;  %v8107_v60 = vsel %vm9142_vm0, %v3173_v2, %v3174_v30  ;;  %vm9143_vm15 = vmmov %vm9124_vm5  ;;  %v3233_v56 = vrot.slane %v7516_v59, 3 }
 0x247   : > { %v8111_v44 = vsel %vm9143_vm15, %v3119_v53, %v3120_v52  ;;  %vm9145_vm7 = vmmov %vm9124_vm5 }
 0x248   : > { %9144 = vst [vmem:[#allocation58_spill] sm:$0xff] %v8111_v44  ;;  %v8115_v19 = vsel %vm9145_vm7, %v3118_v61, %v3119_v53  ;;  %vm9147_vm4 = vmmov %vm9125_vm9  ;;  %v3176_v61 = vrot.slane %v9140_v47, 2  ;;  %v9157_v47 = vld [vmem:[#allocation22_spill] sm:$0xff]  ;;  %v3123_v44 = vrot.slane %v7507_v36, 1 }
 0x249   : > { %9146 = vst [vmem:[#allocation59_spill] sm:$0xff] %v8115_v19  ;;  %v8124_v2 = vsel %vm9147_vm4, %v3231_v18, %v3232_v35  ;;  %vm9149_vm11 = vmmov %vm9147_vm4  ;;  %v3234_v19 = vrot.slane %v7490_v17, 3  ;;  %vm9158_vm10 = vnez %v9157_v47 }
 0x24a   : > { %9148 = vst [vmem:[#allocation60_spill] sm:$0xff] %v8124_v2  ;;  %v8128_v3 = vsel %vm9149_vm11, %v3230_v11, %v3231_v18  ;;  %vm9151_vm13 = vmmov %vm9142_vm0  ;;  %v9154_v2 = vpack.c.bf16 %v7781_v8, %v7720_v54  ;;  %v9156_v11 = vpack.c.bf16 %v7800_v7, %v7785_v27  ;;  %v9162_v27 = vpack.c.bf16 %v7822_v46, %v7826_v0 }
 0x24b   : > { %9150 = vst [vmem:[#allocation61_spill] sm:$0xff] %v8128_v3  ;;  %v8135_v14 = vsel %vm9151_vm13, %v3174_v30, %v3175_v51  ;;  %vm9152_vm5 = vmmov %vm9142_vm0  ;;  %v3177_v30 = vrot.slane %v7516_v59, 2  ;;  %v3178_v3 = vrot.slane %v7490_v17, 2  ;;  %v9166_v0 = vrot.slane %v7327_v50, 1 }
 0x24c   : > { %v8145_v18 = vsel %vm9152_vm5, %v3175_v51, %v3176_v61  ;;  %vm9153_vm9 = vmmov %vm9145_vm7  ;;  %4839 = vmatmul.mubr.msk.bf16.gmra.mrb[88].mxu1 %vm6706_vm6, %v9154_v2  ;;  %4863 = vmatmul.mubr.msk.bf16.gmra.mrb[104].mxu0 %vm9158_vm10, %v9156_v11  ;;  %v9161_v2 = vpack.c.bf16 %v7809_v55, %v7813_v32  ;;  %v3235_v11 = vrot.slane %v7507_v36, 3 }
 0x24d   : > { %v8149_v53 = vsel %vm9153_vm9, %v3120_v52, %v3121_v49  ;;  %v4892_v52 = vpack.c.bf16 %v8145_v18, %v8135_v14  ;;  %vm9159_vm12 = vmmov %vm9145_vm7  ;;  %4061 = vmatprep.mubr.bf16.mxu0 %v9162_v27  ;;  %v8195_v32 = vsel %vm9142_vm0, %v3176_v61, %v3177_v30  ;;  %v9172_v27 = vpack.c.bf16 %v7835_v16, %v7839_v40 }
 0x24e   : > { %v8167_v51 = vsel %vm9159_vm12, %v3121_v49, %v3122_v15  ;;  %vm9160_vm14 = vmmov %vm9147_vm4  ;;  %3964 = vmatprep.mubr.bf16.mxu1 %v9161_v2  ;;  %v8213_v61 = vsel %vm9147_vm4, %v3234_v19, %v3235_v11  ;;  %v9173_v2 = vpack.c.bf16 %v7845_v62, %v7853_v42  ;;  %v9180_v62 = vld [vmem:[#allocation14_spill] sm:$0xff] }
 0x24f   : > { %v8171_v59 = vsel %vm9160_vm14, %v3233_v56, %v3234_v19  ;;  %v3162_v47 = vpack.c.bf16 %v8167_v51, %v8149_v53  ;;  %vm9163_vm6 = vmmov %vm9147_vm4  ;;  %v5740_v19 = vld [vmem:[#allocation7 + $0x208] sm:$0xff]   ;;  %v9181_v42 = vpack.c.bf16 %v7926_v29, %v9180_v62  ;;  %v9191_v29 = vpack.c.bf16 %v7961_v37, %v7950_v9 }
 0x250   : > { %v8184_v7 = vsel %vm9163_vm6, %v3232_v35, %v3233_v56  ;;  %vm9164_vm3 = vmmov %vm9142_vm0  ;;  %v8205_v56 = vsel %vm9145_vm7, %v3123_v44, %v9166_v0  ;;  %v3179_v0 = vrot.slane %v7507_v36, 2  ;;  %v9174_v35 = vpack.c.bf16 %v7868_v10, %v7862_v13  ;;  %v9184_v13 = vld [vmem:[#allocation15_spill] sm:$0xff]  ;;  %v9240_v53 = vld [vmem:[#allocation33_spill] sm:$0xff] }
 0x251   : > { %v8188_v49 = vsel %vm9164_vm3, %v3177_v30, %v3178_v3  ;;  %v3274_v55 = vpack.c.bf16 %v8171_v59, %v8184_v7  ;;  %vm9165_vm15 = vmmov %vm9145_vm7  ;;  %v9167_v30 = vrot.slane %v7327_v50, 3  ;;  %v9185_v10 = vpack.c.bf16 %v7937_v22, %v9184_v13  ;;  %v9216_v13 = vld [vmem:[#allocation52_spill] sm:$0xff]  ;;  %v9243_v59 = vld [vmem:[#allocation46_spill] sm:$0xff] }
 0x252   : > { %v8199_v46 = vsel %vm9165_vm15, %v3122_v15, %v3123_v44  ;;  %vm9168_vm11 = vmmov %vm9147_vm4  ;;  %v9194_v22 = vpack.c.bf16 %v7983_v38, %v7965_v45  ;;  %v9198_v37 = vpack.c.bf16 %v8004_v23, %v8011_v63  ;;  %v9199_v45 = vpack.c.bf16 %v8022_v34, %v8015_v57  ;;  %v9200_v38 = vld [vmem:[#allocation26_spill] sm:$0xff]  ;;  %v9206_v23 = vld [vmem:[#allocation45_spill] sm:$0xff] }
 0x253   : > { %v8219_v15 = vsel %vm9168_vm11, %v3235_v11, %v9167_v30  ;;  %vm9169_vm13 = vmmov %vm9142_vm0  ;;  %v9170_v30 = vrot.slane %v7327_v50, 2  ;;  %vm9201_vm14 = vnez %v9200_v38  ;;  %v9207_v63 = vld [vmem:[#allocation42_spill] sm:$0xff]  ;;  %v9209_v57 = vld [vmem:[#allocation17_spill] sm:$0xff]  ;;  %v9238_v14 = vpack.c.bf16 %v8205_v56, %v8199_v46 }
 0x254   : > { %v4895_v44 = vpack.c.bf16 %v8219_v15, %v8213_v61  ;;  %v3180_v11 = vsel %vm9169_vm13, %v3178_v3, %v3179_v0  ;;  %vm9171_vm5 = vmmov %vm9142_vm0  ;;  %3965 = vmatmul.mubr.bf16.gmra.mrb[92].mxu1 %v9172_v27  ;;  %4062 = vmatmul.mubr.bf16.gmra.mrb[108].mxu0 %v9173_v2  ;;  %v9175_v3 = vpack.c.bf16 %v7902_v41, %v7886_v6  ;;  %v9182_v2 = vld [vmem:[#allocation23_spill] sm:$0xff]  ;;  %v9186_v6 = vld [vmem:[#allocation24_spill] sm:$0xff] }
 0x255   : > { %v3195_v61 = vsel %vm9171_vm5, %v3179_v0, %v9170_v30  ;;  %4102 = vmatprep.mubr.bf16.mxu1 %v9174_v35  ;;  %v9177_v0 = vpack.c.bf16 %v9176_v12, %v7327_v50  ;;  %vm9183_vm9 = vnez %v9182_v2  ;;  %vm9187_vm10 = vnez %v9186_v6  ;;  %v5741_v50 = vld [vmem:[#allocation7 + $0x210] sm:$0xff]   ;;  %v5742_v41 = vld [vmem:[#allocation7 + $0x218] sm:$0xff]   ;;  %v9196_v12 = vld [vmem:[#allocation44_spill] sm:$0xff] }
 0x256   : > { %v4898_v15 = vpack.c.bf16 %v3195_v61, %v3180_v11  ;;  %4199 = vmatprep.mubr.bf16.mxu0 %v9175_v3  ;;  %v9178_v11 = vld [vmem:[#allocation13_spill] sm:$0xff]  ;;  %v9189_v35 = vld [vmem:[#allocation39_spill] sm:$0xff]  ;;  %v9197_v9 = vpack.c.bf16 %v7397_v33, %v9196_v12  ;;  %v5745_v33 = vld [vmem:[#allocation7 + $0x230] sm:$0xff]   ;;  %v9215_v2 = vpack.c.bf16 %v8077_v31, %v8065_v39  ;;  %v9252_v56 = vpack.c.bf16 %v7614_v43, %v7505_v4 }
 0x257   : > { %v9179_v27 = vpack.c.bf16 %v7911_v21, %v9178_v11  ;;  %v9188_v21 = vld [vmem:[#allocation40_spill] sm:$0xff]  ;;  %v9192_v61 = vld [vmem:[#allocation25_spill] sm:$0xff]  ;;  %v5746_v11 = vld [vmem:[#allocation7 + $0x238] sm:$0xff]   ;;  %v9262_v4 = vpack.c.bf16 %v7839_v40, %v7781_v8 }
 0x258   : > { %v9190_v30 = vpack.c.bf16 %v9188_v21, %v9189_v35  ;;  %vm9193_vm12 = vnez %v9192_v61  ;;  %v5744_v3 = vld [vmem:[#allocation7 + $0x228] sm:$0xff]   ;;  %v9210_v34 = vld [vmem:[#allocation18_spill] sm:$0xff]  ;;  %v9221_v21 = vld [vmem:[#allocation59_spill] sm:$0xff] }
 0x259   : > { %v9211_v62 = vpack.c.bf16 %v9209_v57, %v9210_v34  ;;  %v9226_v39 = vld [vmem:[#allocation61_spill] sm:$0xff]  ;;  %v9230_v61 = vld [vmem:[#allocation48_spill] sm:$0xff]  ;;  %v9245_v7 = vld [vmem:[#allocation34_spill] sm:$0xff] }
 0x25a   : > { %vm9246_vm7 = vnez %v9245_v7  ;;  %v9250_v46 = vld [vmem:[#allocation35_spill] sm:$0xff]  ;;  %v9254_v12 = vld [vmem:[#allocation57_spill] sm:$0xff] }
 0x25b   : > { %vm9251_vm4 = vnez %v9250_v46  ;;  %v9263_v43 = vld [vmem:[#allocation55_spill] sm:$0xff] }
 0x25c   : > { %4103 = vmatmul.mubr.bf16.vlgmr.msra.gmra.mrb[96].mxu1 %v9177_v0  ;;  %4200 = vmatmul.mubr.bf16.vlgmr.msra.gmra.mrb[112].mxu0 %v9179_v27  ;;  %v9204_v0 = vld [vmem:[#allocation27_spill] sm:$0xff]  ;;  %v9208_v27 = vpack.c.bf16 %v9206_v23, %v9207_v63  ;;  %v9264_v38 = vpack.c.bf16 %v9263_v43, %v7835_v16 }
 0x25d   : > { %4866 = vmatprep.mubr.msk.bf16.mxu1 %vm9183_vm9, %v9181_v42  ;;  %4878 = vmatprep.mubr.msk.bf16.mxu0 %vm9187_vm10, %v9185_v10  ;;  %vm9205_vm6 = vnez %v9204_v0  ;;  %v9212_v42 = vld [vmem:[#allocation28_spill] sm:$0xff]  ;;  %v9217_v10 = vld [vmem:[#allocation50_spill] sm:$0xff] }
 0x25e   : > { %5498 = vmatpush3.bf16.msra.mxu1 %v7922_v1  ;;  %v9195_v1 = vpack.c.bf16 %v7987_v25, %v8000_v20  ;;  %v9202_v25 = vld [vmem:[#allocation16_spill] sm:$0xff]  ;;  %vm9213_vm3 = vnez %v9212_v42  ;;  %v9218_v6 = vpack.c.bf16 %v9216_v13, %v9217_v10 }
 0x25f   : > { %5499 = vmatprep.subr.bf16.mxu1 %v5740_v19  ;;  %v9203_v20 = vpack.c.bf16 %v8037_v48, %v9202_v25  ;;  %v9214_v48 = vpack.c.bf16 %v8057_v24, %v8061_v26  ;;  %v9223_v24 = vld [vmem:[#allocation29_spill] sm:$0xff]  ;;  %v9225_v26 = vld [vmem:[#allocation60_spill] sm:$0xff]  ;;  %v9265_v25 = vld [vmem:[#allocation38_spill] sm:$0xff] }
 0x260   : > { %vm9224_vm0 = vnez %v9223_v24  ;;  %v9227_v31 = vpack.c.bf16 %v9225_v26, %v9226_v39  ;;  %vm9266_vm11 = vnez %v9265_v25 }
 0x262   : > { %5500 = vmatpush3.bf16.msra.mxu1 %v5740_v19  ;;  %v5743_v19 = vld [vmem:[#allocation7 + $0x220] sm:$0xff]  }
 0x263   : > { %5501 = vmatprep.subr.bf16.mxu1 %v5741_v50 }
 0x264   : > { %4111 = vmatmul.mubr.bf16.gmra.mrb[100].mxu1 %v9190_v30  ;;  %4881 = vmatmul.mubr.msk.bf16.gmra.mrb[116].mxu0 %vm9193_vm12, %v9191_v29  ;;  %v9229_v29 = vld [vmem:[#allocation51_spill] sm:$0xff] }
 0x265   : > { %4118 = vmatprep.mubr.bf16.mxu1 %v9194_v22  ;;  %4215 = vmatprep.mubr.bf16.mxu0 %v9195_v1  ;;  %v9231_v22 = vpack.c.bf16 %v9229_v29, %v9230_v61  ;;  %v9235_v1 = vld [vmem:[#allocation53_spill] sm:$0xff] }
 0x266   : > { %5502 = vmatpush3.bf16.msra.mxu1 %v5741_v50  ;;  %v9219_v50 = vpack.c.bf16 %v8107_v60, %v8099_v58  ;;  %v9232_v58 = vld [vmem:[#allocation31_spill] sm:$0xff]  ;;  %v9234_v60 = vld [vmem:[#allocation54_spill] sm:$0xff] }
 0x267   : > { %5503 = vmatprep.subr.bf16.mxu1 %v5742_v41  ;;  %vm9233_vm15 = vnez %v9232_v58 }
 0x26a   : > { %5504 = vmatpush3.bf16.msra.mxu1 %v5742_v41  ;;  %v9220_v41 = vld [vmem:[#allocation58_spill] sm:$0xff] }
 0x26b   : > { %5505 = vmatprep.subr.bf16.mxu1 %v5743_v19  ;;  %v9222_v35 = vpack.c.bf16 %v9220_v41, %v9221_v21 }
 0x26c   : > { %4119 = vmatmul.mubr.bf16.gmra.mrb[104].mxu1 %v9197_v9  ;;  %4216 = vmatmul.mubr.bf16.gmra.mrb[120].mxu0 %v9198_v37  ;;  %v9256_v37 = vld [vmem:[#allocation36_spill] sm:$0xff] }
 0x26d   : > { %4869 = vmatprep.mubr.msk.bf16.mxu1 %vm9201_vm14, %v9199_v45  ;;  %4884 = vmatprep.mubr.msk.bf16.mxu0 %vm9205_vm6, %v9203_v20 }
 0x26e   : > { %5506 = vmatpush3.bf16.msra.mxu1 %v5743_v19  ;;  %v9236_v19 = vpack.c.bf16 %v9234_v60, %v9235_v1 }
 0x26f   : > { %5507 = vmatprep.subr.bf16.mxu1 %v5744_v3 }
 0x272   : > { %5508 = vmatpush3.bf16.msra.mxu1 %v5744_v3  ;;  %v9237_v3 = vpack.c.bf16 %v8188_v49, %v8195_v32  ;;  %v9247_v49 = vld [vmem:[#allocation49_spill] sm:$0xff] }
 0x273   : > { %5509 = vmatprep.subr.bf16.mxu1 %v5745_v33 }
 0x274   : > { %4127 = vmatmul.mubr.bf16.gmra.mrb[108].mxu1 %v9208_v27  ;;  %4887 = vmatmul.mubr.msk.bf16.gmra.mrb[124].mxu0 %vm9213_vm3, %v9211_v62 }
 0x275   : > { %4134 = vmatprep.mubr.bf16.mxu1 %v9214_v48  ;;  %4231 = vmatprep.mubr.bf16.mxu0 %v9215_v2 }
 0x276   : > { %5510 = vmatpush3.bf16.msra.mxu1 %v5745_v33 }
 0x277   : > { %5511 = vmatprep.subr.bf16.mxu1 %v5746_v11 }
 0x27a   : > { %5512 = vmatpush3.bf16.msra.mxu1 %v5746_v11 }
 0x27c   : > { %4135 = vmatmul.mubr.bf16.gmra.mrb[112].mxu1 %v9218_v6  ;;  %4232 = vmatmul.mubr.bf16.gmra.mrb[128].mxu0 %v9219_v50 }
 0x27d   : > { %4872 = vmatprep.mubr.msk.bf16.mxu1 %vm9224_vm0, %v9222_v35  ;;  %4890 = vmatprep.mubr.msk.bf16.mxu0 %vm6998_vm8, %v9227_v31  ;;  %vm9241_vm8 = vnez %v9240_v53 }
 0x284   : > { %4143 = vmatmul.mubr.bf16.gmra.mrb[116].mxu1 %v9231_v22  ;;  %4893 = vmatmul.mubr.msk.bf16.gmra.mrb[132].mxu0 %vm9233_vm15, %v4892_v52  ;;  %v9242_v52 = vld [vmem:[#allocation43_spill] sm:$0xff] }
 0x285   : > { %4150 = vmatprep.mubr.bf16.mxu1 %v3162_v47  ;;  %4247 = vmatprep.mubr.bf16.mxu0 %v3274_v55  ;;  %v3292_v51 = vpack.c.bf16 %v9243_v59, %v9242_v52  ;;  %v9244_v47 = vpack.c.bf16 %v7507_v36, %v7490_v17  ;;  %v9248_v55 = vld [vmem:[#allocation47_spill] sm:$0xff]  ;;  %v9258_v17 = vpack.c.bf16 %v7728_v5, %v7659_v28  ;;  %v9259_v36 = vld [vmem:[#allocation12_spill] sm:$0xff] }
 0x286   : > { %v9249_v32 = vpack.c.bf16 %v9247_v49, %v9248_v55 }
 0x28c   : > { %4151 = vmatmul.mubr.bf16.gmra.mrb[120].mxu1 %v9236_v19  ;;  %4248 = vmatmul.mubr.bf16.gmra.mrb[136].mxu0 %v9237_v3 }
 0x28d   : > { %4875 = vmatprep.mubr.msk.bf16.mxu1 %vm7136_vm1, %v9238_v14  ;;  %4896 = vmatprep.mubr.msk.bf16.mxu0 %vm9241_vm8, %v4895_v44  ;;  %v9253_v44 = vld [vmem:[#allocation56_spill] sm:$0xff]  ;;  %vm9257_vm1 = vnez %v9256_v37 }
 0x28e   : > { %v9255_v9 = vpack.c.bf16 %v9253_v44, %v9254_v12 }
 0x294   : > { %4159 = vmatmul.mubr.bf16.gmra.mrb[124].mxu1 %v9244_v47  ;;  %4899 = vmatmul.mubr.msk.bf16.gmra.mrb[140].mxu0 %vm9246_vm7, %v4898_v15  ;;  %v9260_v15 = vpack.c.bf16 %v7720_v54, %v9259_v36 }
 0x295   : > { %5513 = vmatprep.mubr.bf16.mxu1 %v3292_v51 }
 0x29c   : > { %5514 = vmatmul.mubr.msk.bf16.vlgmr.msra.gmra.mrb[128].mxu1 %vm9251_vm4, %v9249_v32 }
 0x29d   : > { %5517 = vmatprep.mubr.bf16.mxu1 %v9252_v56 }
 0x2a4   : > { %5518 = vmatmul.mubr.msk.bf16.gmra.mrb[132].mxu1 %vm9257_vm1, %v9255_v9 }
 0x2a5   : > { %5521 = vmatprep.mubr.bf16.mxu1 %v9258_v17 }
 0x2ac   : > { %5522 = vmatmul.mubr.msk.bf16.gmra.mrb[136].mxu1 %vm7201_vm2, %v9260_v15 }
 0x2ad   : > { %5525 = vmatprep.mubr.bf16.mxu1 %v9262_v4 }
 0x2b4   : > { %5526 = vmatmul.mubr.msk.bf16.gmra.mrb[140].mxu1 %vm9266_vm11, %v9264_v38 }
 0x2e0   : > { %v5209_v20 = vpop.f32.mrb[64].mxu1 }
 0x2e1   : > { %v5273_v0 = vpop.f32.mrb[80].mxu0  ;;  %v5210_v28 = vpop.f32.mrb[65].mxu1 }
 0x2e2   : > { %v5274_v5 = vpop.f32.mrb[81].mxu0  ;;  %v5211_v33 = vadd.f32 %v5210_v28, %v5209_v20  ;;  %v5212_v54 = vpop.f32.mrb[66].mxu1 }
 0x2e3   : > { %v5275_v11 = vadd.f32 %v5274_v5, %v5273_v0  ;;  %v5276_v23 = vpop.f32.mrb[82].mxu0  ;;  %v5213_v63 = vpop.f32.mrb[67].mxu1 }
 0x2e4   : > { %v5277_v27 = vpop.f32.mrb[83].mxu0  ;;  %v5214_v8 = vadd.f32 %v5213_v63, %v5212_v54 }
 0x2e5   : > { %v8390_v57 = vadd.f32 %v5275_v11, %v5211_v33  ;;  %v5278_v40 = vadd.f32 %v5277_v27, %v5276_v23 }
 0x2e7   : > { %v8392_v34 = vadd.f32 %v5278_v40, %v5214_v8 }
 0x2e8   : > { %v5215_v16 = vpop.f32.mrb[68].mxu1 }
 0x2e9   : > { %v5279_v62 = vpop.f32.mrb[84].mxu0  ;;  %v5216_v42 = vpop.f32.mrb[69].mxu1 }
 0x2ea   : > { %v5280_v48 = vpop.f32.mrb[85].mxu0  ;;  %v5217_v2 = vadd.f32 %v5216_v42, %v5215_v16  ;;  %v5218_v10 = vpop.f32.mrb[70].mxu1 }
 0x2eb   : > { %v5281_v13 = vadd.f32 %v5280_v48, %v5279_v62  ;;  %v5282_v6 = vpop.f32.mrb[86].mxu0  ;;  %v5219_v50 = vpop.f32.mrb[71].mxu1 }
 0x2ec   : > { %v5283_v41 = vpop.f32.mrb[87].mxu0  ;;  %v5220_v35 = vadd.f32 %v5219_v50, %v5218_v10 }
 0x2ed   : > { %v8394_v21 = vadd.f32 %v5281_v13, %v5217_v2  ;;  %v5284_v24 = vadd.f32 %v5283_v41, %v5282_v6 }
 0x2ef   : > { %v8396_v26 = vadd.f32 %v5284_v24, %v5220_v35 }
 0x2f0   : > { %v5221_v39 = vpop.f32.mrb[72].mxu1 }
 0x2f1   : > { %v5285_v31 = vpop.f32.mrb[88].mxu0  ;;  %v5222_v30 = vpop.f32.mrb[73].mxu1 }
 0x2f2   : > { %v5286_v29 = vpop.f32.mrb[89].mxu0  ;;  %v5223_v61 = vadd.f32 %v5222_v30, %v5221_v39  ;;  %v5224_v58 = vpop.f32.mrb[74].mxu1 }
 0x2f3   : > { %v5287_v22 = vadd.f32 %v5286_v29, %v5285_v31  ;;  %v5288_v60 = vpop.f32.mrb[90].mxu0  ;;  %v5225_v1 = vpop.f32.mrb[75].mxu1 }
 0x2f4   : > { %v5289_v19 = vpop.f32.mrb[91].mxu0  ;;  %v5226_v14 = vadd.f32 %v5225_v1, %v5224_v58 }
 0x2f5   : > { %v8398_v3 = vadd.f32 %v5287_v22, %v5223_v61  ;;  %v5290_v18 = vadd.f32 %v5289_v19, %v5288_v60 }
 0x2f7   : > { %v8400_v53 = vadd.f32 %v5290_v18, %v5226_v14 }
 0x2f8   : > { %v5227_v52 = vpop.f32.mrb[76].mxu1 }
 0x2f9   : > { %v5291_v59 = vpop.f32.mrb[92].mxu0  ;;  %v5228_v51 = vpop.f32.mrb[77].mxu1 }
 0x2fa   : > { %v5292_v47 = vpop.f32.mrb[93].mxu0  ;;  %v5229_v7 = vadd.f32 %v5228_v51, %v5227_v52  ;;  %v5230_v55 = vpop.f32.mrb[78].mxu1 }
 0x2fb   : > { %v5293_v49 = vadd.f32 %v5292_v47, %v5291_v59  ;;  %v5294_v32 = vpop.f32.mrb[94].mxu0  ;;  %v5231_v46 = vpop.f32.mrb[79].mxu1 }
 0x2fc   : > { %v5295_v56 = vpop.f32.mrb[95].mxu0  ;;  %v5232_v12 = vadd.f32 %v5231_v46, %v5230_v55 }
 0x2fd   : > { %v8402_v44 = vadd.f32 %v5293_v49, %v5229_v7  ;;  %v5296_v9 = vadd.f32 %v5295_v56, %v5294_v32 }
 0x2ff   : > { %v8404_v37 = vadd.f32 %v5296_v9, %v5232_v12 }
 0x305   : > { %v5297_v36 = vpop.f32.mrb[96].mxu0 }
 0x306   : > { %v5298_v45 = vpop.f32.mrb[97].mxu0 }
 0x307   : > { %v5299_v43 = vadd.f32 %v5298_v45, %v5297_v36  ;;  %v5300_v25 = vpop.f32.mrb[98].mxu0 }
 0x308   : > { %v5233_v17 = vpop.f32.mrb[80].mxu1  ;;  %v5301_v0 = vpop.f32.mrb[99].mxu0 }
 0x309   : > { %v5234_v15 = vpop.f32.mrb[81].mxu1  ;;  %v5302_v33 = vadd.f32 %v5301_v0, %v5300_v25 }
 0x30a   : > { %v5235_v4 = vadd.f32 %v5234_v15, %v5233_v17  ;;  %v5236_v38 = vpop.f32.mrb[82].mxu1 }
 0x30b   : > { %v5237_v20 = vpop.f32.mrb[83].mxu1 }
 0x30c   : > { %v8406_v28 = vadd.f32 %v5299_v43, %v5235_v4  ;;  %v5238_v5 = vadd.f32 %v5237_v20, %v5236_v38 }
 0x30e   : > { %v8408_v11 = vadd.f32 %v5302_v33, %v5238_v5 }
 0x315   : > { %v5239_v54 = vpop.f32.mrb[84].mxu1 }
 0x316   : > { %v5303_v23 = vpop.f32.mrb[100].mxu0  ;;  %v5240_v63 = vpop.f32.mrb[85].mxu1 }
 0x317   : > { %v5304_v27 = vpop.f32.mrb[101].mxu0  ;;  %v5241_v8 = vadd.f32 %v5240_v63, %v5239_v54  ;;  %v5242_v16 = vpop.f32.mrb[86].mxu1 }
 0x318   : > { %v5305_v40 = vadd.f32 %v5304_v27, %v5303_v23  ;;  %v5306_v62 = vpop.f32.mrb[102].mxu0  ;;  %v5243_v42 = vpop.f32.mrb[87].mxu1 }
 0x319   : > { %v5307_v48 = vpop.f32.mrb[103].mxu0  ;;  %v5244_v13 = vadd.f32 %v5243_v42, %v5242_v16 }
 0x31a   : > { %v8410_v2 = vadd.f32 %v5305_v40, %v5241_v8  ;;  %v5308_v10 = vadd.f32 %v5307_v48, %v5306_v62 }
 0x31c   : > { %v8412_v6 = vadd.f32 %v5308_v10, %v5244_v13 }
 0x31f   : > { %v5245_v50 = vpop.f32.mrb[88].mxu1  ;;  %v5309_v41 = vpop.f32.mrb[104].mxu0 }
 0x320   : > { %v5246_v35 = vpop.f32.mrb[89].mxu1  ;;  %v5310_v24 = vpop.f32.mrb[105].mxu0 }
 0x321   : > { %v5247_v39 = vadd.f32 %v5246_v35, %v5245_v50  ;;  %v5311_v31 = vadd.f32 %v5310_v24, %v5309_v41  ;;  %v5248_v30 = vpop.f32.mrb[90].mxu1  ;;  %v5312_v29 = vpop.f32.mrb[106].mxu0 }
 0x322   : > { %v5249_v61 = vpop.f32.mrb[91].mxu1  ;;  %v5313_v22 = vpop.f32.mrb[107].mxu0 }
 0x323   : > { %v8414_v58 = vadd.f32 %v5311_v31, %v5247_v39  ;;  %v5250_v60 = vadd.f32 %v5249_v61, %v5248_v30  ;;  %v5314_v1 = vadd.f32 %v5313_v22, %v5312_v29 }
 0x325   : > { %v8416_v19 = vadd.f32 %v5314_v1, %v5250_v60 }
 0x327   : > { %v5251_v14 = vpop.f32.mrb[92].mxu1  ;;  %v5315_v18 = vpop.f32.mrb[108].mxu0 }
 0x328   : > { %v5252_v52 = vpop.f32.mrb[93].mxu1  ;;  %v5316_v59 = vpop.f32.mrb[109].mxu0 }
 0x329   : > { %v5253_v51 = vadd.f32 %v5252_v52, %v5251_v14  ;;  %v5317_v47 = vadd.f32 %v5316_v59, %v5315_v18  ;;  %v5254_v7 = vpop.f32.mrb[94].mxu1  ;;  %v5318_v49 = vpop.f32.mrb[110].mxu0 }
 0x32a   : > { %v5255_v55 = vpop.f32.mrb[95].mxu1  ;;  %v5319_v32 = vpop.f32.mrb[111].mxu0 }
 0x32b   : > { %v8418_v46 = vadd.f32 %v5317_v47, %v5253_v51  ;;  %v5256_v56 = vadd.f32 %v5255_v55, %v5254_v7  ;;  %v5320_v12 = vadd.f32 %v5319_v32, %v5318_v49 }
 0x32d   : > { %v8420_v9 = vadd.f32 %v5320_v12, %v5256_v56 }
 0x32f   : > { %v5337_v17 = vpop.f32.mrb[96].mxu1  ;;  %v5401_v36 = vpop.f32.mrb[112].mxu0 }
 0x330   : > { %v5338_v15 = vpop.f32.mrb[97].mxu1  ;;  %v5402_v45 = vpop.f32.mrb[113].mxu0 }
 0x331   : > { %v5339_v4 = vadd.f32 %v5338_v15, %v5337_v17  ;;  %v5403_v43 = vadd.f32 %v5402_v45, %v5401_v36  ;;  %v5340_v38 = vpop.f32.mrb[98].mxu1  ;;  %v5404_v25 = vpop.f32.mrb[114].mxu0 }
 0x332   : > { %v5341_v20 = vpop.f32.mrb[99].mxu1  ;;  %v5405_v0 = vpop.f32.mrb[115].mxu0 }
 0x333   : > { %v4105_v5 = vadd.f32 %v5339_v4, %v8390_v57  ;;  %v5342_v33 = vadd.f32 %v5341_v20, %v5340_v38  ;;  %v5406_v54 = vadd.f32 %v5405_v0, %v5404_v25 }
 0x335   : > { %v4108_v23 = vadd.f32 %v5342_v33, %v8392_v34  ;;  %v8424_v63 = vadd.f32 %v5403_v43, %v4105_v5 }
 0x337   : > { %v5343_v27 = vpop.f32.mrb[100].mxu1  ;;  %v5407_v8 = vpop.f32.mrb[116].mxu0  ;;  %v8426_v40 = vadd.f32 %v5406_v54, %v4108_v23 }
 0x338   : > { %v5344_v16 = vpop.f32.mrb[101].mxu1  ;;  %v5408_v62 = vpop.f32.mrb[117].mxu0 }
 0x339   : > { %v5345_v42 = vadd.f32 %v5344_v16, %v5343_v27  ;;  %v5409_v48 = vadd.f32 %v5408_v62, %v5407_v8  ;;  %v5346_v13 = vpop.f32.mrb[102].mxu1  ;;  %v5410_v10 = vpop.f32.mrb[118].mxu0 }
 0x33a   : > { %v5347_v50 = vpop.f32.mrb[103].mxu1  ;;  %v5411_v41 = vpop.f32.mrb[119].mxu0 }
 0x33b   : > { %v4113_v57 = vadd.f32 %v5345_v42, %v8394_v21  ;;  %v5348_v35 = vadd.f32 %v5347_v50, %v5346_v13  ;;  %v5412_v24 = vadd.f32 %v5411_v41, %v5410_v10 }
 0x33d   : > { %v4116_v34 = vadd.f32 %v5348_v35, %v8396_v26  ;;  %v8430_v39 = vadd.f32 %v5409_v48, %v4113_v57 }
 0x33f   : > { %v5349_v31 = vpop.f32.mrb[104].mxu1  ;;  %v5413_v30 = vpop.f32.mrb[120].mxu0  ;;  %v8432_v29 = vadd.f32 %v5412_v24, %v4116_v34 }
 0x340   : > { %v5350_v61 = vpop.f32.mrb[105].mxu1  ;;  %v5414_v22 = vpop.f32.mrb[121].mxu0 }
 0x341   : > { %v5351_v60 = vadd.f32 %v5350_v61, %v5349_v31  ;;  %v5415_v1 = vadd.f32 %v5414_v22, %v5413_v30  ;;  %v5352_v14 = vpop.f32.mrb[106].mxu1  ;;  %v5416_v18 = vpop.f32.mrb[122].mxu0 }
 0x342   : > { %v5353_v52 = vpop.f32.mrb[107].mxu1  ;;  %v5417_v59 = vpop.f32.mrb[123].mxu0 }
 0x343   : > { %v4121_v21 = vadd.f32 %v5351_v60, %v8398_v3  ;;  %v5354_v51 = vadd.f32 %v5353_v52, %v5352_v14  ;;  %v5418_v47 = vadd.f32 %v5417_v59, %v5416_v18 }
 0x345   : > { %v4124_v26 = vadd.f32 %v5354_v51, %v8400_v53  ;;  %v8436_v7 = vadd.f32 %v5415_v1, %v4121_v21 }
 0x347   : > { %v5355_v49 = vpop.f32.mrb[108].mxu1  ;;  %v5419_v55 = vpop.f32.mrb[124].mxu0  ;;  %v8438_v32 = vadd.f32 %v5418_v47, %v4124_v26 }
 0x348   : > { %v5356_v56 = vpop.f32.mrb[109].mxu1  ;;  %v5420_v12 = vpop.f32.mrb[125].mxu0 }
 0x349   : > { %v5357_v17 = vadd.f32 %v5356_v56, %v5355_v49  ;;  %v5421_v36 = vadd.f32 %v5420_v12, %v5419_v55  ;;  %v5358_v15 = vpop.f32.mrb[110].mxu1  ;;  %v5422_v45 = vpop.f32.mrb[126].mxu0 }
 0x34a   : > { %v5359_v4 = vpop.f32.mrb[111].mxu1  ;;  %v5423_v43 = vpop.f32.mrb[127].mxu0 }
 0x34b   : > { %v4129_v3 = vadd.f32 %v5357_v17, %v8402_v44  ;;  %v5360_v38 = vadd.f32 %v5359_v4, %v5358_v15  ;;  %v5424_v25 = vadd.f32 %v5423_v43, %v5422_v45 }
 0x34d   : > { %v4132_v53 = vadd.f32 %v5360_v38, %v8404_v37  ;;  %v8442_v20 = vadd.f32 %v5421_v36, %v4129_v3 }
 0x34f   : > { %v5361_v0 = vpop.f32.mrb[112].mxu1  ;;  %v5425_v5 = vpop.f32.mrb[128].mxu0  ;;  %v8444_v33 = vadd.f32 %v5424_v25, %v4132_v53 }
 0x350   : > { %v5362_v54 = vpop.f32.mrb[113].mxu1  ;;  %v5426_v23 = vpop.f32.mrb[129].mxu0 }
 0x351   : > { %v5363_v27 = vadd.f32 %v5362_v54, %v5361_v0  ;;  %v5427_v8 = vadd.f32 %v5426_v23, %v5425_v5  ;;  %v5364_v16 = vpop.f32.mrb[114].mxu1  ;;  %v5428_v62 = vpop.f32.mrb[130].mxu0 }
 0x352   : > { %v5365_v42 = vpop.f32.mrb[115].mxu1  ;;  %v5429_v48 = vpop.f32.mrb[131].mxu0 }
 0x353   : > { %v4137_v44 = vadd.f32 %v5363_v27, %v8406_v28  ;;  %v5366_v13 = vadd.f32 %v5365_v42, %v5364_v16  ;;  %v5430_v10 = vadd.f32 %v5429_v48, %v5428_v62 }
 0x355   : > { %v4140_v37 = vadd.f32 %v5366_v13, %v8408_v11  ;;  %v8448_v50 = vadd.f32 %v5427_v8, %v4137_v44  ;;  %v8471_v44 = vld [vmem:[%s8620_s5] ss:$0 sm:$0xff] }
 0x357   : > { %v5367_v41 = vpop.f32.mrb[116].mxu1  ;;  %v5431_v57 = vpop.f32.mrb[132].mxu0  ;;  %v8450_v35 = vadd.f32 %v5430_v10, %v4140_v37 }
 0x358   : > { %v5368_v24 = vpop.f32.mrb[117].mxu1  ;;  %v5432_v34 = vpop.f32.mrb[133].mxu0 }
 0x359   : > { %v5369_v31 = vadd.f32 %v5368_v24, %v5367_v41  ;;  %v5433_v30 = vadd.f32 %v5432_v34, %v5431_v57  ;;  %v5370_v61 = vpop.f32.mrb[118].mxu1  ;;  %v5434_v22 = vpop.f32.mrb[134].mxu0 }
 0x35a   : > { %v5371_v60 = vpop.f32.mrb[119].mxu1  ;;  %v5435_v1 = vpop.f32.mrb[135].mxu0 }
 0x35b   : > { %v4145_v28 = vadd.f32 %v5369_v31, %v8410_v2  ;;  %v5372_v14 = vadd.f32 %v5371_v60, %v5370_v61  ;;  %v5436_v18 = vadd.f32 %v5435_v1, %v5434_v22  ;;  %v5755_v60 = vld [vmem:[%s6158_s21 + $0x10] sm:$0xff] }
 0x35d   : > { %v4148_v11 = vadd.f32 %v5372_v14, %v8412_v6  ;;  %v8454_v52 = vadd.f32 %v5433_v30, %v4145_v28  ;;  %v5756_v28 = vld [vmem:[%s6158_s21] sm:$0xff] }
 0x35f   : > { %v5373_v59 = vpop.f32.mrb[120].mxu1  ;;  %v5437_v21 = vpop.f32.mrb[136].mxu0  ;;  %v8456_v51 = vadd.f32 %v5436_v18, %v4148_v11 }
 0x360   : > { %v5374_v47 = vpop.f32.mrb[121].mxu1  ;;  %v5438_v26 = vpop.f32.mrb[137].mxu0 }
 0x361   : > { %v5375_v49 = vadd.f32 %v5374_v47, %v5373_v59  ;;  %v5439_v55 = vadd.f32 %v5438_v26, %v5437_v21  ;;  %v5376_v56 = vpop.f32.mrb[122].mxu1  ;;  %v5440_v12 = vpop.f32.mrb[138].mxu0  ;;  %v5757_v59 = vld [vmem:[%s6158_s21 + $0x18] sm:$0xff] }
 0x362   : > { %v5377_v17 = vpop.f32.mrb[123].mxu1  ;;  %v5441_v36 = vpop.f32.mrb[139].mxu0 }
 0x363   : > { %v4153_v2 = vadd.f32 %v5375_v49, %v8414_v58  ;;  %v5378_v15 = vadd.f32 %v5377_v17, %v5376_v56  ;;  %v5442_v45 = vadd.f32 %v5441_v36, %v5440_v12 }
 0x365   : > { %v4156_v6 = vadd.f32 %v5378_v15, %v8416_v19  ;;  %v8460_v4 = vadd.f32 %v5439_v55, %v4153_v2  ;;  %v5758_v55 = vld [vmem:[%s6158_s21 + $0x8] sm:$0xff] }
 0x367   : > { %v5379_v43 = vpop.f32.mrb[124].mxu1  ;;  %v5443_v3 = vpop.f32.mrb[140].mxu0  ;;  %v8462_v38 = vadd.f32 %v5442_v45, %v4156_v6 }
 0x368   : > { %v5380_v25 = vpop.f32.mrb[125].mxu1  ;;  %v5444_v53 = vpop.f32.mrb[141].mxu0 }
 0x369   : > { %v5381_v0 = vadd.f32 %v5380_v25, %v5379_v43  ;;  %v5445_v5 = vadd.f32 %v5444_v53, %v5443_v3  ;;  %v5382_v54 = vpop.f32.mrb[126].mxu1  ;;  %v5446_v23 = vpop.f32.mrb[142].mxu0 }
 0x36a   : > { %v5383_v27 = vpop.f32.mrb[127].mxu1  ;;  %v5447_v8 = vpop.f32.mrb[143].mxu0 }
 0x36b   : > { %v4161_v58 = vadd.f32 %v5381_v0, %v8418_v46  ;;  %v5384_v16 = vadd.f32 %v5383_v27, %v5382_v54  ;;  %v5448_v62 = vadd.f32 %v5447_v8, %v5446_v23  ;;  %v8479_v46 = vld [vmem:[%s8621_s6] ss:$0 sm:$0xff] }
 0x36c   : > { %v5760_v54 = vld [vmem:[%s6158_s21 + $0x20] sm:$0xff] }
 0x36d   : > { %v4164_v19 = vadd.f32 %v5384_v16, %v8420_v9  ;;  %v8466_v42 = vadd.f32 %v5445_v5, %v4161_v58  ;;  %v5761_v58 = vld [vmem:[%s6158_s21 + $0x38] sm:$0xff] }
 0x36f   : > { %v5515_v48 = vpop.f32.mrb[128].mxu1  ;;  %v8473_v13 = vadd.f32 %v5448_v62, %v4164_v19 }
 0x370   : > { %v4307_v10 = vadd.f32 %v5515_v48, %v8430_v39  ;;  %v4298_v37 = vpop.f32.mrb[129].mxu1 }
 0x371   : > { %v4299_v9 = vadd.f32 %v4298_v37, %v8424_v63  ;;  %v5516_v41 = vpop.f32.mrb[130].mxu1 }
 0x372   : > { %v4370_v57 = vmul.f32 %v8471_v44, %v4307_v10  ;;  %v4310_v24 = vadd.f32 %v5516_v41, %v8432_v29  ;;  %v4301_v34 = vpop.f32.mrb[131].mxu1  ;;  %v5762_v10 = vld [vmem:[%s6158_s21 + $0x28] sm:$0xff] }
 0x373   : > { %v4368_v31 = vmul.f32 %v8471_v44, %v4299_v9  ;;  %v4302_v39 = vadd.f32 %v4301_v34, %v8426_v40 }
 0x374   : > { %v4393_v30 = vadd.f32 %v8479_v46, %v4370_v57  ;;  %v4371_v61 = vmul.f32 %v8471_v44, %v4310_v24 }
 0x375   : > { %v4391_v22 = vadd.f32 %v8479_v46, %v4368_v31  ;;  %v4369_v63 = vmul.f32 %v8471_v44, %v4302_v39 }
 0x376   : > { %v4409_v1 = vadd.f32 %v5755_v60, %v4393_v30  ;;  %v4394_v29 = vadd.f32 %v8479_v46, %v4371_v61 }
 0x377   : > { %v4407_v14 = vadd.f32 %v5756_v28, %v4391_v22  ;;  %v4392_v18 = vadd.f32 %v8479_v46, %v4369_v63  ;;  %v5519_v11 = vpop.f32.mrb[132].mxu1 }
 0x378   : > { %v4425_v40 = vmax.f32 %v4409_v1, 0.0  ;;  %v4410_v21 = vadd.f32 %v5757_v59, %v4394_v29  ;;  %v4323_v47 = vadd.f32 %v5519_v11, %v8442_v20  ;;  %v4314_v26 = vpop.f32.mrb[133].mxu1  ;;  %v5764_v29 = vld [vmem:[%s6158_s21 + $0x40] sm:$0xff]  ;;  %v5765_v11 = vld [vmem:[%s6158_s21 + $0x58] sm:$0xff] }
 0x379   : > { %v4423_v49 = vmax.f32 %v4407_v14, 0.0  ;;  %v4408_v56 = vadd.f32 %v5758_v55, %v4392_v18  ;;  %v4315_v12 = vadd.f32 %v4314_v26, %v8436_v7  ;;  %v5520_v17 = vpop.f32.mrb[134].mxu1  ;;  %v5766_v26 = vld [vmem:[%s6158_s21 + $0x48] sm:$0xff] }
 0x37a   : > { %4441 = vst [vmem:[%s8500_s12 + $0x10] sm:$0xff] %v4425_v40  ;;  %v4426_v36 = vmax.f32 %v4410_v21, 0.0  ;;  %v4374_v2 = vmul.f32 %v8471_v44, %v4323_v47  ;;  %v4326_v20 = vadd.f32 %v5520_v17, %v8444_v33  ;;  %v4317_v15 = vpop.f32.mrb[135].mxu1  ;;  %v5759_v33 = vld [vmem:[%s6158_s21 + $0x30] sm:$0xff] }
 0x37b   : > { %4439 = vst [vmem:[%s8500_s12] sm:$0xff] %v4423_v49  ;;  %v4424_v45 = vmax.f32 %v4408_v56, 0.0  ;;  %v4372_v7 = vmul.f32 %v8471_v44, %v4315_v12  ;;  %v4318_v6 = vadd.f32 %v4317_v15, %v8438_v32 }
 0x37c   : > { %4442 = vst [vmem:[%s8500_s12 + $0x18] sm:$0xff] %v4426_v36  ;;  %v4397_v43 = vadd.f32 %v8479_v46, %v4374_v2  ;;  %v4375_v3 = vmul.f32 %v8471_v44, %v4326_v20 }
 0x37d   : > { %4440 = vst [vmem:[%s8500_s12 + $0x8] sm:$0xff] %v4424_v45  ;;  %v4395_v25 = vadd.f32 %v8479_v46, %v4372_v7  ;;  %v4373_v53 = vmul.f32 %v8471_v44, %v4318_v6  ;;  %v5767_v6 = vld [vmem:[%s6158_s21 + $0x70] sm:$0xff] }
 0x37e   : > { %v4413_v0 = vadd.f32 %v5759_v33, %v4397_v43  ;;  %v4398_v5 = vadd.f32 %v8479_v46, %v4375_v3 }
 0x37f   : > { %v4411_v23 = vadd.f32 %v5760_v54, %v4395_v25  ;;  %v4396_v32 = vadd.f32 %v8479_v46, %v4373_v53  ;;  %v5523_v27 = vpop.f32.mrb[136].mxu1  ;;  %v5768_v25 = vld [vmem:[%s6158_s21 + $0x60] sm:$0xff] }
 0x380   : > { %v4429_v8 = vmax.f32 %v4413_v0, 0.0  ;;  %v4414_v16 = vadd.f32 %v5761_v58, %v4398_v5  ;;  %v4339_v62 = vadd.f32 %v5523_v27, %v8454_v52  ;;  %v4330_v19 = vpop.f32.mrb[137].mxu1  ;;  %v5769_v0 = vld [vmem:[%s6158_s21 + $0x78] sm:$0xff] }
 0x381   : > { %v4427_v48 = vmax.f32 %v4411_v23, 0.0  ;;  %v4412_v37 = vadd.f32 %v5762_v10, %v4396_v32  ;;  %v4331_v9 = vadd.f32 %v4330_v19, %v8448_v50  ;;  %v5524_v41 = vpop.f32.mrb[138].mxu1 }
 0x382   : > { %4445 = vst [vmem:[%s8500_s12 + $0x30] sm:$0xff] %v4429_v8  ;;  %v4430_v57 = vmax.f32 %v4414_v16, 0.0  ;;  %v4378_v24 = vmul.f32 %v8471_v44, %v4339_v62  ;;  %v4342_v34 = vadd.f32 %v5524_v41, %v8456_v51  ;;  %v4333_v31 = vpop.f32.mrb[139].mxu1  ;;  %v5763_v51 = vld [vmem:[%s6158_s21 + $0x50] sm:$0xff] }
 0x383   : > { %4443 = vst [vmem:[%s8500_s12 + $0x20] sm:$0xff] %v4427_v48  ;;  %v4428_v52 = vmax.f32 %v4412_v37, 0.0  ;;  %v4376_v39 = vmul.f32 %v8471_v44, %v4331_v9  ;;  %v4334_v30 = vadd.f32 %v4333_v31, %v8450_v35 }
 0x384   : > { %4446 = vst [vmem:[%s8500_s12 + $0x38] sm:$0xff] %v4430_v57  ;;  %v4401_v50 = vadd.f32 %v8479_v46, %v4378_v24  ;;  %v4379_v61 = vmul.f32 %v8471_v44, %v4342_v34 }
 0x385   : > { %4444 = vst [vmem:[%s8500_s12 + $0x28] sm:$0xff] %v4428_v52  ;;  %v4399_v22 = vadd.f32 %v8479_v46, %v4376_v39  ;;  %v4377_v63 = vmul.f32 %v8471_v44, %v4334_v30 }
 0x386   : > { %v4417_v60 = vadd.f32 %v5763_v51, %v4401_v50  ;;  %v4402_v1 = vadd.f32 %v8479_v46, %v4379_v61 }
 0x387   : > { %v4415_v28 = vadd.f32 %v5764_v29, %v4399_v22  ;;  %v4400_v35 = vadd.f32 %v8479_v46, %v4377_v63  ;;  %v5527_v14 = vpop.f32.mrb[140].mxu1 }
 0x388   : > { %v4433_v18 = vmax.f32 %v4417_v60, 0.0  ;;  %v4418_v40 = vadd.f32 %v5765_v11, %v4402_v1  ;;  %v4355_v59 = vadd.f32 %v5527_v14, %v8466_v42  ;;  %v4346_v21 = vpop.f32.mrb[141].mxu1 }
 0x389   : > { %v4431_v47 = vmax.f32 %v4415_v28, 0.0  ;;  %v4416_v49 = vadd.f32 %v5766_v26, %v4400_v35  ;;  %v4347_v55 = vadd.f32 %v4346_v21, %v8460_v4  ;;  %v5528_v56 = vpop.f32.mrb[142].mxu1 }
 0x38a   : > { %4449 = vst [vmem:[%s8500_s12 + $0x50] sm:$0xff] %v4433_v18  ;;  %v4434_v12 = vmax.f32 %v4418_v40, 0.0  ;;  %v4382_v17 = vmul.f32 %v8471_v44, %v4355_v59  ;;  %v4358_v36 = vadd.f32 %v5528_v56, %v8473_v13  ;;  %v4349_v2 = vpop.f32.mrb[143].mxu1 }
 0x38b   : > { %4447 = vst [vmem:[%s8500_s12 + $0x40] sm:$0xff] %v4431_v47  ;;  %v4432_v42 = vmax.f32 %v4416_v49, 0.0  ;;  %v4380_v20 = vmul.f32 %v8471_v44, %v4347_v55  ;;  %v4350_v15 = vadd.f32 %v4349_v2, %v8462_v38 }
 0x38c   : > { %4450 = vst [vmem:[%s8500_s12 + $0x58] sm:$0xff] %v4434_v12  ;;  %v4405_v4 = vadd.f32 %v8479_v46, %v4382_v17  ;;  %v4383_v45 = vmul.f32 %v8471_v44, %v4358_v36 }
 0x38d   : > { %4448 = vst [vmem:[%s8500_s12 + $0x48] sm:$0xff] %v4432_v42  ;;  %v4403_v7 = vadd.f32 %v8479_v46, %v4380_v20  ;;  %v4381_v13 = vmul.f32 %v8471_v44, %v4350_v15  ;;  %v5770_v44 = vld [vmem:[%s6158_s21 + $0x68] sm:$0xff]  ;;  %s5937_s21 = smov [#allocation8]  }
 0x38e   : > { %v4421_v43 = vadd.f32 %v5767_v6, %v4405_v4  ;;  %v4406_v3 = vadd.f32 %v8479_v46, %v4383_v45  ;;  %s5861_s11 = sshll.u32 %s5937_s21, 4  ;;  %s5862_s11 = int_to_ptr.vmem [resolvable:$false] %s5861_s11 }
 0x38f   : > { %v4419_v38 = vadd.f32 %v5768_v25, %v4403_v7  ;;  %v4404_v53 = vadd.f32 %v8479_v46, %v4381_v13  ;;  %s5863_s22 = scalar_lea.vmem %s5862_s11, 4096  ;;  %p5864_p7 = scmp.lt.s32.totalorder %s8568_s29, %s5862_s11 }
 0x390   : > { %v4437_v33 = vmax.f32 %v4421_v43, 0.0  ;;  %v4422_v5 = vadd.f32 %v5769_v0, %v4406_v3  ;;  %p5865_p9 = scmp.lt.s32.totalorder %s5863_s22, %s5857_s20 }
 0x391   : > { %v4435_v54 = vmax.f32 %v4419_v38, 0.0  ;;  %v4420_v23 = vadd.f32 %v5770_v44, %v4404_v53 }
 0x392   : > { %4453 = vst [vmem:[%s8500_s12 + $0x70] sm:$0xff] %v4437_v33  ;;  %v4438_v32 = vmax.f32 %v4422_v5, 0.0  ;;  %p5866_p12 = por %p5865_p9, %p5864_p7 }
 0x393   : > { %4451 = vst [vmem:[%s8500_s12 + $0x60] sm:$0xff] %v4435_v54  ;;  %v4436_v46 = vmax.f32 %v4420_v23, 0.0 }
 0x394   : > { %4454 = vst [vmem:[%s8500_s12 + $0x78] sm:$0xff] %v4438_v32  ;;  %p5867_p2 = pnand %p5866_p12, %p5860_p3 }
 0x395   : > { %4452 = vst [vmem:[%s8500_s12 + $0x68] sm:$0xff] %v4436_v46 }
 0x396   : > { %5870 = shalt.err (!%p5867_p2)
}
 0x397   : > { %s5871_s10 = scalar_lea.hbm %s8566_s9, 2048  ;;  %s5875_s12 = scalar_lea.hbm %s8622_s7, 4096 }
 0x398   : > { %p5872_p13 = scmp.ne.s32.totalorder %s8566_s9, %s5871_s10  ;;  %p5876_p4 = scmp.lt.u32.totalorder %s8566_s9, %s8622_s7 }
 0x399   : > { %p5877_p5 = scmp.lt.u32.totalorder %s5875_s12, %s5871_s10  ;;  %p5879_p11 = scmp.lt.u32.totalorder %s5871_s10, %s8566_s9 }
 0x39a   : > { %p5873_p6 = pnand %p5872_p13, %p9267_p0 }
 0x39b   : > { %p5878_p8 = por %p5877_p5, %p5876_p4 }
 0x39c   : > { %p5874_p10 = pneg %p5873_p6 }
 0x39d   : > { %p5880_p1 = por %p5879_p11, %p5878_p8 }
 0x39f   : > { %p5881_p3 = pnand %p5880_p1, %p5874_p10 }
 0x3a1   : > { %5884 = shalt.err (!%p5881_p3)
}
 0x3a2   : > { %s5938_s30 = smov 128   ;;  %s5939_s20 = smov 8  }
 0x3a3   : > { %5539 = dma.vmem_to_hbm [thread:$0]  (%p9267_p0), %s8568_s29, 2048, %s8566_s9, %s4456_s28, %s5938_s30, %s5938_s30, %s5939_s20  }
 0x3a4 PF: > { %s4484_s21 = sand.u32 1, %s5915_s24   ;;  %p9268_p7 = scmp.ne.s32.totalorder %s8739_s8, 0 }
 0x3a5   : > { %p9269_p9 = scmp.ge.s32.totalorder %s5927_s27, 2  ;;  %s4485_s11 = scalar_lea.sflag [#allocation4], %s4484_s21 }
 0x3a7   : > { %p5553_p12 = pnand %p9269_p9, %p9268_p7 }
 0x3a9   : > { %5910 = dma.done.wait (!%p5553_p12), %s4485_s11, 2048  }
 0x3aa   : > { %5912 = vsyncadd (!%p5553_p12), %s4485_s11, 4294965248  ;;  %p21_p2 = scmp.ge.s32.totalorder %s6090_s13, 4   ;;  %s9270_s24 = smov %s5919_s25 }
 0x3ab   : > { %s9271_s25 = smov %s5923_s26  ;;  %s9272_s26 = smov %s6106_s17 }
 0x3ac   : > { %s9273_s27 = smov %s6090_s13  ;;  %23 = sbr.rel (!%p21_p2) target bundleno = 6 (0x6), region = 101 }
 0x3b3   :  { %4490 = vsyncpa [#allocation3], 1 }
 0x3b4   :  { %4492 = vsyncpa [#allocation3 + $0x1], 1 }
 0x3b5   :  { %4493 = vsyncpa [#allocation6], 1 }
 0x3b6   :  { %4494 = vsyncpa [#allocation4], 1 }
 0x3b7   :  { %4496 = vsyncpa [#allocation4 + $0x1], 1 }

</bundles_post_ra>
